<compile_context>
chip_gen: v7x
topology: tpu7x:2x2x1
jax: 0.10.0
libtpu: 0.0.40
codegen_flags: <defaults>
</compile_context>

<pallas_src>
import functools

import jax
import jax.numpy as jnp
import numpy as np
from jax import lax
from jax.experimental import pallas as pl
from jax.experimental.pallas import tpu as pltpu

jax.config.update("jax_default_matmul_precision", "highest")


def _choose_tile_k(S, C, budget_bytes=2 * 1024 * 1024):
    """Largest k-tile (in words) whose (S, tile*C) f32 block fits the budget and
    whose lane width tile*C is 128-aligned (or the tile covers all of S)."""
    valid = [tk for tk in range(1, S + 1)
             if S % tk == 0 and (tk == S or (tk * C) % 128 == 0)]
    fits = [tk for tk in valid if S * tk * C * 4 <= budget_bytes]
    return max(fits) if fits else min(valid)


# -----------------------------------------------------------------------------
# Fused kernel: word features + span table + classifier + masked CE loss
# -----------------------------------------------------------------------------
def _fused_kernel(blen_ref, tlen_ref,                       # scalar prefetch (SMEM)
                  mapback_ref, bert_ref, wd_ref, bd_ref,    # inputs
                  wcat_ref, bcls_ref, label_ref,
                  logits_ref, loss_ref,                     # outputs
                  v_s,                                      # VMEM scratch
                  *, C, TK, span_average, compute_loss, compute_dtype):
    b = pl.program_id(0)
    kt = pl.program_id(1)
    S, _ = v_s.shape
    Lb = bert_ref.shape[1]
    TKC = TK * C
    cdt = compute_dtype
    f32 = jnp.float32
    tl = tlen_ref[b]

    # ---- per-batch word features (computed once, cached in VMEM scratch) ------
    @pl.when(kt == 0)
    def _():
        blen = blen_ref[b]
        # NOTE: the reference's `bert_out * seq_indi` pre-mask is redundant: the
        # one-hot matrix below already zeroes every sub-word position >= blen.
        proj = jnp.dot(bert_ref[0], wd_ref[...],
                       preferred_element_type=f32) + bd_ref[...]        # (Lb, H)
        mb = mapback_ref[0]                                              # (1, Lb)
        wid = lax.broadcasted_iota(jnp.int32, (S, Lb), 0)
        spos = lax.broadcasted_iota(jnp.int32, (S, Lb), 1)
        oh = (wid == mb) & (spos < blen)                                 # (S, Lb)
        wnt = jnp.sum(oh.astype(f32), axis=-1, keepdims=True)            # (S, 1)
        inv_wnt = pl.reciprocal(jnp.where(wnt == 0.0, 1.0, wnt))
        v = jnp.dot(oh.astype(cdt), proj.astype(cdt),
                    preferred_element_type=f32)                          # (S, H)
        v_s[...] = v * inv_wnt
        loss_ref[...] = jnp.zeros_like(loss_ref)

    # ---- classifier heads: single merged matmul v @ [w1|w2|w3] ----------------
    v = v_s[...]
    aik = jnp.dot(v.astype(cdt), wcat_ref[...], preferred_element_type=f32)  # (S, 3C)
    a_i = aik[:, :C]                       # boundary term for row index i
    akb = aik[:, C:2 * C] + bcls_ref[...]  # boundary term for col index k (+ bias)
    u = aik[:, 2 * C:]                     # span term (per word j)

    # ---- flat-lane helpers (no vector int div, no big relayouts) --------------
    row_i = lax.broadcasted_iota(jnp.int32, (S, 1), 0)                       # (S, 1)
    word_of_lane = lax.broadcasted_iota(jnp.int32, (1, TK, C), 1) \
        .reshape(1, TKC) + kt * TK                                           # global k
    cls_of_lane = lax.broadcasted_iota(jnp.int32, (1, TK, C), 2).reshape(1, TKC)

    m_rep = ((row_i <= word_of_lane) & (row_i < tl)
             & (word_of_lane < tl)).astype(f32)                              # (S, TKC)
    sel = (row_i == word_of_lane).astype(f32)                                # (S, TKC)

    ri = lax.broadcasted_iota(jnp.int32, (S, S), 0)
    ci = lax.broadcasted_iota(jnp.int32, (S, S), 1)
    m = ((ri <= ci) & (ri < tl) & (ci < tl)).astype(cdt)                     # (S, S)

    # class-replication matrix P[c, t*C + c'] = (c == c')  -> expands (S,C) heads
    # to the flat (S, TK*C) lane layout with one small MXU matmul each.
    P = (cls_of_lane ==
         lax.broadcasted_iota(jnp.int32, (C, 1), 0)).astype(cdt)             # (C, TKC)

    u_tile = jnp.dot(u.astype(cdt), P, preferred_element_type=f32)      # u[j, c]
    ai_tile = jnp.dot(a_i.astype(cdt), P, preferred_element_type=f32)   # a_i[i, c]
    akb_tile = jnp.dot(akb.astype(cdt), P, preferred_element_type=f32)
    ak_row = jnp.sum(sel * akb_tile, axis=0, keepdims=True)             # (1, TKC): akb[k, c]

    # span term: one lane-dense MXU matmul   span[i, k*C+c] = sum_j m[i,j] m[j,k] u[j,c]
    t_flat = (m_rep * u_tile).astype(cdt)                               # (S, TKC)
    span = jnp.dot(m, t_flat, preferred_element_type=f32)               # (S, TKC)
    if span_average:
        ln = jnp.maximum(word_of_lane - row_i + 1, 1).astype(f32)
        span = span * pl.reciprocal(ln)

    logits = (ai_tile + ak_row + span) * m_rep                          # (S, TKC)
    logits_ref[0] = logits

    # ---- masked cross-entropy, accumulated across k-tiles ---------------------
    if compute_loss:
        lbl = label_ref[0, 0]                                           # (S, TK)
        lg3 = logits.reshape(S, TK, C)      # only view used for the class reduction
        mx = jnp.max(lg3, axis=-1, keepdims=True)
        lse = jnp.log(jnp.sum(jnp.exp(lg3 - mx), axis=-1)) + mx[..., 0]  # (S, TK)
        cls_id = lax.broadcasted_iota(jnp.int32, (S, TK, C), 2)
        picked = jnp.sum(jnp.where(cls_id == lbl[:, :, None], lg3, 0.0), axis=-1)
        wt = lax.broadcasted_iota(jnp.int32, (1, TK), 1) + kt * TK
        m_tk = ((row_i <= wt) & (row_i < tl) & (wt < tl)).astype(f32)    # (S, TK)
        loss_ref[...] += jnp.sum((lse - picked) * m_tk)[None, None, None]


def fused_base_model_pallas(bert_length, token_length, mapback, bert_slice, label,
                            dense_w, dense_b, w_cat, b_cls, *, S, C, span_average,
                            compute_loss, compute_dtype, tile_k):
    B, Lb, Hb = bert_slice.shape
    H = dense_w.shape[1]
    TK = int(tile_k)
    assert S % TK == 0, "tile_k must divide max_seq"
    KT = S // TK
    cdt = compute_dtype

    mapback3 = mapback.reshape(B, 1, Lb).astype(jnp.int32)
    # labels rearranged to (B, KT, S, TK) so each k-tile is a full trailing block
    label_r = jnp.transpose(label.reshape(B, S, KT, TK), (0, 2, 1, 3)).astype(jnp.int32)

    kernel = functools.partial(
        _fused_kernel, C=C, TK=TK, span_average=span_average,
        compute_loss=compute_loss, compute_dtype=cdt)

    grid_spec = pltpu.PrefetchScalarGridSpec(
        num_scalar_prefetch=2,
        grid=(B, KT),
        in_specs=[
            pl.BlockSpec((1, 1, Lb), lambda b, k, *_: (b, 0, 0)),        # word_mapback
            pl.BlockSpec((1, Lb, Hb), lambda b, k, *_: (b, 0, 0)),       # bert features
            pl.BlockSpec((Hb, H), lambda b, k, *_: (0, 0)),              # dense W
            pl.BlockSpec((1, H), lambda b, k, *_: (0, 0)),               # dense b
            pl.BlockSpec((H, 3 * C), lambda b, k, *_: (0, 0)),           # [w1|w2|w3]
            pl.BlockSpec((1, C), lambda b, k, *_: (0, 0)),               # cls bias
            pl.BlockSpec((1, 1, S, TK), lambda b, k, *_: (b, k, 0, 0)),  # labels
        ],
        out_specs=[
            pl.BlockSpec((1, S, TK * C), lambda b, k, *_: (b, 0, k)),    # flat logits
            pl.BlockSpec((1, 1, 1), lambda b, k, *_: (b, 0, 0)),         # loss accum
        ],
        scratch_shapes=[pltpu.VMEM((S, H), jnp.float32)],                # cached v
    )
    logits_flat, loss_b = pl.pallas_call(
        kernel,
        out_shape=(jax.ShapeDtypeStruct((B, S, S * C), jnp.float32),
                   jax.ShapeDtypeStruct((B, 1, 1), jnp.float32)),
        grid_spec=grid_spec,
        compiler_params=pltpu.CompilerParams(
            dimension_semantics=("parallel", "arbitrary")),
    )(bert_length.astype(jnp.int32), token_length.astype(jnp.int32),
      mapback3, bert_slice.astype(cdt),
      dense_w.astype(cdt), dense_b.reshape(1, H).astype(jnp.float32),
      w_cat.astype(cdt), b_cls.reshape(1, C).astype(jnp.float32),
      label_r)
    return logits_flat, loss_b


# -----------------------------------------------------------------------------
# base_model forward (glue around the fused Pallas kernel)
# -----------------------------------------------------------------------------
def base_model_forward(params, inputs, span_average=False, *,
                       max_seq, max_bert_len=None,
                       compute_dtype=jnp.bfloat16, tile_k=None):
    bert_token = inputs["bert_token"]
    bert_word_mapback = inputs["bert_word_mapback"]
    token_length = inputs["token_length"]
    bert_length = inputs["bert_length"]
    golden_label = inputs.get("golden_label", None)

    # attention_mask = (bert_token > 0) is only consumed by the BERT encoder.
    # TODO(synk): pretrained BERT encoder has no clean Pallas equivalent here;
    # replaced by a deterministic token-embedding lookup as last_hidden_state.
    last_hidden_state = params["bert_embedding"][bert_token]

    B = bert_token.shape[0]
    H = params["dense_w"].shape[1]
    C = params["cls_b"].shape[0]
    S = int(max_seq)                                  # static: no host sync
    Lb = int(max_bert_len) if max_bert_len is not None \
        else int(bert_word_mapback.shape[1])          # static fallback

    bert_slice = last_hidden_state[:, 1:Lb + 1, :]
    mapback = bert_word_mapback[:, :Lb]

    # split the (3H, C) classifier weight into [w1|w2|w3] -> (H, 3C)
    w1, w2, w3 = params["cls_w"][:H], params["cls_w"][H:2 * H], params["cls_w"][2 * H:]
    w_cat = jnp.concatenate([w1, w2, w3], axis=1)

    TK = int(tile_k) if tile_k is not None else _choose_tile_k(S, C)

    compute_loss = golden_label is not None
    gl = golden_label if compute_loss else jnp.zeros((B, S, S), jnp.int32)

    # layer_drop (nn.Dropout) is the identity in eval mode.
    logits_flat, loss_b = fused_base_model_pallas(
        bert_length, token_length, mapback, bert_slice, gl,
        params["dense_w"], params["dense_b"], w_cat, params["cls_b"],
        S=S, C=C, span_average=span_average, compute_loss=compute_loss,
        compute_dtype=compute_dtype, tile_k=TK)

    outputs = {"logits": logits_flat.reshape(B, S, S, C)}   # free view in HBM
    if compute_loss:
        outputs["loss"] = jnp.sum(loss_b)
    return outputs


# -----------------------------------------------------------------------------
# Pure-JAX reference (direct translation of the PyTorch forward) for checking
# -----------------------------------------------------------------------------
def reference_forward(params, inputs, span_average=False, *, max_seq, max_bert_len):
    bert_token = inputs["bert_token"]
    mapback = inputs["bert_word_mapback"]
    token_length = inputs["token_length"]
    bert_length = inputs["bert_length"]
    golden_label = inputs.get("golden_label", None)

    emb = params["bert_embedding"][bert_token]
    Lb = int(max_bert_len)
    S = int(max_seq)

    indi = (jnp.arange(Lb)[None, :] < bert_length[:, None]).astype(jnp.float32)[..., None]
    bert_out = emb[:, 1:Lb + 1, :] * indi
    onehot = jax.nn.one_hot(mapback[:, :Lb], S) * indi
    onehot = jnp.transpose(onehot, (0, 2, 1))
    proj = bert_out @ params["dense_w"] + params["dense_b"]
    v = onehot @ proj
    wnt = onehot.sum(-1)
    wnt = jnp.where(wnt == 0.0, 1.0, wnt)
    v = v / wnt[..., None]

    tok_mask = (jnp.arange(S)[None, :] < token_length[:, None]).astype(jnp.float32)
    m = jnp.triu(jnp.ones((S, S), jnp.float32))[None] * \
        tok_mask[:, None, :] * tok_mask[:, :, None]
    boundary = jnp.concatenate([jnp.repeat(v[:, :, None, :], S, axis=2),
                                jnp.repeat(v[:, None, :, :], S, axis=1)], -1) * m[..., None]
    new_v = v[:, None, :, :] * m[..., None]
    span = jnp.einsum("bijh,bjk->bikh", new_v, m)
    if span_average:
        sub = jnp.maximum(jnp.arange(1, S + 1)[:, None] - jnp.arange(S)[None, :], 1).T
        span = span / sub[None, :, :, None]
    table = jnp.concatenate([boundary, span], -1)
    logits = (table @ params["cls_w"] + params["cls_b"]) * m[..., None]
    out = {"logits": logits}
    if golden_label is not None:
        logp = jax.nn.log_softmax(logits, -1)
        ce = -jnp.take_along_axis(logp, golden_label[..., None], axis=-1)[..., 0]
        out["loss"] = jnp.sum(ce * m)
    return out


if __name__ == "__main__":
    key = jax.random.PRNGKey(0)
    B, S, C = 2, 16, 16          # batch, max words, classes
    Hb, H = 32, 32               # "bert" width, hidden_dim
    Lb = 20                      # static max sub-word length
    L_tok = Lb + 4
    vocab = 100

    kp, kd1, kd2, kc1, kc2, kt_, kl = jax.random.split(key, 7)
    params = {
        "bert_embedding": jax.random.normal(kp, (vocab, Hb), jnp.float32) * 0.5,
        "dense_w": jax.random.normal(kd1, (Hb, H), jnp.float32) * 0.1,
        "dense_b": jax.random.normal(kd2, (H,), jnp.float32) * 0.1,
        "cls_w": jax.random.normal(kc1, (3 * H, C), jnp.float32) * 0.1,
        "cls_b": jax.random.normal(kc2, (C,), jnp.float32) * 0.1,
    }

    bert_length = jnp.array([20, 14], dtype=jnp.int32)
    token_length = jnp.array([16, 11], dtype=jnp.int32)

    bert_token = jax.random.randint(kt_, (B, L_tok), 1, vocab).astype(jnp.int32)
    pos = jnp.arange(L_tok)[None, :]
    bert_token = jnp.where(pos < (bert_length[:, None] + 1), bert_token, 0)

    # deterministic sub-word -> word mapping covering words 0..token_length-1
    mb_np = np.zeros((B, Lb), np.int32)
    for bi, (bl, tl) in enumerate(zip([20, 14], [16, 11])):
        for j in range(bl):
            mb_np[bi, j] = min(j * tl // bl, tl - 1)
    bert_word_mapback = jnp.asarray(mb_np)

    golden_label = jax.random.randint(kl, (B, S, S), 0, C).astype(jnp.int32)

    inputs = {
        "bert_token": bert_token,
        "bert_word_mapback": bert_word_mapback,
        "token_length": token_length,
        "bert_length": bert_length,
        "golden_label": golden_label,
    }

    configs = [
        # (span_average, compute_dtype, tile_k, tolerance)
        (False, jnp.float32, None, 1e-3),   # exact path, single k-tile
        (True, jnp.float32, 8, 1e-3),       # exact path, 2 k-tiles, span averaging
        (False, jnp.bfloat16, 8, 5e-2),     # bf16 MXU path (production default)
    ]
    for span_avg, cdt, tk, tol in configs:
        out = base_model_forward(params, inputs, span_average=span_avg,
                                 max_seq=S, max_bert_len=Lb,
                                 compute_dtype=cdt, tile_k=tk)
        jax.block_until_ready(out["logits"])
        jax.block_until_ready(out["loss"])
        ref = reference_forward(params, inputs, span_average=span_avg,
                                max_seq=S, max_bert_len=Lb)
        np.testing.assert_allclose(np.asarray(out["logits"], dtype=np.float32),
                                   np.asarray(ref["logits"]), rtol=tol, atol=tol)
        np.testing.assert_allclose(float(out["loss"]), float(ref["loss"]),
                                   rtol=tol, atol=tol)

    print("KERNEL_OK")
</pallas_src>

<mosaic_0001>
module attributes {stable_mosaic.version = 11 : i64} {
  func.func @_fused_kernel(%arg0: i32, %arg1: i32, %arg2: memref<2xi32, #tpu.memory_space<smem>>, %arg3: memref<2xi32, #tpu.memory_space<smem>>, %arg4: memref<1x1x20xi32, #tpu.memory_space<vmem>>, %arg5: memref<1x20x32xf32, #tpu.memory_space<vmem>>, %arg6: memref<32x32xf32, #tpu.memory_space<vmem>>, %arg7: memref<1x32xf32, #tpu.memory_space<vmem>>, %arg8: memref<32x48xf32, #tpu.memory_space<vmem>>, %arg9: memref<1x16xf32, #tpu.memory_space<vmem>>, %arg10: memref<1x1x16x16xi32, #tpu.memory_space<vmem>>, %arg11: memref<1x16x256xf32, #tpu.memory_space<vmem>>, %arg12: memref<1x1x1xf32, #tpu.memory_space<vmem>>, %arg13: memref<16x32xf32, #tpu.memory_space<vmem>>) attributes {dimension_semantics = [#tpu.dimension_semantics<parallel>, #tpu.dimension_semantics<arbitrary>], iteration_bounds = array<i64: 2, 1>, scalar_prefetch = 2 : i64, scratch_operands = 1 : i64, tpu.core_type = #tpu.core_type<tc>, window_params = [{transform_indices = @transform_0, window_bounds = array<i64: 1, 1, 20>}, {transform_indices = @transform_1, window_bounds = array<i64: 1, 20, 32>}, {pipeline_mode = #tpu.pipeline_mode<synchronous>, transform_indices = @transform_2, window_bounds = array<i64: 32, 32>}, {pipeline_mode = #tpu.pipeline_mode<synchronous>, transform_indices = @transform_3, window_bounds = array<i64: 1, 32>}, {pipeline_mode = #tpu.pipeline_mode<synchronous>, transform_indices = @transform_4, window_bounds = array<i64: 32, 48>}, {pipeline_mode = #tpu.pipeline_mode<synchronous>, transform_indices = @transform_5, window_bounds = array<i64: 1, 16>}, {transform_indices = @transform_6, window_bounds = array<i64: 1, 1, 16, 16>}, {transform_indices = @transform_7, window_bounds = array<i64: 1, 16, 256>}, {transform_indices = @transform_8, window_bounds = array<i64: 1, 1, 1>}]} {
    %0 = arith.index_cast %arg0 : i32 to index
    %1 = memref.load %arg3[%0] : memref<2xi32, #tpu.memory_space<smem>>
    %c0_i32 = arith.constant 0 : i32
    %2 = arith.cmpi eq, %arg1, %c0_i32 : i32
    %3 = arith.extui %2 : i1 to i32
    %c0_i32_0 = arith.constant 0 : i32
    %4 = arith.cmpi ne, %3, %c0_i32_0 : i32
    scf.if %4 {
      %118 = arith.index_cast %arg0 : i32 to index
      %119 = memref.load %arg2[%118] : memref<2xi32, #tpu.memory_space<smem>>
      %c0_30 = arith.constant 0 : index
      %c0_31 = arith.constant 0 : index
      %c0_32 = arith.constant 0 : index
      %120 = vector.load %arg5[%c0_30, %c0_31, %c0_32] : memref<1x20x32xf32, #tpu.memory_space<vmem>>, vector<1x20x32xf32>
      %121 = vector.shape_cast %120 : vector<1x20x32xf32> to vector<20x32xf32>
      %c0_33 = arith.constant 0 : index
      %c0_34 = arith.constant 0 : index
      %122 = vector.load %arg6[%c0_33, %c0_34] : memref<32x32xf32, #tpu.memory_space<vmem>>, vector<32x32xf32>
      %cst_35 = arith.constant dense<0.000000e+00> : vector<20x32xf32>
      %123 = tpu.matmul %121, %122, %cst_35 {dimension_numbers = #tpu.dot_dimension_numbers<[1], [0], [0], [1], [0, 0, 1, 1], [], []>, precision = #tpu.contract_precision<fp32>} : vector<20x32xf32>, vector<32x32xf32>, vector<20x32xf32> -> vector<20x32xf32>
      %c0_36 = arith.constant 0 : index
      %c0_37 = arith.constant 0 : index
      %124 = vector.load %arg7[%c0_36, %c0_37] : memref<1x32xf32, #tpu.memory_space<vmem>>, vector<1x32xf32>
      %125 = vector.broadcast %124 : vector<1x32xf32> to vector<20x32xf32>
      %126 = arith.addf %123, %125 : vector<20x32xf32>
      %c0_38 = arith.constant 0 : index
      %c0_39 = arith.constant 0 : index
      %c0_40 = arith.constant 0 : index
      %127 = vector.load %arg4[%c0_38, %c0_39, %c0_40] : memref<1x1x20xi32, #tpu.memory_space<vmem>>, vector<1x1x20xi32>
      %128 = vector.shape_cast %127 : vector<1x1x20xi32> to vector<1x20xi32>
      %129 = tpu.iota {dimensions = array<i32: 0>} : vector<16x20xi32>
      %130 = tpu.iota {dimensions = array<i32: 1>} : vector<16x20xi32>
      %131 = vector.broadcast %128 : vector<1x20xi32> to vector<16x20xi32>
      %132 = arith.cmpi eq, %129, %131 : vector<16x20xi32>
      %133 = vector.broadcast %119 : i32 to vector<16x20xi32>
      %134 = arith.cmpi slt, %130, %133 : vector<16x20xi32>
      %135 = arith.andi %132, %134 : vector<16x20xi1>
      %136 = arith.extui %135 : vector<16x20xi1> to vector<16x20xi32>
      %137 = arith.sitofp %136 : vector<16x20xi32> to vector<16x20xf32>
      %cst_41 = arith.constant dense<0.000000e+00> : vector<16xf32>
      %138 = vector.multi_reduction <add>, %137, %cst_41 [1] : vector<16x20xf32> to vector<16xf32>
      %139 = vector.shape_cast %138 : vector<16xf32> to vector<16x1xf32>
      %cst_42 = arith.constant 0.000000e+00 : f32
      %140 = vector.broadcast %cst_42 : f32 to vector<16x1xf32>
      %141 = arith.cmpf oeq, %139, %140 : vector<16x1xf32>
      %cst_43 = arith.constant 1.000000e+00 : f32
      %142 = vector.broadcast %cst_43 : f32 to vector<16x1xf32>
      %143 = arith.select %141, %142, %139 : vector<16x1xi1>, vector<16x1xf32>
      %144 = tpu.reciprocal %143 : vector<16x1xf32> -> vector<16x1xf32>
      %145 = arith.extui %135 : vector<16x20xi1> to vector<16x20xi32>
      %146 = arith.sitofp %145 : vector<16x20xi32> to vector<16x20xf32>
      %cst_44 = arith.constant dense<0.000000e+00> : vector<16x32xf32>
      %147 = tpu.matmul %146, %126, %cst_44 {dimension_numbers = #tpu.dot_dimension_numbers<[1], [0], [0], [1], [0, 0, 1, 1], [], []>, precision = #tpu.contract_precision<fp32>} : vector<16x20xf32>, vector<20x32xf32>, vector<16x32xf32> -> vector<16x32xf32>
      %148 = vector.broadcast %144 : vector<16x1xf32> to vector<16x32xf32>
      %149 = arith.mulf %147, %148 : vector<16x32xf32>
      %c0_45 = arith.constant 0 : index
      %c0_46 = arith.constant 0 : index
      %150 = vector.load %arg13[%c0_45, %c0_46] : memref<16x32xf32, #tpu.memory_space<vmem>>, vector<16x32xf32>
      tpu.vector_store %arg13[%c0_45, %c0_46], %149 {strides = array<i32>} : memref<16x32xf32, #tpu.memory_space<vmem>>, vector<16x32xf32>,
      %cst_47 = arith.constant 0.000000e+00 : f32
      %151 = vector.broadcast %cst_47 : f32 to vector<1x1x1xf32>
      %c0_48 = arith.constant 0 : index
      %c0_49 = arith.constant 0 : index
      %c0_50 = arith.constant 0 : index
      %152 = vector.load %arg12[%c0_48, %c0_49, %c0_50] : memref<1x1x1xf32, #tpu.memory_space<vmem>>, vector<1x1x1xf32>
      tpu.vector_store %arg12[%c0_48, %c0_49, %c0_50], %151 {strides = array<i32>} : memref<1x1x1xf32, #tpu.memory_space<vmem>>, vector<1x1x1xf32>,
    } else {
    }
    %c0 = arith.constant 0 : index
    %c0_1 = arith.constant 0 : index
    %5 = vector.load %arg13[%c0, %c0_1] : memref<16x32xf32, #tpu.memory_space<vmem>>, vector<16x32xf32>
    %c0_2 = arith.constant 0 : index
    %c0_3 = arith.constant 0 : index
    %6 = vector.load %arg8[%c0_2, %c0_3] : memref<32x48xf32, #tpu.memory_space<vmem>>, vector<32x48xf32>
    %cst = arith.constant dense<0.000000e+00> : vector<16x48xf32>
    %7 = tpu.matmul %5, %6, %cst {dimension_numbers = #tpu.dot_dimension_numbers<[1], [0], [0], [1], [0, 0, 1, 1], [], []>, precision = #tpu.contract_precision<fp32>} : vector<16x32xf32>, vector<32x48xf32>, vector<16x48xf32> -> vector<16x48xf32>
    %8 = vector.extract_strided_slice %7 {offsets = [0, 0], sizes = [16, 16], strides = [1, 1]} : vector<16x48xf32> to vector<16x16xf32>
    %9 = vector.extract_strided_slice %7 {offsets = [0, 16], sizes = [16, 16], strides = [1, 1]} : vector<16x48xf32> to vector<16x16xf32>
    %c0_4 = arith.constant 0 : index
    %c0_5 = arith.constant 0 : index
    %10 = vector.load %arg9[%c0_4, %c0_5] : memref<1x16xf32, #tpu.memory_space<vmem>>, vector<1x16xf32>
    %11 = vector.broadcast %10 : vector<1x16xf32> to vector<16x16xf32>
    %12 = arith.addf %9, %11 : vector<16x16xf32>
    %13 = vector.extract_strided_slice %7 {offsets = [0, 32], sizes = [16, 16], strides = [1, 1]} : vector<16x48xf32> to vector<16x16xf32>
    %14 = tpu.iota {dimensions = array<i32: 0>} : vector<16x1xi32>
    %15 = tpu.iota {dimensions = array<i32: 1>} : vector<1x16x16xi32>
    %16 = vector.shape_cast %15 : vector<1x16x16xi32> to vector<1x256xi32>
    %c16_i32 = arith.constant 16 : i32
    %17 = arith.muli %arg1, %c16_i32 : i32
    %18 = vector.broadcast %17 : i32 to vector<1x256xi32>
    %19 = arith.addi %16, %18 : vector<1x256xi32>
    %20 = tpu.iota {dimensions = array<i32: 2>} : vector<1x16x16xi32>
    %21 = vector.shape_cast %20 : vector<1x16x16xi32> to vector<1x256xi32>
    %22 = vector.broadcast %14 : vector<16x1xi32> to vector<16x256xi32>
    %23 = vector.broadcast %19 : vector<1x256xi32> to vector<16x256xi32>
    %24 = arith.cmpi sle, %22, %23 : vector<16x256xi32>
    %25 = vector.broadcast %1 : i32 to vector<16x1xi32>
    %26 = arith.cmpi slt, %14, %25 : vector<16x1xi32>
    %27 = vector.broadcast %26 : vector<16x1xi1> to vector<16x256xi1>
    %28 = arith.andi %24, %27 : vector<16x256xi1>
    %29 = vector.broadcast %1 : i32 to vector<1x256xi32>
    %30 = arith.cmpi slt, %19, %29 : vector<1x256xi32>
    %31 = vector.broadcast %30 : vector<1x256xi1> to vector<16x256xi1>
    %32 = arith.andi %28, %31 : vector<16x256xi1>
    %33 = arith.extui %32 : vector<16x256xi1> to vector<16x256xi32>
    %34 = arith.sitofp %33 : vector<16x256xi32> to vector<16x256xf32>
    %35 = vector.broadcast %14 : vector<16x1xi32> to vector<16x256xi32>
    %36 = vector.broadcast %19 : vector<1x256xi32> to vector<16x256xi32>
    %37 = arith.cmpi eq, %35, %36 : vector<16x256xi32>
    %38 = arith.extui %37 : vector<16x256xi1> to vector<16x256xi32>
    %39 = arith.sitofp %38 : vector<16x256xi32> to vector<16x256xf32>
    %40 = tpu.iota {dimensions = array<i32: 0>} : vector<16x16xi32>
    %41 = tpu.iota {dimensions = array<i32: 1>} : vector<16x16xi32>
    %42 = arith.cmpi sle, %40, %41 : vector<16x16xi32>
    %43 = vector.broadcast %1 : i32 to vector<16x16xi32>
    %44 = arith.cmpi slt, %40, %43 : vector<16x16xi32>
    %45 = arith.andi %42, %44 : vector<16x16xi1>
    %46 = vector.broadcast %1 : i32 to vector<16x16xi32>
    %47 = arith.cmpi slt, %41, %46 : vector<16x16xi32>
    %48 = arith.andi %45, %47 : vector<16x16xi1>
    %49 = arith.extui %48 : vector<16x16xi1> to vector<16x16xi32>
    %50 = arith.sitofp %49 : vector<16x16xi32> to vector<16x16xf32>
    %51 = tpu.iota {dimensions = array<i32: 0>} : vector<16x1xi32>
    %52 = vector.broadcast %21 : vector<1x256xi32> to vector<16x256xi32>
    %53 = vector.broadcast %51 : vector<16x1xi32> to vector<16x256xi32>
    %54 = arith.cmpi eq, %52, %53 : vector<16x256xi32>
    %55 = arith.extui %54 : vector<16x256xi1> to vector<16x256xi32>
    %56 = arith.sitofp %55 : vector<16x256xi32> to vector<16x256xf32>
    %cst_6 = arith.constant dense<0.000000e+00> : vector<16x256xf32>
    %57 = tpu.matmul %13, %56, %cst_6 {dimension_numbers = #tpu.dot_dimension_numbers<[1], [0], [0], [1], [0, 0, 1, 1], [], []>, precision = #tpu.contract_precision<fp32>} : vector<16x16xf32>, vector<16x256xf32>, vector<16x256xf32> -> vector<16x256xf32>
    %cst_7 = arith.constant dense<0.000000e+00> : vector<16x256xf32>
    %58 = tpu.matmul %8, %56, %cst_7 {dimension_numbers = #tpu.dot_dimension_numbers<[1], [0], [0], [1], [0, 0, 1, 1], [], []>, precision = #tpu.contract_precision<fp32>} : vector<16x16xf32>, vector<16x256xf32>, vector<16x256xf32> -> vector<16x256xf32>
    %cst_8 = arith.constant dense<0.000000e+00> : vector<16x256xf32>
    %59 = tpu.matmul %12, %56, %cst_8 {dimension_numbers = #tpu.dot_dimension_numbers<[1], [0], [0], [1], [0, 0, 1, 1], [], []>, precision = #tpu.contract_precision<fp32>} : vector<16x16xf32>, vector<16x256xf32>, vector<16x256xf32> -> vector<16x256xf32>
    %60 = arith.mulf %39, %59 : vector<16x256xf32>
    %cst_9 = arith.constant dense<0.000000e+00> : vector<256xf32>
    %61 = vector.multi_reduction <add>, %60, %cst_9 [0] : vector<16x256xf32> to vector<256xf32>
    %62 = vector.shape_cast %61 : vector<256xf32> to vector<1x256xf32>
    %63 = arith.mulf %34, %57 : vector<16x256xf32>
    %cst_10 = arith.constant dense<0.000000e+00> : vector<16x256xf32>
    %64 = tpu.matmul %50, %63, %cst_10 {dimension_numbers = #tpu.dot_dimension_numbers<[1], [0], [0], [1], [0, 0, 1, 1], [], []>, precision = #tpu.contract_precision<fp32>} : vector<16x16xf32>, vector<16x256xf32>, vector<16x256xf32> -> vector<16x256xf32>
    %65 = vector.broadcast %62 : vector<1x256xf32> to vector<16x256xf32>
    %66 = arith.addf %58, %65 : vector<16x256xf32>
    %67 = arith.addf %66, %64 : vector<16x256xf32>
    %68 = arith.mulf %67, %34 : vector<16x256xf32>
    %c0_11 = arith.constant 0 : index
    %c0_12 = arith.constant 0 : index
    %c0_13 = arith.constant 0 : index
    %69 = vector.load %arg11[%c0_11, %c0_12, %c0_13] : memref<1x16x256xf32, #tpu.memory_space<vmem>>, vector<1x16x256xf32>
    %70 = vector.shape_cast %69 : vector<1x16x256xf32> to vector<16x256xf32>
    %71 = vector.shape_cast %68 : vector<16x256xf32> to vector<1x16x256xf32>
    tpu.vector_store %arg11[%c0_11, %c0_12, %c0_13], %71 {strides = array<i32>} : memref<1x16x256xf32, #tpu.memory_space<vmem>>, vector<1x16x256xf32>,
    %c0_14 = arith.constant 0 : index
    %c0_15 = arith.constant 0 : index
    %c0_16 = arith.constant 0 : index
    %c0_17 = arith.constant 0 : index
    %72 = vector.load %arg10[%c0_14, %c0_15, %c0_16, %c0_17] : memref<1x1x16x16xi32, #tpu.memory_space<vmem>>, vector<1x1x16x16xi32>
    %73 = vector.shape_cast %72 : vector<1x1x16x16xi32> to vector<16x16xi32>
    %74 = vector.shape_cast %68 : vector<16x256xf32> to vector<16x16x16xf32>
    %cst_18 = arith.constant dense<0xFF800000> : vector<16x16xf32>
    %75 = vector.multi_reduction <maximumf>, %74, %cst_18 [2] : vector<16x16x16xf32> to vector<16x16xf32>
    %76 = vector.shape_cast %75 : vector<16x16xf32> to vector<16x16x1xf32>
    %77 = vector.broadcast %76 : vector<16x16x1xf32> to vector<16x16x16xf32>
    %78 = arith.subf %74, %77 : vector<16x16x16xf32>
    %79 = math.exp %78 : vector<16x16x16xf32>
    %cst_19 = arith.constant dense<0.000000e+00> : vector<16x16xf32>
    %80 = vector.multi_reduction <add>, %79, %cst_19 [2] : vector<16x16x16xf32> to vector<16x16xf32>
    %81 = math.log %80 : vector<16x16xf32>
    %82 = vector.shape_cast %76 : vector<16x16x1xf32> to vector<16x16xf32>
    %83 = arith.addf %81, %82 : vector<16x16xf32>
    %84 = tpu.iota {dimensions = array<i32: 2>} : vector<16x16x16xi32>
    %85 = vector.shape_cast %73 : vector<16x16xi32> to vector<16x16x1xi32>
    %86 = vector.broadcast %85 : vector<16x16x1xi32> to vector<16x16x16xi32>
    %87 = arith.cmpi eq, %84, %86 : vector<16x16x16xi32>
    %cst_20 = arith.constant 0.000000e+00 : f32
    %88 = vector.broadcast %cst_20 : f32 to vector<16x16x16xf32>
    %89 = arith.select %87, %74, %88 : vector<16x16x16xi1>, vector<16x16x16xf32>
    %cst_21 = arith.constant dense<0.000000e+00> : vector<16x16xf32>
    %90 = vector.multi_reduction <add>, %89, %cst_21 [2] : vector<16x16x16xf32> to vector<16x16xf32>
    %91 = tpu.iota {dimensions = array<i32: 1>} : vector<1x16xi32>
    %c16_i32_22 = arith.constant 16 : i32
    %92 = arith.muli %arg1, %c16_i32_22 : i32
    %93 = vector.broadcast %92 : i32 to vector<1x16xi32>
    %94 = arith.addi %91, %93 : vector<1x16xi32>
    %95 = vector.broadcast %14 : vector<16x1xi32> to vector<16x16xi32>
    %96 = vector.broadcast %94 : vector<1x16xi32> to vector<16x16xi32>
    %97 = arith.cmpi sle, %95, %96 : vector<16x16xi32>
    %98 = vector.broadcast %1 : i32 to vector<16x1xi32>
    %99 = arith.cmpi slt, %14, %98 : vector<16x1xi32>
    %100 = vector.broadcast %99 : vector<16x1xi1> to vector<16x16xi1>
    %101 = arith.andi %97, %100 : vector<16x16xi1>
    %102 = vector.broadcast %1 : i32 to vector<1x16xi32>
    %103 = arith.cmpi slt, %94, %102 : vector<1x16xi32>
    %104 = vector.broadcast %103 : vector<1x16xi1> to vector<16x16xi1>
    %105 = arith.andi %101, %104 : vector<16x16xi1>
    %106 = arith.extui %105 : vector<16x16xi1> to vector<16x16xi32>
    %107 = arith.sitofp %106 : vector<16x16xi32> to vector<16x16xf32>
    %c0_23 = arith.constant 0 : index
    %c0_24 = arith.constant 0 : index
    %c0_25 = arith.constant 0 : index
    %108 = vector.load %arg12[%c0_23, %c0_24, %c0_25] : memref<1x1x1xf32, #tpu.memory_space<vmem>>, vector<1x1x1xf32>
    %109 = arith.subf %83, %90 : vector<16x16xf32>
    %110 = arith.mulf %109, %107 : vector<16x16xf32>
    %111 = vector.shape_cast %110 : vector<16x16xf32> to vector<1x16x16xf32>
    %cst_26 = arith.constant dense<0.000000e+00> : vector<1xf32>
    %112 = vector.multi_reduction <add>, %111, %cst_26 [1, 2] : vector<1x16x16xf32> to vector<1xf32>
    %113 = vector.shape_cast %112 : vector<1xf32> to vector<1x1x1xf32>
    %114 = vector.extract %113[0, 0, 0] : f32 from vector<1x1x1xf32>
    %115 = vector.broadcast %114 : f32 to vector<1x1x1xf32>
    %116 = arith.addf %108, %115 : vector<1x1x1xf32>
    %c0_27 = arith.constant 0 : index
    %c0_28 = arith.constant 0 : index
    %c0_29 = arith.constant 0 : index
    %117 = vector.load %arg12[%c0_27, %c0_28, %c0_29] : memref<1x1x1xf32, #tpu.memory_space<vmem>>, vector<1x1x1xf32>
    tpu.vector_store %arg12[%c0_27, %c0_28, %c0_29], %116 {strides = array<i32>} : memref<1x1x1xf32, #tpu.memory_space<vmem>>, vector<1x1x1xf32>,
    return
  }
  func.func @transform_0(%arg0: i32, %arg1: i32, %arg2: memref<2xi32, #tpu.memory_space<smem>>, %arg3: memref<2xi32, #tpu.memory_space<smem>>) -> (i32, i32, i32) {
    %c0_i32 = arith.constant 0 : i32
    %c0_i32_0 = arith.constant 0 : i32
    %c0_i32_1 = arith.constant 0 : i32
    return %arg0, %c0_i32, %c0_i32_0 : i32, i32, i32
  }
  func.func @transform_1(%arg0: i32, %arg1: i32, %arg2: memref<2xi32, #tpu.memory_space<smem>>, %arg3: memref<2xi32, #tpu.memory_space<smem>>) -> (i32, i32, i32) {
    %c0_i32 = arith.constant 0 : i32
    %c0_i32_0 = arith.constant 0 : i32
    %c0_i32_1 = arith.constant 0 : i32
    return %arg0, %c0_i32, %c0_i32_0 : i32, i32, i32
  }
  func.func @transform_2(%arg0: i32, %arg1: i32, %arg2: memref<2xi32, #tpu.memory_space<smem>>, %arg3: memref<2xi32, #tpu.memory_space<smem>>) -> (i32, i32) {
    %c0_i32 = arith.constant 0 : i32
    %c0_i32_0 = arith.constant 0 : i32
    %c0_i32_1 = arith.constant 0 : i32
    return %c0_i32, %c0_i32_0 : i32, i32
  }
  func.func @transform_3(%arg0: i32, %arg1: i32, %arg2: memref<2xi32, #tpu.memory_space<smem>>, %arg3: memref<2xi32, #tpu.memory_space<smem>>) -> (i32, i32) {
    %c0_i32 = arith.constant 0 : i32
    %c0_i32_0 = arith.constant 0 : i32
    %c0_i32_1 = arith.constant 0 : i32
    return %c0_i32, %c0_i32_0 : i32, i32
  }
  func.func @transform_4(%arg0: i32, %arg1: i32, %arg2: memref<2xi32, #tpu.memory_space<smem>>, %arg3: memref<2xi32, #tpu.memory_space<smem>>) -> (i32, i32) {
    %c0_i32 = arith.constant 0 : i32
    %c0_i32_0 = arith.constant 0 : i32
    %c0_i32_1 = arith.constant 0 : i32
    return %c0_i32, %c0_i32_0 : i32, i32
  }
  func.func @transform_5(%arg0: i32, %arg1: i32, %arg2: memref<2xi32, #tpu.memory_space<smem>>, %arg3: memref<2xi32, #tpu.memory_space<smem>>) -> (i32, i32) {
    %c0_i32 = arith.constant 0 : i32
    %c0_i32_0 = arith.constant 0 : i32
    %c0_i32_1 = arith.constant 0 : i32
    return %c0_i32, %c0_i32_0 : i32, i32
  }
  func.func @transform_6(%arg0: i32, %arg1: i32, %arg2: memref<2xi32, #tpu.memory_space<smem>>, %arg3: memref<2xi32, #tpu.memory_space<smem>>) -> (i32, i32, i32, i32) {
    %c0_i32 = arith.constant 0 : i32
    %c0_i32_0 = arith.constant 0 : i32
    %c0_i32_1 = arith.constant 0 : i32
    return %arg0, %arg1, %c0_i32, %c0_i32_0 : i32, i32, i32, i32
  }
  func.func @transform_7(%arg0: i32, %arg1: i32, %arg2: memref<2xi32, #tpu.memory_space<smem>>, %arg3: memref<2xi32, #tpu.memory_space<smem>>) -> (i32, i32, i32) {
    %c0_i32 = arith.constant 0 : i32
    %c0_i32_0 = arith.constant 0 : i32
    return %arg0, %c0_i32, %arg1 : i32, i32, i32
  }
  func.func @transform_8(%arg0: i32, %arg1: i32, %arg2: memref<2xi32, #tpu.memory_space<smem>>, %arg3: memref<2xi32, #tpu.memory_space<smem>>) -> (i32, i32, i32) {
    %c0_i32 = arith.constant 0 : i32
    %c0_i32_0 = arith.constant 0 : i32
    %c0_i32_1 = arith.constant 0 : i32
    return %arg0, %c0_i32, %c0_i32_0 : i32, i32, i32
  }
}

</mosaic_0001>

<bundles_post_ra>
// kernel: tpu_custom_call.1
= control target key start
LH: loop header
LB: loop body
LE: loop exit
PB: predicated region body
PF: predicated region fallthrough
CT: control target
= control target key end

     0   :  { %s9903_s0 = inlined_call_operand.vmem [shape: s32[2], index: 0, kind: input, shape index: {}]   ;;  %s9904_s2 = inlined_call_operand.vmem [shape: s32[2,1,20], index: 2, kind: input, shape index: {}]   ;;  %s9905_s3 = inlined_call_operand.vmem [shape: f32[2,20,32], index: 3, kind: input, shape index: {}]   ;;  %s9906_s4 = inlined_call_operand.vmem [shape: f32[32,32], index: 4, kind: input, shape index: {}]   ;;  %s9907_s5 = inlined_call_operand.vmem [shape: f32[1,32], index: 5, kind: input, shape index: {}]   ;;  %s9908_s6 = inlined_call_operand.vmem [shape: f32[32,48], index: 6, kind: input, shape index: {}]   ;;  %s9909_s7 = inlined_call_operand.vmem [shape: f32[1,16], index: 7, kind: input, shape index: {}]   ;;  %s9910_s8 = inlined_call_operand.vmem [shape: s32[2,1,16,16], index: 8, kind: input, shape index: {}]   ;;  %s9911_s9 = inlined_call_operand.hbm [shape: f32[2,16,256], index: 9, kind: output, shape index: {0}]   ;;  %s9912_s10 = inlined_call_operand.vmem [shape: f32[2,1,1], index: 10, kind: output, shape index: {1}]   ;;  %s9913_s1 = inlined_call_operand.hbm [shape: s32[2], index: 1, kind: input, shape index: {}]  }
   0x1   :  { %s16_s15 = sshll.u32 %s9903_s0, 4  ;;  %s17_s15 = int_to_ptr.vmem [resolvable:$true] %s16_s15 }
   0x2   :  { %s7700_s16 = scalar_lea.vmem %s17_s15, 16  ;;  %p7705_p1 = scmp.lt.s32.totalorder %s17_s15, %s17_s15 }
   0x3   :  { %p7701_p0 = scmp.ne.s32.totalorder %s17_s15, %s7700_s16  ;;  %p7706_p2 = scmp.lt.s32.totalorder %s7700_s16, %s7700_s16 }
   0x5   :  { %p7707_p3 = por %p7706_p2, %p7705_p1 }
   0x7   :  { %p7708_p4 = pnand %p7707_p3, %p7701_p0 }
   0x9   :  { %7711 = shalt.err (!%p7708_p4)  }
   0xa   :  { %s7804_s17 = smov [#allocation4]   ;;  %s7712_s20 = scalar_lea.hbm %s9913_s1, 16 }
   0xb   :  { %19 = dma.vmem_to_smem %s17_s15, 16, %s7804_s17, [#allocation3] }
   0xc   :  { %p7713_p5 = scmp.ne.s32.totalorder %s9913_s1, %s7712_s20  ;;  %p7716_p6 = scmp.lt.u32.totalorder %s7712_s20, %s9913_s1 }
   0xe   :  { %p7718_p7 = pnand %p7716_p6, %p7713_p5 }
  0x10   :  { %7721 = shalt.err (!%p7718_p7)  }
  0x11   :  { %s7805_s24 = smov [#allocation5]  }
  0x12   :  { %21 = dma.hbm_to_smem %s9913_s1, 16, %s7805_s24, [#allocation3] }
  0x13   :  { %7774 = dma.done.wait [#allocation3], 32 }
  0x14   :  { %7775 = vsyncadd [#allocation3], 4294967264 }
  0x15   :  { %23 = sfence }
  0x16   :  { %24 = vsyncpa [#allocation7], 0 }
  0x17   :  { %26 = vsyncpa [#allocation7 + $0x1], 0  ;;  %s7892_s27 = smov 0   ;;  %s7894_s28 = smov 0  }
  0x18   :  { %s7896_s29 = smov 0   ;;  %s7898_s30 = smov 0  }
  0x19   :  { %s7900_s11 = smov 0   ;;  %s7902_s12 = smov 0  }
  0x1a LB: > { %s6734_s1 = sadd.s32 4294967295, %s7802_s12   ;;  %s6735_s13 = sadd.s32 4294967294, %s7802_s12   ;;  %s7802_s12 = sphi %s7902_s12, %s32_s12   ;;  %s7798_s11 = sphi %s7900_s11, %s10067_s11   ;;  %s7794_s30 = sphi %s7898_s30, %s10066_s30   ;;  %s7790_s29 = sphi %s7896_s29, %s10065_s29   ;;  %s7786_s28 = sphi %s7894_s28, %s10064_s28   ;;  %s7782_s27 = sphi %s7892_s27, %s10063_s27  }
  0x1b   : > { %s44_s14 = sadd.s32 1, %s7798_s11  ;;  %s217_s15 = sadd.s32 1, %s7790_s29 }
  0x1c   : > { %p46_p8 = scmp.ge.s32.totalorder %s44_s14, 2  ;;  %p227_p9 = scmp.ne.s32.totalorder %s7790_s29, %s7786_s28 }
  0x1d   : > { %p228_p10 = scmp.eq.s32.totalorder %s6734_s1, 1  ;;  %p233_p11 = scmp.ne.s32.totalorder %s7786_s28, %s7782_s27 }
  0x1e   : > { %s10069_s14 = smov (%p46_p8, %s44_s14), 0  ;;  %p234_p13 = scmp.eq.s32.totalorder %s6735_s13, 1 }
  0x1f   : > { %p7932_p12 = por %p228_p10, %p227_p9  ;;  %s212_s17 = ssub.s32 %s7798_s11, %s10069_s14 }
  0x20   : > { %p6738_p0 = scmp.ge.s32.totalorder %s7802_s12, 1  ;;  %p215_p1 = scmp.eq.s32.totalorder %s212_s17, 0 }
  0x21   : > { %p7939_p2 = por %p234_p13, %p233_p11  ;;  %p316_p3 = scmp.lt.s32.totalorder %s7802_s12, 3 }
  0x22   : > { %s7945_s19 = scalar_select %p215_p1, %s7790_s29, %s217_s15  }
  0x23   : > { %p317_p4 = pnand %p6738_p0, %p316_p3 }
  0x25   : > { %320 = sbr.rel (%p317_p4) target bundleno = 2476 (0x9ac), region = 48 }
  0x2c   : > { %v395_v0 = vld [vmem:[%s9906_s4] sm:$0xff]  ;;  %v396_v1 = vld [vmem:[%s9906_s4 + $0x8] sm:$0xff]  ;;  %v397_v2 = vld [vmem:[%s9906_s4 + $0x10] sm:$0xff]  ;;  %v7806_v3 = vmov 0.0|0.0   ;;  %p365_p5 = scmp.lt.s32.totalorder %s7794_s30, 1  ;;  %vm7807_vm0 = vmmov 0   ;;  %v988_v55 = vlaneseq }
  0x2d   : > { %7165 = vmatprep.subr.bf16.mxu0 %v7806_v3  ;;  %v417_v4 = vand.u32 4294901760, %v395_v0  ;;  %v420_v5 = vand.u32 4294901760, %v396_v1  ;;  %7147 = vmatprep.subr.bf16.mxu1 %v7806_v3  ;;  %v398_v6 = vld [vmem:[%s9906_s4 + $0x18] sm:$0xff]  ;;  %v423_v7 = vand.u32 4294901760, %v397_v2  ;;  %v9916_v9 = vmov 0.0   ;;  %s391_s21 = sld [smem:[#allocation4 + %s7794_s30]] }
  0x2e   : > { %v426_v8 = vand.u32 4294901760, %v398_v6  ;;  %6984 = vmatprep.mubr.msk.f32.mxu0 %vm7807_vm0, %v9916_v9  ;;  %6933 = vmatprep.mubr.msk.f32.mxu1 %vm7807_vm0, %v9916_v9  ;;  %s7973_s1 = scalar_select %p365_p5, %s7794_s30, 1  ;;  %vm406_vm1 = vcmask 261120   ;;  %v8087_v56 = vshrl.u32 %v988_v55, 7  ;;  %v8093_v57 = vand.u32 127, %v988_v55 }
  0x2f   : > { %v7966_v10 = vpack.c.bf16 %v420_v5, %v417_v4  ;;  %v7968_v11 = vsub.f32 %v395_v0, %v417_v4  ;;  %v7970_v12 = vsub.f32 %v396_v1, %v420_v5  ;;  %v7975_v13 = vsub.f32 %v397_v2, %v423_v7  ;;  %s7813_s24 = smov 48   ;;  %s7815_s15 = smov 64  }
  0x30   : > { %v7977_v14 = vsub.f32 %v398_v6, %v426_v8  ;;  %v7981_v15 = vpack.c.bf16 %v426_v8, %v423_v7  ;;  %s7491_s13 = smul.u32 24, %s7973_s1  ;;  %9931 = vst [vmem:[#allocation10_spill] sm:$0xff] %v8087_v56  ;;  %s367_s0 = scalar_lea.vmem %s9904_s2, %s7973_s1  ;;  %9932 = vst [vmem:[#allocation11_spill] sm:$0xff] %v8093_v57  ;;  %vm1007_vm5 = vcmask 162816   ;;  %v8109_v2 = vadd.s32 8, %v8087_v56 }
  0x31   : > { %7167 = vmatpush3.bf16.msra.mxu0 %v7966_v10  ;;  %7149 = vmatpush3.bf16.msra.mxu1 %v7966_v10  ;;  %v518_v16 = vand.u32 4294901760, %v7968_v11  ;;  %v525_v17 = vand.u32 4294901760, %v7970_v12  ;;  %v532_v21 = vand.u32 4294901760, %v7975_v13  ;;  %v7160_v53 = vpack.c.bf16 %v7970_v12, %v7968_v11  ;;  %v6744_v58 = vld [vmem:[%s367_s0] ss:$0 sm:$0xff]  ;;  %s9914_s0 = smov 16  }
  0x32   : > { %7168 = vmatprep.subr.bf16.mxu0 %v7806_v3  ;;  %7150 = vmatprep.subr.bf16.mxu1 %v7806_v3  ;;  %s372_s20 = scalar_lea.vmem %s9905_s3, %s7491_s13  ;;  %v539_v22 = vand.u32 4294901760, %v7977_v14  ;;  %v7163_v54 = vpack.c.bf16 %v7977_v14, %v7975_v13  ;;  %vm997_vm2 = vcmp.eq.s32.totalorder %v8087_v56, %v6744_v58  ;;  %vm998_vm6 = vcmp.eq.s32.totalorder %v8109_v2, %v6744_v58  ;;  %s7814_s13 = smov 32  }
  0x33   : > { %v392_v18 = vld [vmem:[%s372_s20] sm:$0xff]  ;;  %v393_v19 = vld [vmem:[%s372_s20 + $0x8] sm:$0xff]  ;;  %v394_v20 = vld [vmem:[%s372_s20 + $0x10] sm:$0xf]  ;;  %v519_v26 = vsub.f32 %v7968_v11, %v518_v16  ;;  %v526_v30 = vsub.f32 %v7970_v12, %v525_v17  ;;  %v7172_v34 = vpack.c.bf16 %v525_v17, %v518_v16  ;;  %v533_v35 = vsub.f32 %v7975_v13, %v532_v21  ;;  %s7816_s17 = smov 80   ;;  %s7817_s20 = smov 96  }
  0x34   : > { %v408_v23 = vsel %vm406_vm1, %v392_v18, 0  ;;  %v411_v24 = vsel %vm406_vm1, %v393_v19, 0  ;;  %v414_v25 = vsel %vm406_vm1, %v394_v20, 0  ;;  %v540_v36 = vsub.f32 %v7977_v14, %v539_v22  ;;  %v6743_v13 = vld [vmem:[%s9907_s5] ss:$0 sm:$0xff]  ;;  %s386_s22 = sld [smem:[#allocation5 + %s7794_s30]] }
  0x35   : > { %7170 = vmatpush3.bf16.msra.mxu0 %v7981_v15  ;;  %7152 = vmatpush3.bf16.msra.mxu1 %v7981_v15  ;;  %v7999_v27 = vand.u32 4294901760, %v408_v23  ;;  %v8001_v28 = vand.u32 4294901760, %v411_v24  ;;  %v8005_v29 = vand.u32 4294901760, %v414_v25  ;;  %v520_v39 = vand.u32 4294901760, %v519_v26  ;;  %s6815_s23 = sshll.u32 %s7973_s1, 4  ;;  %s9959_s25 = smov 16  }
  0x36   : > { %7171 = vmatprep.subr.bf16.mxu0 %v7806_v3  ;;  %7153 = vmatprep.subr.bf16.mxu1 %v7806_v3  ;;  %v527_v40 = vand.u32 4294901760, %v526_v30  ;;  %v7175_v44 = vpack.c.bf16 %v539_v22, %v532_v21  ;;  %v534_v47 = vand.u32 4294901760, %v533_v35  ;;  %v541_v48 = vand.u32 4294901760, %v540_v36 }
  0x37   : > { %v8009_v31 = vsub.f32 %v408_v23, %v7999_v27  ;;  %v8012_v32 = vsub.f32 %v411_v24, %v8001_v28  ;;  %v8015_v33 = vsub.f32 %v414_v25, %v8005_v29  ;;  %v999_v59 = vstv %s391_s21  ;;  %s7818_s21 = smov 112  }
  0x38   : > { %v7154_v46 = vpack.c.bf16 %v527_v40, %v520_v39  ;;  %v7157_v51 = vpack.c.bf16 %v541_v48, %v534_v47  ;;  %vm1000_vm3 = vcmp.lt.s32.totalorder %v8093_v57, %v999_v59  ;;  %vm1026_vm8 = vcmask 1043456   ;;  %v1553_v59 = vld [vmem:[%s9908_s6] sm:$0xff] }
  0x39   : > { %v487_v37 = vand.u32 4294901760, %v8009_v31  ;;  %v497_v38 = vand.u32 4294901760, %v8012_v32  ;;  %v507_v43 = vand.u32 4294901760, %v8015_v33  ;;  %vm1001_vm4 = vmand %vm997_vm2, %vm1000_vm3  ;;  %vm2232_vm11 = vcmask 130048  }
  0x3a   : > { %v8098_v60 = vsel %vm1001_vm4, 1.0, %v9916_v9  ;;  %vm1002_vm7 = vmand %vm998_vm6, %vm1000_vm3  ;;  %vm2235_vm12 = vcmask 392192   ;;  %vm2237_vm13 = vcmask 523264   ;;  %vm2239_vm14 = vcmask 654336  }
  0x3b   : > { %6985 = vmatmul.mubr.f32.vlgmr.msra.gmra.mrb[0].mxu0 %v487_v37  ;;  %v488_v41 = vsub.f32 %v8009_v31, %v487_v37  ;;  %v498_v42 = vsub.f32 %v8012_v32, %v497_v38  ;;  %v508_v50 = vsub.f32 %v8015_v33, %v507_v43  ;;  %v1021_v61 = vsel %vm1007_vm5, %v8098_v60, 0 }
  0x3c   : > { %6987 = vmatprep.mubr.msk.f32.mxu0 %vm7807_vm0, %v9916_v9  ;;  %7173 = vmatpush3.bf16.msra.mxu0 %v7172_v34  ;;  %v8102_v62 = vsub.f32 %v1021_v61, %v1021_v61  ;;  %v8115_v4 = vsel %vm1002_vm7, 1.0, %v9916_v9  ;;  %v1554_v61 = vld [vmem:[%s9908_s6 + $0x8] sm:$0xff]  ;;  %vm2241_vm15 = vcmask 785408   ;;  %vm2389_vm6 = vcmp.le.s32.totalorder %v8087_v56, %v8093_v57 }
  0x3d   : > { %v489_v45 = vand.u32 4294901760, %v488_v41  ;;  %7174 = vmatprep.subr.bf16.mxu0 %v7806_v3  ;;  %v499_v49 = vand.u32 4294901760, %v498_v42  ;;  %v509_v52 = vand.u32 4294901760, %v508_v50  ;;  %v1011_v5 = vsel %vm1007_vm5, %v8115_v4, 0.0 }
  0x3e   : > { %v1100_v63 = vand.u32 4294901760, %v8102_v62  ;;  %v1024_v21 = vsel %vm1007_vm5, %v8115_v4, 0 }
  0x3f   : > { %6934 = vmatmul.mubr.f32.vlgmr.msra.gmra.mrb[0].mxu1 %v489_v45  ;;  %6988 = vmatmul.mubr.f32.gmra.mrb[2].mxu0 %v497_v38 }
  0x40   : > { %6936 = vmatprep.mubr.msk.f32.mxu1 %vm7807_vm0, %v9916_v9  ;;  %6990 = vmatprep.mubr.msk.f32.mxu0 %vm7807_vm0, %v9916_v9  ;;  %v1101_v0 = vsub.f32 %v8102_v62, %v1100_v63 }
  0x41   : > { %7155 = vmatpush3.bf16.msra.mxu1 %v7154_v46  ;;  %7176 = vmatpush3.bf16.msra.mxu0 %v7175_v44 }
  0x42   : > { %7156 = vmatprep.subr.bf16.mxu1 %v7806_v3  ;;  %7177 = vmatprep.subr.bf16.mxu0 %v7806_v3  ;;  %v1102_v1 = vand.u32 4294901760, %v1101_v0  ;;  %v1568_v0 = vand.u32 4294901760, %v1554_v61 }
  0x43   : > { %6937 = vmatmul.mubr.f32.gmra.mrb[2].mxu1 %v499_v49  ;;  %6991 = vmatmul.mubr.f32.gmra.mrb[4].mxu0 %v507_v43 }
  0x44   : > { %6939 = vmatprep.mubr.msk.f32.mxu1 %vm7807_vm0, %v9916_v9  ;;  %7001 = vmatprep.mubr.msk.f32.mxu0 %vm7807_vm0, %v9916_v9 }
  0x45   : > { %7158 = vmatpush3.bf16.msra.mxu1 %v7157_v51 }
  0x46   : > { %7159 = vmatprep.subr.bf16.mxu1 %v7806_v3 }
  0x47   : > { %6940 = vmatmul.mubr.f32.gmra.mrb[4].mxu1 %v509_v52  ;;  %7002 = vmatmul.mubr.f32.vlgmr.msra.gmra.mrb[0].mxu0 %v7999_v27 }
  0x48   : > { %6950 = vmatprep.mubr.msk.f32.mxu1 %vm7807_vm0, %v9916_v9  ;;  %7004 = vmatprep.mubr.msk.f32.mxu0 %vm7807_vm0, %v9916_v9 }
  0x49   : > { %7179 = vmatpush3.bf16.msra.mxu0 %v7966_v10 }
  0x4a   : > { %7180 = vmatprep.subr.bf16.mxu0 %v7806_v3 }
  0x4b   : > { %6951 = vmatmul.mubr.f32.vlgmr.msra.gmra.mrb[0].mxu1 %v7999_v27  ;;  %7005 = vmatmul.mubr.f32.gmra.mrb[2].mxu0 %v8001_v28 }
  0x4c   : > { %6953 = vmatprep.mubr.msk.f32.mxu1 %vm7807_vm0, %v9916_v9  ;;  %7007 = vmatprep.mubr.msk.f32.mxu0 %vm7807_vm0, %v9916_v9 }
  0x4d   : > { %7161 = vmatpush3.bf16.msra.mxu1 %v7160_v53  ;;  %7182 = vmatpush3.bf16.msra.mxu0 %v7981_v15 }
  0x4e   : > { %7162 = vmatprep.subr.bf16.mxu1 %v7806_v3 }
  0x4f   : > { %6954 = vmatmul.mubr.f32.gmra.mrb[2].mxu1 %v8001_v28  ;;  %7008 = vmatmul.mubr.f32.gmra.mrb[4].mxu0 %v8005_v29 }
  0x50   : > { %6956 = vmatprep.mubr.msk.f32.mxu1 %vm7807_vm0, %v9916_v9  ;;  %7018 = vmatprep.mubr.msk.f32.mxu0 %vm7807_vm0, %v9916_v9 }
  0x51   : > { %7164 = vmatpush3.bf16.msra.mxu1 %v7163_v54 }
  0x52   : > { %7351 = vmatprep.subr.bf16.mxu1 %v7806_v3 }
  0x53   : > { %6957 = vmatmul.mubr.f32.gmra.mrb[4].mxu1 %v8005_v29  ;;  %7019 = vmatmul.mubr.f32.vlgmr.msra.gmra.mrb[0].mxu0 %v7999_v27  ;;  %v1109_v27 = vsub.f32 %v1024_v21, %v1024_v21 }
  0x54   : > { %6967 = vmatprep.mubr.msk.f32.mxu1 %vm7807_vm0, %v9916_v9  ;;  %2488 = vmatprep.mubr.f32.mxu0 %v9916_v9 }
  0x57   : > { %6968 = vmatmul.mubr.f32.vlgmr.msra.gmra.mrb[0].mxu1 %v8009_v31 }
  0x58   : > { %6970 = vmatprep.mubr.msk.f32.mxu1 %vm7807_vm0, %v9916_v9  ;;  %7353 = vmatpush3.bf16.msra.mxu1 %v7966_v10 }
  0x59   : > { %7352 = vmatprep.subr.bf16.mxu1 %v7806_v3  ;;  %v1008_v3 = vsel %vm1007_vm5, %v8098_v60, 0.0 }
  0x5a   : > { %1009 = vadd.xlane.f32.xlu0 %v1008_v3 }
  0x5b   : > { %6971 = vmatmul.mubr.f32.gmra.mrb[2].mxu1 %v8012_v32 }
  0x5c   : > { %6973 = vmatprep.mubr.msk.f32.mxu1 %vm7807_vm0, %v9916_v9  ;;  %7354 = vmatpush3.bf16.msra.mxu1 %v7981_v15 }
  0x5e   : > { %1012 = vadd.xlane.f32.xlu0 %v1011_v5 }
  0x5f   : > { %6974 = vmatmul.mubr.f32.gmra.mrb[4].mxu1 %v8015_v33  ;;  %v1110_v33 = vand.u32 4294901760, %v1109_v27 }
  0x60   : > { %7021 = vmatprep.mubr.msk.f32.mxu1 %vm7807_vm0, %v9916_v9 }
  0x61   : > { %v1111_v41 = vsub.f32 %v1109_v27, %v1110_v33 }
  0x63   : > { %7022 = vmatmul.mubr.f32.vlgmr.msra.gmra.mrb[6].mxu1 %v8001_v28  ;;  %v1112_v47 = vand.u32 4294901760, %v1111_v41 }
  0x64   : > { %7024 = vmatprep.mubr.msk.f32.mxu1 %vm7807_vm0, %v9916_v9  ;;  %vm2243_vm0 = vcmask 916480  }
  0x67   : > { %7025 = vmatmul.mubr.f32.gmra.mrb[8].mxu1 %v8005_v29 }
  0x68   : > { %7033 = vmatprep.mubr.f32.mxu1 %v1102_v1 }
 0x11e   : > { %v890_v6 = vpop.f32.mrb[2].mxu0 }
 0x11f   : > { %v7006_v7 = vpop.f32.mrb[3].mxu0 }
 0x120   : > { %v1662_v7 = vsub.f32 %v1554_v61, %v1568_v0 }
 0x122   : > { %v896_v8 = vpop.f32.mrb[4].mxu0 }
 0x123   : > { %v7009_v10 = vpop.f32.mrb[5].mxu0 }
 0x124   : > { %v1663_v10 = vand.u32 4294901760, %v1662_v7 }
 0x126   : > { %v971_v11 = vpop.f32.mrb[0].mxu0 }
 0x127   : > { %v7020_v12 = vpop.f32.mrb[1].mxu0 }
 0x128   : > { %v1664_v12 = vsub.f32 %v1662_v7, %v1663_v10 }
 0x12a   : > { %v694_v14 = vpop.f32.mrb[0].mxu1 }
 0x12b   : > { %v7355_v15 = vadd.f32 %v6743_v13, %v694_v14  ;;  %v6969_v16 = vpop.f32.mrb[1].mxu1 }
 0x12c   : > { %v1665_v16 = vand.u32 4294901760, %v1664_v12 }
 0x12d   : > { %v7356_v17 = vadd.f32 %v7355_v15, %v971_v11 }
 0x12e   : > { %v701_v18 = vpop.f32.mrb[2].mxu1 }
 0x12f   : > { %v7357_v19 = vadd.f32 %v6743_v13, %v701_v18  ;;  %v6972_v20 = vpop.f32.mrb[3].mxu1  ;;  %v1031_v22 = vand.u32 4294901760, %v7356_v17 }
 0x131   : > { %v7358_v23 = vadd.f32 %v7357_v19, %v890_v6  ;;  %v1120_v28 = vsub.f32 %v7356_v17, %v1031_v22 }
 0x132   : > { %v708_v24 = vpop.f32.mrb[4].mxu1 }
 0x133   : > { %v7360_v25 = vadd.f32 %v6743_v13, %v708_v24  ;;  %v6975_v26 = vpop.f32.mrb[5].mxu1  ;;  %v1121_v35 = vand.u32 4294901760, %v1120_v28 }
 0x135   : > { %v7361_v29 = vadd.f32 %v7360_v25, %v896_v8  ;;  %v1122_v44 = vsub.f32 %v1120_v28, %v1121_v35 }
 0x136   : > { %v977_v30 = vpop.f32.mrb[6].mxu1 }
 0x137   : > { %v7359_v31 = vadd.f32 %v7358_v23, %v977_v30  ;;  %v7023_v32 = vpop.f32.mrb[7].mxu1  ;;  %v1123_v51 = vand.u32 4294901760, %v1122_v44 }
 0x139   : > { %v1034_v34 = vand.u32 4294901760, %v7359_v31 }
 0x13a   : > { %v983_v36 = vpop.f32.mrb[8].mxu1 }
 0x13b   : > { %v7183_v37 = vpack.c.bf16 %v1034_v34, %v1031_v22  ;;  %v1127_v38 = vsub.f32 %v7359_v31, %v1034_v34  ;;  %v7362_v39 = vadd.f32 %v7361_v29, %v983_v36  ;;  %v7026_v40 = vpop.f32.mrb[9].mxu1  ;;  %v7809_v29 = vmov 1983009808  }
 0x13c   : > { %v2108_v30 = vunpack.c.l.s4 %v7809_v29  ;;  %v7810_v31 = vmov 1934713408  }
 0x13d   : > { %v1128_v42 = vand.u32 4294901760, %v1127_v38  ;;  %v1028_v43 = vsel %vm1026_vm8, %v7362_v39, 0  ;;  %7184 = vmatprep.subr.bf16.mxu1 %v7183_v37  ;;  %v7191_v45 = vpack.c.bf16 %v1127_v38, %v1120_v28  ;;  %v2123_v32 = vunpack.c.l.s4 %v7810_v31 }
 0x13e   : > { %v1037_v46 = vand.u32 4294901760, %v1028_v43  ;;  %7186 = vmatpush3.bf16.msra.mxu1 %v7183_v37  ;;  %v2109_v34 = vunpack.c.0.s8 %v2108_v30 }
 0x13f   : > { %v1129_v48 = vsub.f32 %v1127_v38, %v1128_v42  ;;  %v7199_v49 = vpack.c.bf16 %v1128_v42, %v1121_v35  ;;  %v2124_v35 = vunpack.c.0.s8 %v2123_v32 }
 0x140   : > { %v1134_v50 = vsub.f32 %v1028_v43, %v1037_v46  ;;  %7031 = vmatprep.subr.mxu1 %v1037_v46  ;;  %v8175_v36 = vsub.s32 %v2109_v34, %v8087_v56 }
 0x141   : > { %v1130_v52 = vand.u32 4294901760, %v1129_v48  ;;  %v6753_v48 = vld [vmem:[%s9909_s7] ss:$0 sm:$0xff] }
 0x142   : > { %7032 = vmatpush3.msra.mxu1 %v1037_v46  ;;  %v1135_v53 = vand.u32 4294901760, %v1134_v50  ;;  %v2265_v38 = vrot.slane %v8093_v57, %v8175_v36  ;;  %v2113_v44 = vrot.slane %v8087_v56, %v8175_v36 }
 0x143   : > { %7034 = vmatmul.mubr.f32.vlgmr.msra.gmra.mrb[10].mxu1 %v1112_v47  ;;  %v7187_v54 = vpack.c.bf16 %v1130_v52, %v1123_v51 }
 0x144   : > { %v1136_v55 = vsub.f32 %v1134_v50, %v1135_v53  ;;  %7042 = vmatprep.mubr.msk.f32.mxu1 %vm1007_vm5, %v8098_v60 }
 0x145   : > { %7188 = vmatprep.subr.bf16.mxu1 %v7187_v54 }
 0x146   : > { %7190 = vmatpush3.bf16.msra.mxu1 %v7187_v54  ;;  %v1137_v58 = vand.u32 4294901760, %v1136_v55 }
 0x148   : > { %7040 = vmatprep.subr.mxu1 %v1137_v58 }
 0x14a   : > { %7041 = vmatpush3.msra.mxu1 %v1137_v58 }
 0x14b   : > { %7043 = vmatmul.mubr.msk.f32.vlgmr.msra.gmra.mrb[10].mxu1 %vm1007_vm5, %v8115_v4  ;;  %7192 = vmatprep.subr.bf16.mxu1 %v7191_v45 }
 0x14c   : > { %7194 = vmatpush3.bf16.msra.mxu1 %v7191_v45  ;;  %7051 = vmatprep.mubr.f32.mxu1 %v8102_v62  ;;  %v1555_v62 = vld [vmem:[%s9908_s6 + $0x10] sm:$0xff] }
 0x14d   : > { %7049 = vmatprep.subr.mxu1 %v1134_v50  ;;  %v1571_v1 = vand.u32 4294901760, %v1555_v62 }
 0x14f   : > { %v1669_v13 = vsub.f32 %v1555_v62, %v1571_v1 }
 0x150   : > { %7050 = vmatpush3.msra.mxu1 %v1134_v50 }
 0x151   : > { %7196 = vmatprep.subr.bf16.mxu1 %v7183_v37  ;;  %v1670_v17 = vand.u32 4294901760, %v1669_v13 }
 0x153   : > { %7052 = vmatmul.mubr.f32.vlgmr.msra.gmra.mrb[10].mxu1 %v1109_v27  ;;  %v1671_v20 = vsub.f32 %v1669_v13, %v1670_v17 }
 0x154   : > { %7198 = vmatpush3.bf16.msra.mxu1 %v7183_v37  ;;  %7060 = vmatprep.mubr.f32.mxu1 %v1100_v63  ;;  %v1565_v63 = vand.u32 4294901760, %v1553_v59 }
 0x155   : > { %7058 = vmatprep.subr.mxu1 %v1037_v46  ;;  %v1672_v22 = vand.u32 4294901760, %v1671_v20 }
 0x156   : > { %v1655_v6 = vsub.f32 %v1553_v59, %v1565_v63 }
 0x158   : > { %7059 = vmatpush3.msra.mxu1 %v1037_v46  ;;  %v1656_v8 = vand.u32 4294901760, %v1655_v6  ;;  %v8164_v25 = vpack.c.bf16 %v1662_v7, %v1655_v6 }
 0x159   : > { %7200 = vmatprep.subr.bf16.mxu1 %v7199_v49 }
 0x15a   : > { %v1657_v11 = vsub.f32 %v1655_v6, %v1656_v8  ;;  %v8168_v27 = vpack.c.bf16 %v1663_v10, %v1656_v8 }
 0x15b   : > { %7061 = vmatmul.mubr.f32.vlgmr.msra.gmra.mrb[10].mxu1 %v1110_v33  ;;  %v7811_v33 = vmov 0  }
 0x15c   : > { %7202 = vmatpush3.bf16.msra.mxu1 %v7199_v49  ;;  %7069 = vmatprep.mubr.msk.f32.mxu1 %vm1007_vm5, %v8098_v60  ;;  %v1658_v15 = vand.u32 4294901760, %v1657_v11  ;;  %v2273_v39 = vcombine.high %v2265_v38, %v7811_v33  ;;  %v2258_v41 = vcombine.high %v8093_v57, %v7811_v33  ;;  %v2121_v51 = vcombine.high %v2113_v44, %v7811_v33 }
 0x15d   : > { %7067 = vmatprep.subr.mxu1 %v1135_v53  ;;  %7566 = vset.pattern.permute.xlu1 %v7811_v33  ;;  %v2106_v55 = vcombine.high %v8087_v56, %v7811_v33 }
 0x15e   : > { %v8159_v19 = vpack.c.bf16 %v1665_v16, %v1658_v15  ;;  %7567 = vset.pattern.permute.xlu0 %v7811_v33 }
 0x15f   : > { %v2120_v61 = vrot.slane %v2106_v55, %v8175_v36 }
 0x160   : > { %7068 = vmatpush3.msra.mxu1 %v1135_v53 }
 0x161   : > { %7204 = vmatprep.subr.bf16.mxu1 %v7183_v37 }
 0x163   : > { %7070 = vmatmul.mubr.msk.f32.vlgmr.msra.gmra.mrb[10].mxu1 %vm1007_vm5, %v8115_v4 }
 0x164   : > { %7206 = vmatpush3.bf16.msra.mxu1 %v7183_v37  ;;  %7078 = vmatprep.mubr.msk.f32.mxu1 %vm1007_vm5, %v8098_v60  ;;  %v1556_v60 = vld [vmem:[%s9908_s6 + $0x18] sm:$0xff]  ;;  %v8178_v37 = vsub.s32 %v2124_v35, %v8087_v56 }
 0x165   : > { %7076 = vmatprep.subr.mxu1 %v1037_v46  ;;  %v1574_v3 = vand.u32 4294901760, %v1556_v60 }
 0x166   : > { %v8184_v40 = vrot.slane %v2265_v38, %v8178_v37  ;;  %v2287_v42 = vrot.slane %v2273_v39, %v8178_v37  ;;  %v8198_v47 = vrot.slane %v2113_v44, %v8178_v37  ;;  %v2135_v54 = vrot.slane %v2121_v51, %v8178_v37 }
 0x167   : > { %v8153_v5 = vpack.c.bf16 %v1574_v3, %v1571_v1  ;;  %v1676_v14 = vsub.f32 %v1556_v60, %v1574_v3  ;;  %v2136_v60 = vcombine.high %v2120_v61, %v7811_v33  ;;  %v1010_v1 = vpop.xlane.xlu0 %1009 }
 0x168   : > { %7077 = vmatpush3.msra.mxu1 %v1037_v46  ;;  %v2303_v43 = vcombine.high %v8184_v40, %v7811_v33  ;;  %v2304_v45 = vcombine.high %v2287_v42, %v7811_v33  ;;  %v2272_v46 = vrot.slane %v2258_v41, %v8175_v36  ;;  %v2151_v50 = vcombine.high %v8198_v47, %v7811_v33 }
 0x169   : > { %v1677_v18 = vand.u32 4294901760, %v1676_v14  ;;  %v8166_v26 = vpack.c.bf16 %v1676_v14, %v1669_v13  ;;  %v2152_v59 = vcombine.high %v2135_v54, %v7811_v33  ;;  %v2150_v3 = vrot.slane %v2136_v60, %v8178_v37 }
 0x16a   : > { %2307 = vrot.lane.b32.xlu1 %v2303_v43, %s9914_s0  ;;  %2311 = vrot.lane.b32.xlu0 %v2304_v45, %s7813_s24  ;;  %v2295_v49 = vrot.slane %v2272_v46, %v8178_v37  ;;  %v2288_v53 = vcombine.high %v2272_v46, %v7811_v33  ;;  %vm1014_vm10 = vcmp.eq.f32.partialorder %v1010_v1, 0.0 }
 0x16b   : > { %7079 = vmatmul.mubr.msk.f32.vlgmr.msra.gmra.mrb[10].mxu1 %vm1007_vm5, %v8115_v4  ;;  %v8151_v4 = vpack.c.bf16 %v1568_v0, %v1565_v63  ;;  %v1678_v21 = vsub.f32 %v1676_v14, %v1677_v18  ;;  %v8170_v28 = vpack.c.bf16 %v1677_v18, %v1670_v17  ;;  %v2143_v63 = vrot.slane %v2120_v61, %v8178_v37  ;;  %v1013_v6 = vpop.xlane.xlu0 %1012 }
 0x16c   : > { %v2305_v52 = vcombine.high %v2295_v49, %v7811_v33  ;;  %v2302_v58 = vrot.slane %v2288_v53, %v8178_v37  ;;  %v2154_v7 = vcombine.high %v2150_v3, %v7811_v33  ;;  %vm1015_vm9 = vcmp.eq.f32.partialorder %v1013_v6, 0.0 }
 0x16d   : > { %7208 = vmatprep.subr.bf16.mxu1 %v8151_v4  ;;  %v1679_v23 = vand.u32 4294901760, %v1678_v21  ;;  %v2153_v0 = vcombine.high %v2143_v63, %v7811_v33  ;;  %v1017_v8 = vsel %vm1015_vm9, 1.0, %v1013_v6  ;;  %v1016_v10 = vsel %vm1014_vm10, 1.0, %v1010_v1 }
 0x16e   : > { %7210 = vmatpush3.bf16.msra.mxu1 %v8151_v4  ;;  %2309 = vrot.lane.b32.xlu1 %v2287_v42, %s7814_s13  ;;  %v2306_v62 = vcombine.high %v2302_v58, %v7811_v33  ;;  %7568 = vrcp.f32 %v1017_v8  ;;  %v2162_v6 = vrot.slane %v8109_v2, %v8175_v36  ;;  %vm2390_vm10 = vcmp.le.s32.totalorder %v8109_v2, %v8093_v57 }
 0x16f   : > { %7212 = vmatprep.subr.bf16.mxu1 %v8153_v5  ;;  %v8162_v24 = vpack.c.bf16 %v1679_v23, %v1672_v22  ;;  %2098 = vrot.lane.b32.xlu0 %v6753_v48, %s9914_s0  ;;  %7570 = vrcp.f32 %v1016_v10 }
 0x172   : > { %7214 = vmatpush3.bf16.msra.mxu1 %v8153_v5  ;;  %2313 = vrot.lane.b32.xlu1 %v2295_v49, %s7815_s15 }
 0x173   : > { %7216 = vmatprep.subr.bf16.mxu1 %v8159_v19  ;;  %2204 = vrot.lane.b32.xlu0 %v2151_v50, %s9914_s0 }
 0x176   : > { %2315 = vrot.lane.b32.xlu1 %v2305_v52, %s7816_s17 }
 0x177   : > { %2206 = vrot.lane.b32.xlu0 %v2135_v54, %s7814_s13  ;;  %v7819_v54 = vmov 1.0|1.0  }
 0x178   : > { %v7569_v11 = vpop.eup %7568 }
 0x179   : > { %v7571_v13 = vpop.eup %7570 }
 0x17a   : > { %2317 = vrot.lane.b32.xlu1 %v2302_v58, %s7817_s20 }
 0x17b   : > { %2208 = vrot.lane.b32.xlu0 %v2152_v59, %s7813_s24 }
 0x17e   : > { %2319 = vrot.lane.b32.xlu1 %v2306_v62, %s7818_s21 }
 0x17f   : > { %2210 = vrot.lane.b32.xlu0 %v2143_v63, %s7815_s15 }
 0x183   : > { %2212 = vrot.lane.b32.xlu0 %v2153_v0, %s7816_s17 }
 0x187   : > { %2214 = vrot.lane.b32.xlu0 %v2150_v3, %s7817_s20 }
 0x18b   : > { %2216 = vrot.lane.b32.xlu0 %v2154_v7, %s7818_s21 }
 0x23e   : > { %v7080_v12 = vpop.f32.mrb[10].mxu1 }
 0x23f   : > { %v1546_v14 = vmul.f32 %v7569_v11, %v7080_v12  ;;  %v1535_v15 = vpop.f32.mrb[11].mxu1  ;;  %v8308_v11 = vrot.slane %v2162_v6, %v8178_v37 }
 0x240   : > { %v1545_v16 = vmul.f32 %v7571_v13, %v1535_v15  ;;  %v2170_v13 = vcombine.high %v2162_v6, %v7811_v33  ;;  %v2155_v15 = vcombine.high %v8109_v2, %v7811_v33 }
 0x241   : > { %1548 = vst.msk [vmem:[#allocation2 + $0x8] sm:$0xff] %vm406_vm1, %v1546_v14  ;;  %v2200_v12 = vcombine.high %v8308_v11, %v7811_v33 }
 0x242   : > { %1547 = vst.msk [vmem:[#allocation2] sm:$0xff] %vm406_vm1, %v1545_v16  ;;  %v2184_v14 = vrot.slane %v2170_v13, %v8178_v37 }
 0x244   : > { %v2201_v16 = vcombine.high %v2184_v14, %v7811_v33 }
 0x248   : > { %v1552_v17 = vld [vmem:[#allocation2 + $0x8] sm:$0xff] }
 0x249   : > { %v1551_v18 = vld [vmem:[#allocation2] sm:$0xff]  ;;  %v1562_v20 = vsel %vm406_vm1, %v1552_v17, 0  ;;  %v2169_v17 = vrot.slane %v2155_v15, %v8175_v36 }
 0x24a   : > { %v1559_v21 = vsel %vm406_vm1, %v1551_v18, 0  ;;  %v1643_v22 = vand.u32 4294901760, %v1562_v20 }
 0x24b   : > { %v1633_v23 = vand.u32 4294901760, %v1559_v21  ;;  %v2192_v18 = vrot.slane %v2169_v17, %v8178_v37 }
 0x24c   : > { %v1644_v29 = vsub.f32 %v1562_v20, %v1643_v22 }
 0x24d   : > { %v1634_v30 = vsub.f32 %v1559_v21, %v1633_v23  ;;  %v2202_v20 = vcombine.high %v2192_v18, %v7811_v33  ;;  %v2185_v21 = vcombine.high %v2169_v17, %v7811_v33 }
 0x24e   : > { %v1645_v31 = vand.u32 4294901760, %v1644_v29 }
 0x24f   : > { %v1635_v32 = vand.u32 4294901760, %v1634_v30 }
 0x250   : > { %v1646_v34 = vsub.f32 %v1644_v29, %v1645_v31 }
 0x251   : > { %v1636_v35 = vsub.f32 %v1634_v30, %v1635_v32 }
 0x252   : > { %v1647_v39 = vand.u32 4294901760, %v1646_v34 }
 0x253   : > { %v1637_v38 = vand.u32 4294901760, %v1636_v35 }
 0x255   : > { %7089 = vmatprep.mubr.f32.mxu1 %v1637_v38 }
 0x256   : > { %7090 = vmatmul.mubr.f32.vlgmr.msra.gmra.mrb[12].mxu1 %v1647_v39 }
 0x257   : > { %7218 = vmatpush3.bf16.msra.mxu1 %v8159_v19  ;;  %7100 = vmatprep.mubr.f32.mxu1 %v1633_v23  ;;  %v2308_v19 = vpop.permute.xlu1 %2307 }
 0x258   : > { %7220 = vmatprep.subr.bf16.mxu1 %v8162_v24 }
 0x25b   : > { %7222 = vmatpush3.bf16.msra.mxu1 %v8162_v24  ;;  %v2321_v24 = vsel %vm2232_vm11, %v8184_v40, %v2308_v19  ;;  %v8266_v40 = vsub.s32 0, %v8087_v56 }
 0x25c   : > { %7224 = vmatprep.subr.bf16.mxu1 %v8164_v25 }
 0x25e   : > { %7101 = vmatmul.mubr.f32.vlgmr.msra.gmra.mrb[12].mxu1 %v1643_v22 }
 0x25f   : > { %7226 = vmatpush3.bf16.msra.mxu1 %v8164_v25  ;;  %7111 = vmatprep.mubr.f32.mxu1 %v1634_v30  ;;  %v2310_v25 = vpop.permute.xlu1 %2309 }
 0x260   : > { %7228 = vmatprep.subr.bf16.mxu1 %v8166_v26 }
 0x263   : > { %7230 = vmatpush3.bf16.msra.mxu1 %v8166_v26  ;;  %v2322_v26 = vsel %vm406_vm1, %v2321_v24, %v2310_v25 }
 0x264   : > { %7232 = vmatprep.subr.bf16.mxu1 %v8151_v4 }
 0x266   : > { %7112 = vmatmul.mubr.f32.vlgmr.msra.gmra.mrb[12].mxu1 %v1644_v29 }
 0x267   : > { %7234 = vmatpush3.bf16.msra.mxu1 %v8151_v4  ;;  %7122 = vmatprep.mubr.f32.mxu1 %v1635_v32 }
 0x268   : > { %7236 = vmatprep.subr.bf16.mxu1 %v8153_v5 }
 0x26b   : > { %7238 = vmatpush3.bf16.msra.mxu1 %v8153_v5 }
 0x26c   : > { %7240 = vmatprep.subr.bf16.mxu1 %v8168_v27 }
 0x26e   : > { %7123 = vmatmul.mubr.f32.vlgmr.msra.gmra.mrb[12].mxu1 %v1645_v31 }
 0x26f   : > { %7242 = vmatpush3.bf16.msra.mxu1 %v8168_v27  ;;  %7133 = vmatprep.mubr.f32.mxu1 %v1633_v23  ;;  %v2312_v27 = vpop.permute.xlu0 %2311 }
 0x270   : > { %7244 = vmatprep.subr.bf16.mxu1 %v8170_v28 }
 0x273   : > { %7246 = vmatpush3.bf16.msra.mxu1 %v8170_v28  ;;  %v2314_v28 = vpop.permute.xlu1 %2313  ;;  %v2099_v3 = vpop.permute.xlu0 %2098 }
 0x274   : > { %7248 = vmatprep.subr.bf16.mxu1 %v8151_v4 }
 0x276   : > { %7134 = vmatmul.mubr.f32.vlgmr.msra.gmra.mrb[12].mxu1 %v1643_v22 }
 0x277   : > { %7250 = vmatpush3.bf16.msra.mxu1 %v8151_v4  ;;  %7144 = vmatprep.mubr.f32.mxu1 %v1633_v23  ;;  %v2323_v4 = vsel %vm2235_vm12, %v2322_v26, %v2312_v27  ;;  %v8335_v30 = vpop.permute.xlu0 %2204 }
 0x278   : > { %7252 = vmatprep.subr.bf16.mxu1 %v8153_v5  ;;  %v2324_v41 = vsel %vm2237_vm13, %v2323_v4, %v2314_v28 }
 0x27b   : > { %7254 = vmatpush3.bf16.msra.mxu1 %v8153_v5  ;;  %v2316_v5 = vpop.permute.xlu1 %2315  ;;  %v8337_v31 = vpop.permute.xlu0 %2206 }
 0x27c   : > { %v2325_v42 = vsel %vm2239_vm14, %v2324_v41, %v2316_v5 }
 0x27e   : > { %7145 = vmatmul.mubr.f32.vlgmr.msra.gmra.mrb[12].mxu1 %v1643_v22  ;;  %v2199_v22 = vrot.slane %v2185_v21, %v8178_v37 }
 0x27f   : > { %3038 = vmatprep.mubr.f32.mxu1 %v9916_v9  ;;  %v2318_v43 = vpop.permute.xlu1 %2317  ;;  %v8339_v32 = vpop.permute.xlu0 %2208 }
 0x280   : > { %v2326_v44 = vsel %vm2241_vm15, %v2325_v42, %v2318_v43  ;;  %v2203_v23 = vcombine.high %v2199_v22, %v7811_v33 }
 0x283   : > { %v2320_v45 = vpop.permute.xlu1 %2319  ;;  %v8344_v39 = vpop.permute.xlu0 %2210 }
 0x284   : > { %v2327_v46 = vsel %vm2243_vm0, %v2326_v44, %v2320_v45 }
 0x285   : > { %v2403_v48 = vrot.slane %v2327_v46, %v8266_v40 }
 0x287   : > { %vm2404_vm2 = vcmp.eq.s32.totalorder %v2403_v48, %v8087_v56  ;;  %vm2405_vm3 = vcmp.eq.s32.totalorder %v2403_v48, %v8109_v2  ;;  %v8353_v5 = vpop.permute.xlu0 %2212 }
 0x288   : > { %v6764_v49 = vsel %vm2404_vm2, 1.0, %v9916_v9  ;;  %v6765_v50 = vsel %vm2405_vm3, 1.0, %v9916_v9  ;;  %vm8274_vm4 = vmpackc.low %vm2405_vm3, %vm2404_vm2 }
 0x289   : > { %v2512_v52 = vsub.f32 %v6764_v49, %v6764_v49  ;;  %v2524_v53 = vsub.f32 %v6765_v50, %v6765_v50  ;;  %7256 = vmatprep.subr.msk.bf16.mxu0 %vm8274_vm4, %v7819_v54  ;;  %7280 = vmatprep.subr.msk.bf16.mxu1 %vm8274_vm4, %v7819_v54 }
 0x28a   : > { %7258 = vmatpush1.bf16.msk.msra.mxu0 %vm8274_vm4, %v7819_v54  ;;  %7282 = vmatpush1.bf16.msk.msra.mxu1 %vm8274_vm4, %v7819_v54 }
 0x28b   : > { %v2513_v55 = vand.u32 4294901760, %v2512_v52  ;;  %v2525_v58 = vand.u32 4294901760, %v2524_v53  ;;  %v8290_v59 = vpack.c.bf16 %v2524_v53, %v2512_v52  ;;  %v8360_v48 = vpop.permute.xlu0 %2214 }
 0x28d   : > { %v2514_v61 = vsub.f32 %v2512_v52, %v2513_v55  ;;  %v2526_v62 = vsub.f32 %v2524_v53, %v2525_v58  ;;  %v8292_v63 = vpack.c.bf16 %v2525_v58, %v2513_v55 }
 0x28f   : > { %v2515_v0 = vand.u32 4294901760, %v2514_v61  ;;  %v2527_v60 = vand.u32 4294901760, %v2526_v62  ;;  %v8370_v52 = vpop.permute.xlu0 %2216 }
 0x291   : > { %v8294_v1 = vpack.c.bf16 %v2527_v60, %v2515_v0 }
 0x293   : > { %7260 = vmatprep.subr.bf16.mxu0 %v8294_v1  ;;  %7284 = vmatprep.subr.bf16.mxu1 %v8294_v1 }
 0x351   : > { %v8300_v7 = vpop.f32.mrb[12].mxu1 }
 0x352   : > { %v2102_v8 = vadd.f32 %v8300_v7, %v2099_v3  ;;  %v8303_v10 = vpop.f32.mrb[13].mxu1 }
 0x353   : > { %2412 = vrot.lane.b32.xlu1 %v8303_v10, %s7817_s20  ;;  %v2101_v29 = vadd.f32 %v2099_v3, %v8303_v10 }
 0x354   : > { %2964 = vrot.lane.b32.xlu0 %v2102_v8, %s7818_s21 }
 0x357   : > { %2414 = vrot.lane.b32.xlu1 %v8300_v7, %s7817_s20 }
 0x35b   : > { %2218 = vrot.lane.b32.xlu1 %v2200_v12, %s9914_s0  ;;  %s381_s0 = scalar_lea.vmem %s9910_s8, %s6815_s23 }
 0x35f   : > { %2220 = vrot.lane.b32.xlu1 %v2184_v14, %s7814_s13 }
 0x363   : > { %2222 = vrot.lane.b32.xlu1 %v2201_v16, %s7813_s24 }
 0x367   : > { %2224 = vrot.lane.b32.xlu1 %v2192_v18, %s7815_s15 }
 0x36b   : > { %2226 = vrot.lane.b32.xlu1 %v2202_v20, %s7816_s17  ;;  %v2233_v20 = vsel %vm2232_vm11, %v8198_v47, %v8335_v30 }
 0x36f   : > { %2228 = vrot.lane.b32.xlu1 %v2199_v22, %s7817_s20  ;;  %v2234_v22 = vsel %vm406_vm1, %v2233_v20, %v8337_v31 }
 0x373   : > { %2230 = vrot.lane.b32.xlu1 %v2203_v23, %s7818_s21 }
 0x377   : > { %2962 = vrot.lane.b32.xlu1 %v2101_v29, %s7818_s21  ;;  %v2236_v29 = vsel %vm2235_vm12, %v2234_v22, %v8339_v32 }
 0x3c5   : > { %v2413_v34 = vpop.permute.xlu1 %2412 }
 0x3c6   : > { %v2416_v35 = vsel %vm2232_vm11, %v2413_v34, 0  ;;  %v2965_v55 = vpop.permute.xlu0 %2964 }
 0x3c7   : > { %v8342_v38 = vand.u32 4294901760, %v2416_v35  ;;  %v2968_v61 = vsel %vm2232_vm11, %v2965_v55, 0 }
 0x3c8   : > { %v3050_v0 = vand.u32 4294901760, %v2968_v61 }
 0x3c9   : > { %v2490_v19 = vsub.f32 %v2416_v35, %v8342_v38  ;;  %v2415_v24 = vpop.permute.xlu1 %2414  ;;  %v2238_v35 = vsel %vm2237_vm13, %v2236_v29, %v8344_v39 }
 0x3ca   : > { %v2418_v25 = vsel %vm2232_vm11, %v2415_v24, 0  ;;  %v3051_v6 = vsub.f32 %v2968_v61, %v3050_v0  ;;  %v8472_v24 = vsub.s32 1, %v8087_v56 }
 0x3cb   : > { %v2491_v26 = vand.u32 4294901760, %v2490_v19  ;;  %v8348_v27 = vand.u32 4294901760, %v2418_v25 }
 0x3cc   : > { %v3052_v14 = vand.u32 4294901760, %v3051_v6 }
 0x3cd   : > { %v2492_v28 = vsub.f32 %v2490_v19, %v2491_v26  ;;  %v2501_v4 = vsub.f32 %v2418_v25, %v8348_v27  ;;  %v8351_v41 = vpop.permute.xlu1 %2218  ;;  %v8474_v25 = vld [vmem:[%s381_s0] sm:$0xff] }
 0x3ce   : > { %v3053_v17 = vsub.f32 %v3051_v6, %v3052_v14  ;;  %v2245_v21 = vsel %vm2232_vm11, %v8308_v11, %v8351_v41  ;;  %v2240_v11 = vsel %vm2239_vm14, %v2238_v35, %v8353_v5  ;;  %v8487_v41 = vld [vmem:[%s381_s0 + $0x8] sm:$0xff]  ;;  %s357_s0 = sand.u32 1, %s7786_s28  }
 0x3cf   : > { %v2493_v42 = vand.u32 4294901760, %v2492_v28  ;;  %v2502_v43 = vand.u32 4294901760, %v2501_v4  ;;  %v2242_v31 = vsel %vm2241_vm15, %v2240_v11, %v8360_v48 }
 0x3d0   : > { %v3054_v18 = vand.u32 4294901760, %v3053_v17  ;;  %v2244_v39 = vsel %vm2243_vm0, %v2242_v31, %v8370_v52 }
 0x3d1   : > { %v8355_v44 = vpop.permute.xlu1 %2220  ;;  %2494 = vmatmul.mubr.f32.vlgmr.msra.gmra.mrb[6].mxu0 %v2493_v42  ;;  %v2503_v45 = vsub.f32 %v2501_v4, %v2502_v43  ;;  %v8483_v28 = vrot.slane %v2244_v39, %v8266_v40 }
 0x3d2   : > { %7262 = vmatpush1.bf16.msra.mxu0 %v8294_v1  ;;  %2499 = vmatprep.mubr.f32.mxu0 %v9916_v9  ;;  %v2246_v23 = vsel %vm406_vm1, %v2245_v21, %v8355_v44  ;;  %v5743_v44 = vrot.slane %v8487_v41, %v8266_v40 }
 0x3d3   : > { %7264 = vmatprep.subr.bf16.mxu0 %v8290_v59  ;;  %v2504_v46 = vand.u32 4294901760, %v2503_v45 }
 0x3d5   : > { %v8362_v49 = vpop.permute.xlu1 %2222  ;;  %2505 = vmatmul.mubr.f32.gmra.mrb[8].mxu0 %v2504_v46 }
 0x3d6   : > { %2595 = vmatprep.mubr.f32.mxu0 %v9916_v9  ;;  %v2247_v34 = vsel %vm2235_vm12, %v2246_v23, %v8362_v49  ;;  %vm2336_vm12 = vcmp.le.s32.totalorder %v8087_v56, %v8483_v28  ;;  %v5754_v49 = vrot.slane %v8487_v41, %v8472_v24 }
 0x3d9   : > { %v8365_v50 = vpop.permute.xlu1 %2224  ;;  %2597 = vmatmul.mubr.f32.vlgmr.msra.gmra.mrb[6].mxu0 %v8342_v38 }
 0x3da   : > { %7266 = vmatpush1.bf16.msra.mxu0 %v8290_v59  ;;  %2602 = vmatprep.mubr.f32.mxu0 %v9916_v9  ;;  %v2248_v47 = vsel %vm2237_vm13, %v2247_v34, %v8365_v50  ;;  %v8527_v50 = vsub.s32 2, %v8087_v56 }
 0x3db   : > { %7268 = vmatprep.subr.msk.bf16.mxu0 %vm8274_vm4, %v7819_v54 }
 0x3dd   : > { %v8375_v53 = vpop.permute.xlu1 %2226  ;;  %2604 = vmatmul.mubr.f32.gmra.mrb[8].mxu0 %v8348_v27 }
 0x3de   : > { %2682 = vmatprep.mubr.f32.mxu0 %v9916_v9  ;;  %v2249_v30 = vsel %vm2239_vm14, %v2248_v47, %v8375_v53 }
 0x3e1   : > { %v8379_v58 = vpop.permute.xlu1 %2228  ;;  %2685 = vmatmul.mubr.f32.vlgmr.msra.gmra.mrb[6].mxu0 %v2490_v19 }
 0x3e2   : > { %7270 = vmatpush1.bf16.msk.msra.mxu0 %vm8274_vm4, %v7819_v54  ;;  %2690 = vmatprep.mubr.f32.mxu0 %v9916_v9  ;;  %v2250_v32 = vsel %vm2241_vm15, %v2249_v30, %v8379_v58  ;;  %v5677_v58 = vrot.slane %v8474_v25, %v8527_v50 }
 0x3e3   : > { %7272 = vmatprep.subr.bf16.mxu0 %v8292_v63 }
 0x3e5   : > { %v8387_v62 = vpop.permute.xlu1 %2230  ;;  %2693 = vmatmul.mubr.f32.gmra.mrb[8].mxu0 %v2501_v4 }
 0x3e6   : > { %2767 = vmatprep.mubr.f32.mxu0 %v9916_v9  ;;  %v2251_v19 = vsel %vm2243_vm0, %v2250_v32, %v8387_v62 }
 0x3e7   : > { %v8490_v5 = vrot.slane %v2251_v19, %v8266_v40 }
 0x3e9   : > { %2771 = vmatmul.mubr.f32.vlgmr.msra.gmra.mrb[6].mxu0 %v2491_v26  ;;  %v2963_v60 = vpop.permute.xlu1 %2962  ;;  %v5655_v26 = vrot.slane %v8474_v25, %v8266_v40  ;;  %vm2337_vm14 = vcmp.le.s32.totalorder %v8087_v56, %v8490_v5 }
 0x3ea   : > { %7274 = vmatpush1.bf16.msra.mxu0 %v8292_v63  ;;  %v2966_v3 = vsel %vm2232_vm11, %v2963_v60, 0  ;;  %2776 = vmatprep.mubr.f32.mxu0 %v9916_v9 }
 0x3eb   : > { %v3039_v8 = vand.u32 4294901760, %v2966_v3  ;;  %7276 = vmatprep.subr.msk.bf16.mxu0 %vm8274_vm4, %v7819_v54  ;;  %5661 = vbcast.lane.b32.xlu1 %v5655_v26, 264 }
 0x3ec   : > { %5657 = vbcast.lane.b32.xlu0 %v5655_v26, 256 }
 0x3ed   : > { %v3040_v12 = vsub.f32 %v2966_v3, %v3039_v8  ;;  %2780 = vmatmul.mubr.f32.gmra.mrb[8].mxu0 %v2502_v43 }
 0x3ee   : > { %2862 = vmatprep.mubr.f32.mxu0 %v9916_v9 }
 0x3ef   : > { %v3041_v13 = vand.u32 4294901760, %v3040_v12 }
 0x3f1   : > { %v3042_v15 = vsub.f32 %v3040_v12, %v3041_v13  ;;  %2864 = vmatmul.mubr.f32.vlgmr.msra.gmra.mrb[6].mxu0 %v8342_v38 }
 0x3f2   : > { %7278 = vmatpush1.bf16.msk.msra.mxu0 %vm8274_vm4, %v7819_v54  ;;  %2869 = vmatprep.mubr.f32.mxu0 %v9916_v9 }
 0x3f3   : > { %v3043_v16 = vand.u32 4294901760, %v3042_v15  ;;  %v5765_v15 = vrot.slane %v8487_v41, %v8527_v50 }
 0x3f5   : > { %2871 = vmatmul.mubr.f32.gmra.mrb[8].mxu0 %v8348_v27  ;;  %3044 = vmatmul.mubr.f32.vlgmr.msra.gmra.mrb[14].mxu1 %v3043_v16  ;;  %v8590_v16 = vsub.s32 3, %v8087_v56 }
 0x3f6   : > { %7286 = vmatpush1.bf16.msra.mxu1 %v8294_v1  ;;  %2945 = vmatprep.mubr.f32.mxu0 %v9916_v9 }
 0x3f7   : > { %7288 = vmatprep.subr.bf16.mxu1 %v8290_v59  ;;  %3049 = vmatprep.mubr.f32.mxu1 %v9916_v9  ;;  %v5688_v30 = vrot.slane %v8474_v25, %v8590_v16 }
 0x3f9   : > { %2947 = vmatmul.mubr.f32.vlgmr.msra.gmra.mrb[6].mxu0 %v8342_v38  ;;  %3055 = vmatmul.mubr.f32.gmra.mrb[16].mxu1 %v3054_v18  ;;  %v2340_v38 = vstv %s386_s22  ;;  %s6739_s22 = sshll.u32 %s357_s0, 5 }
 0x3fa   : > { %2952 = vmatprep.mubr.f32.mxu0 %v9916_v9  ;;  %3145 = vmatprep.mubr.f32.mxu1 %v9916_v9  ;;  %vm2351_vm1 = vcmp.lt.s32.totalorder %v2244_v39, %v2340_v38  ;;  %vm2352_vm5 = vcmp.lt.s32.totalorder %v2251_v19, %v2340_v38  ;;  %vm2341_vm7 = vcmp.lt.s32.totalorder %v8087_v56, %v2340_v38  ;;  %s8863_s23 = scalar_lea.vmem [#allocation6], %s6739_s22 }
 0x3fb   : > { %v2353_v4 = vsel %vm2351_vm1, 1, %v7811_v33  ;;  %v2354_v42 = vsel %vm2352_vm5, 1, %v7811_v33  ;;  %vm2391_vm8 = vmand %vm2389_vm6, %vm2341_vm7  ;;  %vm2393_vm9 = vcmp.lt.s32.totalorder %v8093_v57, %v2340_v38  ;;  %vm2342_vm15 = vcmp.lt.s32.totalorder %v8109_v2, %v2340_v38  ;;  %s6609_s22 = sshll.u32 %s8863_s23, 4  ;;  %s9849_s22 = int_to_ptr.vmem [resolvable:$true] %s6609_s22 }
 0x3fc   : > { %v2358_v43 = vrot.slane %v2353_v4, %v8266_v40  ;;  %vm2394_vm13 = vmand %vm2391_vm8, %vm2393_vm9  ;;  %v2362_v33 = vrot.slane %v2354_v42, %v8266_v40  ;;  %vm2338_vm6 = vcmp.le.s32.totalorder %v8109_v2, %v8483_v28 }
 0x3fd   : > { %2954 = vmatmul.mubr.f32.gmra.mrb[8].mxu0 %v8348_v27  ;;  %3147 = vmatmul.mubr.f32.vlgmr.msra.gmra.mrb[14].mxu1 %v3039_v8  ;;  %v5666_v27 = vrot.slane %v8474_v25, %v8472_v24  ;;  %vm2392_vm0 = vmand %vm2390_vm10, %vm2342_vm15  ;;  %v8522_v48 = vsel %vm2394_vm13, 1.0, %v9916_v9 }
 0x3fe   : > { %7290 = vmatpush1.bf16.msra.mxu1 %v8290_v59  ;;  %3152 = vmatprep.mubr.f32.mxu1 %v9916_v9  ;;  %vm8513_vm2 = vmand %vm2336_vm12, %vm2341_vm7  ;;  %vm8517_vm3 = vcmp.eq.s32.totalorder %v2358_v43, 1  ;;  %vm8535_vm5 = vcmp.eq.s32.totalorder %v2362_v33, 1  ;;  %v3533_v55 = vsel %vm2232_vm11, %v8522_v48, 0  ;;  %v8619_v33 = vsub.s32 4, %v8087_v56 }
 0x3ff   : > { %7292 = vmatprep.subr.msk.bf16.mxu1 %vm8274_vm4, %v7819_v54  ;;  %3606 = vmatprep.mubr.f32.mxu0 %v9916_v9  ;;  %vm8531_vm1 = vmand %vm2337_vm14, %vm2341_vm7  ;;  %vm2339_vm7 = vcmp.le.s32.totalorder %v8109_v2, %v8490_v5  ;;  %v8572_v60 = vsub.f32 %v3533_v55, %v3533_v55 }
 0x400   : > { %5668 = vbcast.lane.b32.xlu1 %v5666_v27, 256  ;;  %5672 = vbcast.lane.b32.xlu0 %v5666_v27, 264  ;;  %vm2395_vm8 = vmand %vm2392_vm0, %vm2393_vm9  ;;  %vm2378_vm0 = vcmp.eq.s32.totalorder %v8087_v56, %v8490_v5 }
 0x401   : > { %3154 = vmatmul.mubr.f32.gmra.mrb[16].mxu1 %v3050_v0  ;;  %vm2365_vm10 = vmand %vm8513_vm2, %vm8517_vm3  ;;  %v8564_v62 = vsel %vm2395_vm8, 1.0, %v9916_v9  ;;  %v3609_v20 = vand.u32 4294901760, %v8572_v60  ;;  %vm2377_vm2 = vcmp.eq.s32.totalorder %v8087_v56, %v8483_v28 }
 0x402   : > { %3232 = vmatprep.mubr.f32.mxu1 %v9916_v9  ;;  %vm2366_vm12 = vmand %vm8531_vm1, %vm8535_vm5  ;;  %v8575_v3 = vsel %vm2365_vm10, 1.0, %v9916_v9  ;;  %vm2380_vm1 = vcmp.eq.s32.totalorder %v8109_v2, %v8490_v5 }
 0x403   : > { %vm8559_vm9 = vmand %vm2338_vm6, %vm2342_vm15  ;;  %v3610_v19 = vsub.f32 %v8572_v60, %v3609_v20 }
 0x404   : > { %5745 = vbcast.lane.b32.xlu1 %v5743_v44, 256  ;;  %5749 = vbcast.lane.b32.xlu0 %v5743_v44, 264  ;;  %vm8568_vm13 = vmand %vm2339_vm7, %vm2342_vm15  ;;  %v5776_v44 = vrot.slane %v8487_v41, %v8590_v16 }
 0x405   : > { %3235 = vmatmul.mubr.f32.vlgmr.msra.gmra.mrb[14].mxu1 %v3040_v12  ;;  %vm2367_vm14 = vmand %vm8559_vm9, %vm8517_vm3  ;;  %v3611_v55 = vand.u32 4294901760, %v3610_v19  ;;  %v8648_v19 = vsub.s32 6, %v8087_v56  ;;  %vm2379_vm3 = vcmp.eq.s32.totalorder %v8109_v2, %v8483_v28  ;;  %v6761_v28 = vsel %vm2380_vm1, 1.0, %v9916_v9 }
 0x406   : > { %7294 = vmatpush1.bf16.msk.msra.mxu1 %vm8274_vm4, %v7819_v54  ;;  %3240 = vmatprep.mubr.f32.mxu1 %v9916_v9  ;;  %vm2368_vm15 = vmand %vm8568_vm13, %vm8535_vm5  ;;  %v8599_v22 = vsel %vm2367_vm14, 1.0, %v9916_v9 }
 0x407   : > { %7296 = vmatprep.subr.bf16.mxu1 %v8292_v63  ;;  %v8605_v47 = vsel %vm2368_vm15, 1.0, %v9916_v9 }
 0x408   : > { %5756 = vbcast.lane.b32.xlu1 %v5754_v49, 256  ;;  %5760 = vbcast.lane.b32.xlu0 %v5754_v49, 264 }
 0x409   : > { %3243 = vmatmul.mubr.f32.gmra.mrb[16].mxu1 %v3051_v6 }
 0x40a   : > { %3317 = vmatprep.mubr.f32.mxu1 %v9916_v9 }
 0x40c   : > { %5679 = vbcast.lane.b32.xlu1 %v5677_v58, 256  ;;  %5683 = vbcast.lane.b32.xlu0 %v5677_v58, 264 }
 0x40d   : > { %3321 = vmatmul.mubr.f32.vlgmr.msra.gmra.mrb[14].mxu1 %v3041_v13 }
 0x40e   : > { %7298 = vmatpush1.bf16.msra.mxu1 %v8292_v63  ;;  %3326 = vmatprep.mubr.f32.mxu1 %v9916_v9 }
 0x40f   : > { %7300 = vmatprep.subr.msk.bf16.mxu1 %vm8274_vm4, %v7819_v54 }
 0x410   : > { %5767 = vbcast.lane.b32.xlu1 %v5765_v15, 256  ;;  %5771 = vbcast.lane.b32.xlu0 %v5765_v15, 264 }
 0x411   : > { %3330 = vmatmul.mubr.f32.gmra.mrb[16].mxu1 %v3052_v14  ;;  %v3536_v14 = vsel %vm2232_vm11, %v8564_v62, 0 }
 0x412   : > { %3412 = vmatprep.mubr.f32.mxu1 %v9916_v9  ;;  %v8601_v29 = vsub.f32 %v3536_v14, %v3536_v14  ;;  %v5699_v14 = vrot.slane %v8474_v25, %v8619_v33 }
 0x414   : > { %v3620_v4 = vand.u32 4294901760, %v8601_v29  ;;  %5690 = vbcast.lane.b32.xlu1 %v5688_v30, 256  ;;  %5694 = vbcast.lane.b32.xlu0 %v5688_v30, 264 }
 0x415   : > { %3414 = vmatmul.mubr.f32.vlgmr.msra.gmra.mrb[14].mxu1 %v3039_v8 }
 0x416   : > { %7302 = vmatpush1.bf16.msk.msra.mxu1 %vm8274_vm4, %v7819_v54  ;;  %3419 = vmatprep.mubr.f32.mxu1 %v9916_v9  ;;  %v3621_v61 = vsub.f32 %v8601_v29, %v3620_v4 }
 0x418   : > { %5778 = vbcast.lane.b32.xlu1 %v5776_v44, 256  ;;  %5782 = vbcast.lane.b32.xlu0 %v5776_v44, 264 }
 0x419   : > { %3421 = vmatmul.mubr.f32.gmra.mrb[16].mxu1 %v3050_v0 }
 0x41a   : > { %3495 = vmatprep.mubr.f32.mxu1 %v9916_v9 }
 0x41c   : > { %5701 = vbcast.lane.b32.xlu1 %v5699_v14, 256  ;;  %5705 = vbcast.lane.b32.xlu0 %v5699_v14, 264  ;;  %v6128_v14 = vrot.slane %v8564_v62, %v8266_v40 }
 0x41d   : > { %3497 = vmatmul.mubr.f32.vlgmr.msra.gmra.mrb[14].mxu1 %v3039_v8  ;;  %v8578_v8 = vsel %vm2366_vm12, 1.0, %v9916_v9 }
 0x41e   : > { %3502 = vmatprep.mubr.f32.mxu1 %v9916_v9 }
 0x421   : > { %3504 = vmatmul.mubr.f32.gmra.mrb[16].mxu1 %v3050_v0 }
 0x4cc   : > { %v2948_v6 = vpop.f32.mrb[6].mxu0 }
 0x4cd   : > { %v3528_v12 = vmul.f32 %v8575_v3, %v2948_v6  ;;  %v2950_v13 = vpop.f32.mrb[7].mxu0 }
 0x4ce   : > { %v3529_v17 = vmul.f32 %v8578_v8, %v2950_v13 }
 0x4cf   : > { %v3540_v18 = vand.u32 4294901760, %v3528_v12 }
 0x4d0   : > { %v3538_v21 = vand.u32 4294901760, %v3529_v17  ;;  %v2955_v23 = vpop.f32.mrb[8].mxu0 }
 0x4d1   : > { %v3636_v34 = vsub.f32 %v3528_v12, %v3540_v18  ;;  %v3530_v35 = vmul.f32 %v8599_v22, %v2955_v23  ;;  %v2957_v11 = vpop.f32.mrb[9].mxu0  ;;  %v3622_v23 = vand.u32 4294901760, %v3621_v61 }
 0x4d2   : > { %v3630_v31 = vsub.f32 %v3529_v17, %v3538_v21  ;;  %v3531_v32 = vmul.f32 %v8605_v47, %v2957_v11 }
 0x4d3   : > { %v3637_v38 = vand.u32 4294901760, %v3636_v34  ;;  %v3544_v39 = vand.u32 4294901760, %v3530_v35 }
 0x4d4   : > { %v3631_v26 = vand.u32 4294901760, %v3630_v31  ;;  %v3542_v27 = vand.u32 4294901760, %v3531_v32 }
 0x4d5   : > { %v8614_v42 = vpack.c.bf16 %v3544_v39, %v3540_v18  ;;  %v3648_v43 = vsub.f32 %v3530_v35, %v3544_v39  ;;  %v3638_v49 = vsub.f32 %v3636_v34, %v3637_v38 }
 0x4d6   : > { %v3642_v45 = vsub.f32 %v3531_v32, %v3542_v27  ;;  %v8621_v46 = vpack.c.bf16 %v3542_v27, %v3538_v21  ;;  %v3632_v0 = vsub.f32 %v3630_v31, %v3631_v26  ;;  %v8636_v32 = vsub.s32 5, %v8087_v56 }
 0x4d7   : > { %v3649_v52 = vand.u32 4294901760, %v3648_v43  ;;  %v7313_v53 = vpack.c.bf16 %v3648_v43, %v3636_v34  ;;  %v3639_v18 = vand.u32 4294901760, %v3638_v49  ;;  %v5809_v27 = vrot.slane %v8487_v41, %v8648_v19 }
 0x4d8   : > { %v3643_v58 = vand.u32 4294901760, %v3642_v45  ;;  %7304 = vmatprep.subr.bf16.mxu0 %v8621_v46  ;;  %v7311_v6 = vpack.c.bf16 %v3642_v45, %v3630_v31  ;;  %v3633_v34 = vand.u32 4294901760, %v3632_v0  ;;  %v5787_v31 = vrot.slane %v8487_v41, %v8619_v33 }
 0x4d9   : > { %v3650_v12 = vsub.f32 %v3648_v43, %v3649_v52  ;;  %7306 = vmatpush1.bf16.msra.mxu0 %v8614_v42  ;;  %v8628_v13 = vpack.c.bf16 %v3649_v52, %v3637_v38  ;;  %v5710_v38 = vrot.slane %v8474_v25, %v8636_v32  ;;  %v5798_v39 = vrot.slane %v8487_v41, %v8636_v32 }
 0x4da   : > { %v3644_v15 = vsub.f32 %v3642_v45, %v3643_v58  ;;  %v7319_v17 = vpack.c.bf16 %v3643_v58, %v3631_v26  ;;  %5789 = vbcast.lane.b32.xlu1 %v5787_v31, 256  ;;  %5793 = vbcast.lane.b32.xlu0 %v5787_v31, 264  ;;  %v5721_v26 = vrot.slane %v8474_v25, %v8648_v19  ;;  %v8663_v43 = vsub.s32 7, %v8087_v56 }
 0x4db   : > { %v3651_v21 = vand.u32 4294901760, %v3650_v12  ;;  %v6759_v45 = vsel %vm2378_vm0, 1.0, %v9916_v9  ;;  %v6760_v58 = vsel %vm2379_vm3, 1.0, %v9916_v9 }
 0x4dc   : > { %3612 = vmatmul.mubr.f32.vlgmr.msra.gmra.mrb[10].mxu0 %v3611_v55  ;;  %v3645_v35 = vand.u32 4294901760, %v3644_v15  ;;  %v6758_v55 = vsel %vm2377_vm2, 1.0, %v9916_v9  ;;  %v8799_v51 = vrot.slane %v8564_v62, %v8663_v43 }
 0x4dd   : > { %3617 = vmatprep.mubr.f32.mxu0 %v9916_v9  ;;  %v7309_v11 = vpack.c.bf16 %v3651_v21, %v3639_v18 }
 0x4de   : > { %v7307_v30 = vpack.c.bf16 %v3645_v35, %v3633_v34  ;;  %5712 = vbcast.lane.b32.xlu1 %v5710_v38, 256  ;;  %5716 = vbcast.lane.b32.xlu0 %v5710_v38, 264  ;;  %v6150_v34 = vrot.slane %v8564_v62, %v8527_v50  ;;  %v6073_v35 = vrot.slane %v8522_v48, %v8590_v16 }
 0x4df   : > { %9947 = vst [vmem:[#allocation12_spill] sm:$0xff] %v8799_v51 }
 0x4e0   : > { %3623 = vmatmul.mubr.f32.gmra.mrb[12].mxu0 %v3622_v23  ;;  %7308 = vmatprep.subr.bf16.mxu0 %v7307_v30  ;;  %v6062_v23 = vrot.slane %v8522_v48, %v8527_v50  ;;  %v6084_v50 = vrot.slane %v8522_v48, %v8619_v33  ;;  %v6117_v30 = vrot.slane %v8522_v48, %v8663_v43 }
 0x4e1   : > { %7310 = vmatpush1.bf16.msra.mxu0 %v7309_v11  ;;  %3713 = vmatprep.mubr.f32.mxu0 %v9916_v9  ;;  %v6106_v11 = vrot.slane %v8522_v48, %v8648_v19 }
 0x4e2   : > { %7312 = vmatprep.subr.bf16.mxu0 %v7311_v6  ;;  %5800 = vbcast.lane.b32.xlu1 %v5798_v39, 256 }
 0x4e3   : > { %5804 = vbcast.lane.b32.xlu0 %v5798_v39, 264  ;;  %v8812_v39 = vpop.permute.xlu0 %5657 }
 0x4e4   : > { %6790 = vmatmul.mubr.msk.f32.vlgmr.msra.gmra.mrb[10].mxu0 %vm2232_vm11, %v8522_v48  ;;  %vm5828_vm12 = vcmp.eq.s32.totalorder %v8093_v57, %v8812_v39 }
 0x4e5   : > { %7314 = vmatpush1.bf16.msra.mxu0 %v7313_v53  ;;  %3720 = vmatprep.mubr.f32.mxu0 %v9916_v9  ;;  %v5732_v53 = vrot.slane %v8474_v25, %v8663_v43  ;;  %v5820_v25 = vrot.slane %v8487_v41, %v8663_v43  ;;  %v4080_v41 = vsel %vm2232_vm11, %v8300_v7, 0  ;;  %v6051_v7 = vrot.slane %v8522_v48, %v8472_v24 }
 0x4e6   : > { %7316 = vmatprep.subr.bf16.mxu0 %v8621_v46  ;;  %5723 = vbcast.lane.b32.xlu1 %v5721_v26, 256 }
 0x4e7   : > { %5727 = vbcast.lane.b32.xlu0 %v5721_v26, 264  ;;  %v8816_v26 = vpop.permute.xlu0 %5672 }
 0x4e8   : > { %6791 = vmatmul.mubr.msk.f32.gmra.mrb[12].mxu0 %vm2232_vm11, %v8564_v62  ;;  %vm5831_vm14 = vcmp.eq.s32.totalorder %v8093_v57, %v8816_v26 }
 0x4e9   : > { %3800 = vmatprep.mubr.f32.mxu0 %v9916_v9 }
 0x4ea   : > { %5811 = vbcast.lane.b32.xlu1 %v5809_v27, 256 }
 0x4eb   : > { %5815 = vbcast.lane.b32.xlu0 %v5809_v27, 264  ;;  %v8820_v27 = vpop.permute.xlu0 %5749 }
 0x4ec   : > { %3803 = vmatmul.mubr.f32.vlgmr.msra.gmra.mrb[10].mxu0 %v8572_v60  ;;  %v4078_v60 = vsel %vm2232_vm11, %v8303_v10, 0  ;;  %v8705_v10 = vand.u32 4294901760, %v4080_v41  ;;  %9948 = vst [vmem:[#allocation13_spill] sm:$0xff] %v8820_v27 }
 0x4ed   : > { %7318 = vmatpush1.bf16.msra.mxu0 %v8614_v42  ;;  %3808 = vmatprep.mubr.f32.mxu0 %v9916_v9 }
 0x4ee   : > { %7320 = vmatprep.subr.bf16.mxu0 %v7319_v17  ;;  %5734 = vbcast.lane.b32.xlu1 %v5732_v53, 256 }
 0x4ef   : > { %5738 = vbcast.lane.b32.xlu0 %v5732_v53, 264 }
 0x4f0   : > { %v3498_v44 = vpop.f32.mrb[14].mxu1  ;;  %3811 = vmatmul.mubr.f32.gmra.mrb[12].mxu0 %v8601_v29 }
 0x4f1   : > { %v3500_v49 = vpop.f32.mrb[15].mxu1  ;;  %3885 = vmatprep.mubr.f32.mxu0 %v9916_v9  ;;  %v3510_v0 = vmul.f32 %v6758_v55, %v3498_v44  ;;  %v8824_v44 = vpop.permute.xlu0 %5760 }
 0x4f2   : > { %v3511_v52 = vmul.f32 %v6759_v45, %v3500_v49  ;;  %5822 = vbcast.lane.b32.xlu1 %v5820_v25, 256  ;;  %9949 = vst [vmem:[#allocation14_spill] sm:$0xff] %v8824_v44 }
 0x4f3   : > { %5826 = vbcast.lane.b32.xlu0 %v5820_v25, 264 }
 0x4f4   : > { %v3505_v61 = vpop.f32.mrb[16].mxu1  ;;  %3889 = vmatmul.mubr.f32.vlgmr.msra.gmra.mrb[10].mxu0 %v3609_v20 }
 0x4f5   : > { %v3512_v6 = vmul.f32 %v6760_v58, %v3505_v61  ;;  %7322 = vmatpush1.bf16.msra.mxu0 %v8628_v13  ;;  %v3507_v2 = vpop.f32.mrb[17].mxu1  ;;  %3894 = vmatprep.mubr.f32.mxu0 %v9916_v9  ;;  %v8695_v13 = vand.u32 4294901760, %v4078_v60 }
 0x4f6   : > { %v3513_v5 = vmul.f32 %v6761_v28, %v3507_v2  ;;  %7324 = vmatprep.subr.bf16.mxu0 %v8621_v46  ;;  %v6040_v46 = vrot.slane %v8522_v48, %v8266_v40  ;;  %v6139_v40 = vrot.slane %v8564_v62, %v8472_v24 }
 0x4f7   : > { %v8688_v20 = vadd.f32 %v3512_v6, %v3510_v0  ;;  %v8708_v29 = vsub.f32 %v4078_v60, %v8695_v13 }
 0x4f8   : > { %v8690_v12 = vadd.f32 %v3513_v5, %v3511_v52  ;;  %3898 = vmatmul.mubr.f32.gmra.mrb[12].mxu0 %v3620_v4  ;;  %6046 = vbcast.lane.b32.xlu1 %v6040_v46, 264  ;;  %v8719_v4 = vsub.f32 %v4080_v41, %v8705_v10  ;;  %v8829_v52 = vpop.permute.xlu0 %5683 }
 0x4f9   : > { %3980 = vmatprep.mubr.f32.mxu0 %v9916_v9  ;;  %6042 = vbcast.lane.b32.xlu0 %v6040_v46, 256  ;;  %v3515_v49 = vrot.slane %v8688_v20, 4  ;;  %vm5833_vm15 = vcmp.eq.s32.totalorder %v8093_v57, %v8829_v52 }
 0x4fa   : > { %v4164_v17 = vand.u32 4294901760, %v8719_v4  ;;  %v3522_v53 = vrot.slane %v8690_v12, 4 }
 0x4fb   : > { %v3516_v58 = vadd.f32 %v3515_v49, %v8688_v20 }
 0x4fc   : > { %6792 = vmatmul.mubr.msk.f32.vlgmr.msra.gmra.mrb[10].mxu0 %vm2232_vm11, %v8522_v48  ;;  %6053 = vbcast.lane.b32.xlu1 %v6051_v7, 256  ;;  %v4165_v21 = vsub.f32 %v8719_v4, %v4164_v17  ;;  %v3523_v61 = vadd.f32 %v3522_v53, %v8690_v12  ;;  %v8836_v0 = vpop.permute.xlu0 %5771 }
 0x4fd   : > { %7326 = vmatpush1.bf16.msra.mxu0 %v8614_v42  ;;  %3987 = vmatprep.mubr.f32.mxu0 %v9916_v9  ;;  %v4153_v42 = vand.u32 4294901760, %v8708_v29  ;;  %9951 = vst [vmem:[#allocation16_spill] sm:$0xff] %v8836_v0  ;;  %v3517_v6 = vrot.slane %v3516_v58, 2 }
 0x4fe   : > { %7328 = vmatprep.subr.msk.bf16.mxu0 %vm8274_vm4, %v7819_v54  ;;  %6057 = vbcast.lane.b32.xlu0 %v6051_v7, 264  ;;  %v4166_v24 = vand.u32 4294901760, %v4165_v21  ;;  %v3524_v2 = vrot.slane %v3523_v61, 2 }
 0x4ff   : > { %v4154_v15 = vsub.f32 %v8708_v29, %v4153_v42  ;;  %v3518_v5 = vadd.f32 %v3517_v6, %v3516_v58 }
 0x500   : > { %6793 = vmatmul.mubr.msk.f32.gmra.mrb[12].mxu0 %vm2232_vm11, %v8564_v62  ;;  %6130 = vbcast.lane.b32.xlu1 %v6128_v14, 256  ;;  %v8840_v25 = vpop.permute.xlu0 %5694  ;;  %v3525_v60 = vadd.f32 %v3524_v2, %v3523_v61 }
 0x501   : > { %4063 = vmatprep.mubr.f32.mxu0 %v9916_v9  ;;  %v4155_v18 = vand.u32 4294901760, %v4154_v15  ;;  %v3519_v46 = vrot.slane %v3518_v5, 1  ;;  %vm5835_vm0 = vcmp.eq.s32.totalorder %v8093_v57, %v8840_v25 }
 0x502   : > { %6134 = vbcast.lane.b32.xlu0 %v6128_v14, 264  ;;  %v3526_v41 = vrot.slane %v3525_v60, 1 }
 0x503   : > { %v3520_v20 = vadd.f32 %v3519_v46, %v3518_v5 }
 0x504   : > { %6794 = vmatmul.mubr.msk.f32.vlgmr.msra.gmra.mrb[10].mxu0 %vm2232_vm11, %v8522_v48  ;;  %6141 = vbcast.lane.b32.xlu1 %v6139_v40, 256  ;;  %v3527_v7 = vadd.f32 %v3526_v41, %v3525_v60 }
 0x505   : > { %7330 = vmatpush1.bf16.msk.msra.mxu0 %vm8274_vm4, %v7819_v54  ;;  %4070 = vmatprep.mubr.f32.mxu0 %v9916_v9 }
 0x506   : > { %7332 = vmatprep.subr.bf16.mxu0 %v8294_v1  ;;  %6145 = vbcast.lane.b32.xlu0 %v6139_v40, 264 }
 0x508   : > { %6795 = vmatmul.mubr.msk.f32.gmra.mrb[12].mxu0 %vm2232_vm11, %v8564_v62  ;;  %6064 = vbcast.lane.b32.xlu1 %v6062_v23, 256 }
 0x509   : > { %4150 = vmatprep.mubr.f32.mxu0 %v9916_v9 }
 0x50a   : > { %6068 = vbcast.lane.b32.xlu0 %v6062_v23, 264 }
 0x50c   : > { %4156 = vmatmul.mubr.f32.vlgmr.msra.gmra.mrb[10].mxu0 %v4155_v18  ;;  %6152 = vbcast.lane.b32.xlu1 %v6150_v34, 256 }
 0x50d   : > { %7334 = vmatpush1.bf16.msra.mxu0 %v8294_v1  ;;  %4161 = vmatprep.mubr.f32.mxu0 %v9916_v9  ;;  %v6161_v1 = vrot.slane %v8564_v62, %v8590_v16  ;;  %v6095_v16 = vrot.slane %v8522_v48, %v8636_v32 }
 0x50e   : > { %7336 = vmatprep.subr.bf16.mxu0 %v8290_v59  ;;  %6156 = vbcast.lane.b32.xlu0 %v6150_v34, 264 }
 0x510   : > { %4167 = vmatmul.mubr.f32.gmra.mrb[12].mxu0 %v4166_v24  ;;  %6075 = vbcast.lane.b32.xlu1 %v6073_v35, 256 }
 0x511   : > { %4257 = vmatprep.mubr.f32.mxu0 %v9916_v9 }
 0x512   : > { %6079 = vbcast.lane.b32.xlu0 %v6073_v35, 264 }
 0x514   : > { %4259 = vmatmul.mubr.f32.vlgmr.msra.gmra.mrb[10].mxu0 %v8695_v13  ;;  %6163 = vbcast.lane.b32.xlu1 %v6161_v1, 256 }
 0x515   : > { %7338 = vmatpush1.bf16.msra.mxu0 %v8290_v59  ;;  %4264 = vmatprep.mubr.f32.mxu0 %v9916_v9  ;;  %v6172_v59 = vrot.slane %v8564_v62, %v8619_v33  ;;  %v6183_v33 = vrot.slane %v8564_v62, %v8636_v32 }
 0x516   : > { %7340 = vmatprep.subr.msk.bf16.mxu0 %vm8274_vm4, %v7819_v54  ;;  %6167 = vbcast.lane.b32.xlu0 %v6161_v1, 264 }
 0x518   : > { %4266 = vmatmul.mubr.f32.gmra.mrb[12].mxu0 %v8705_v10  ;;  %6086 = vbcast.lane.b32.xlu1 %v6084_v50, 256 }
 0x519   : > { %4344 = vmatprep.mubr.f32.mxu0 %v9916_v9 }
 0x51a   : > { %6090 = vbcast.lane.b32.xlu0 %v6084_v50, 264 }
 0x51c   : > { %4347 = vmatmul.mubr.f32.vlgmr.msra.gmra.mrb[10].mxu0 %v8708_v29  ;;  %6174 = vbcast.lane.b32.xlu1 %v6172_v59, 256 }
 0x51d   : > { %7342 = vmatpush1.bf16.msk.msra.mxu0 %vm8274_vm4, %v7819_v54  ;;  %4352 = vmatprep.mubr.f32.mxu0 %v9916_v9 }
 0x51e   : > { %7344 = vmatprep.subr.bf16.mxu0 %v8292_v63  ;;  %6178 = vbcast.lane.b32.xlu0 %v6172_v59, 264 }
 0x520   : > { %4355 = vmatmul.mubr.f32.gmra.mrb[12].mxu0 %v8719_v4  ;;  %6097 = vbcast.lane.b32.xlu1 %v6095_v16, 256 }
 0x521   : > { %4429 = vmatprep.mubr.f32.mxu0 %v9916_v9 }
 0x522   : > { %6101 = vbcast.lane.b32.xlu0 %v6095_v16, 264 }
 0x524   : > { %4433 = vmatmul.mubr.f32.vlgmr.msra.gmra.mrb[10].mxu0 %v4153_v42  ;;  %6185 = vbcast.lane.b32.xlu1 %v6183_v33, 256 }
 0x525   : > { %7346 = vmatpush1.bf16.msra.mxu0 %v8292_v63  ;;  %4438 = vmatprep.mubr.f32.mxu0 %v9916_v9  ;;  %v6194_v63 = vrot.slane %v8564_v62, %v8648_v19 }
 0x526   : > { %7348 = vmatprep.subr.msk.bf16.mxu0 %vm8274_vm4, %v7819_v54  ;;  %6189 = vbcast.lane.b32.xlu0 %v6183_v33, 264 }
 0x528   : > { %4442 = vmatmul.mubr.f32.gmra.mrb[12].mxu0 %v4164_v17  ;;  %6108 = vbcast.lane.b32.xlu1 %v6106_v11, 256 }
 0x529   : > { %4524 = vmatprep.mubr.f32.mxu0 %v9916_v9 }
 0x52a   : > { %6112 = vbcast.lane.b32.xlu0 %v6106_v11, 264 }
 0x52c   : > { %4526 = vmatmul.mubr.f32.vlgmr.msra.gmra.mrb[10].mxu0 %v8695_v13  ;;  %6196 = vbcast.lane.b32.xlu1 %v6194_v63, 256 }
 0x52d   : > { %7350 = vmatpush1.bf16.msk.msra.mxu0 %vm8274_vm4, %v7819_v54  ;;  %4531 = vmatprep.mubr.f32.mxu0 %v9916_v9  ;;  %v8802_v54 = vpop.permute.xlu1 %5661 }
 0x52e   : > { %6200 = vbcast.lane.b32.xlu0 %v6194_v63, 264  ;;  %vm5829_vm13 = vcmp.eq.s32.totalorder %v8093_v57, %v8802_v54 }
 0x530   : > { %4533 = vmatmul.mubr.f32.gmra.mrb[12].mxu0 %v8705_v10  ;;  %6119 = vbcast.lane.b32.xlu1 %v6117_v30, 256 }
 0x531   : > { %4607 = vmatprep.mubr.f32.mxu0 %v9916_v9  ;;  %v8804_v31 = vpop.permute.xlu1 %5668 }
 0x532   : > { %6123 = vbcast.lane.b32.xlu0 %v6117_v30, 264  ;;  %vm5830_vm4 = vcmp.eq.s32.totalorder %v8093_v57, %v8804_v31 }
 0x534   : > { %4609 = vmatmul.mubr.f32.vlgmr.msra.gmra.mrb[10].mxu0 %v8695_v13  ;;  %6207 = vbcast.lane.b32.xlu1 %v8799_v51, 256 }
 0x535   : > { %4614 = vmatprep.mubr.f32.mxu0 %v9916_v9  ;;  %v8806_v48 = vpop.permute.xlu1 %5745 }
 0x538   : > { %4616 = vmatmul.mubr.f32.gmra.mrb[12].mxu0 %v8705_v10  ;;  %v8845_v10 = vpop.permute.xlu0 %5782 }
 0x539   : > { %v8808_v32 = vpop.permute.xlu1 %5756  ;;  %9953 = vst [vmem:[#allocation18_spill] sm:$0xff] %v8845_v10 }
 0x53c   : > { %v8854_v17 = vpop.permute.xlu0 %5705 }
 0x53d   : > { %v8810_v38 = vpop.permute.xlu1 %5679  ;;  %vm5837_vm2 = vcmp.eq.s32.totalorder %v8093_v57, %v8854_v17 }
 0x53e   : > { %vm5832_vm5 = vcmp.eq.s32.totalorder %v8093_v57, %v8810_v38 }
 0x541   : > { %v8814_v19 = vpop.permute.xlu1 %5767 }
 0x545   : > { %v8818_v62 = vpop.permute.xlu1 %5690 }
 0x546   : > { %vm5834_vm6 = vcmp.eq.s32.totalorder %v8093_v57, %v8818_v62 }
 0x549   : > { %v8822_v43 = vpop.permute.xlu1 %5778 }
 0x54c   : > { %v8879_v35 = vpop.permute.xlu0 %5793 }
 0x54d   : > { %v8826_v45 = vpop.permute.xlu1 %5701  ;;  %9955 = vst [vmem:[#allocation20_spill] sm:$0xff] %v8879_v35 }
 0x54e   : > { %vm5836_vm8 = vcmp.eq.s32.totalorder %v8093_v57, %v8826_v45 }
 0x551   : > { %v8832_v55 = vpop.permute.xlu1 %5789 }
 0x552   : > { %9950 = vst [vmem:[#allocation15_spill] sm:$0xff] %v8832_v55 }
 0x555   : > { %v8838_v28 = vpop.permute.xlu1 %5712 }
 0x556   : > { %vm5838_vm10 = vcmp.eq.s32.totalorder %v8093_v57, %v8838_v28 }
 0x559   : > { %v8842_v13 = vpop.permute.xlu1 %5800 }
 0x55a   : > { %9952 = vst [vmem:[#allocation17_spill] sm:$0xff] %v8842_v13 }
 0x55d   : > { %v8847_v29 = vpop.permute.xlu1 %5723 }
 0x55e   : > { %vm5840_vm7 = vcmp.eq.s32.totalorder %v8093_v57, %v8847_v29 }
 0x561   : > { %v8861_v24 = vpop.permute.xlu1 %5811 }
 0x562   : > { %9954 = vst [vmem:[#allocation19_spill] sm:$0xff] %v8861_v24 }
 0x565   : > { %v8885_v1 = vpop.permute.xlu1 %5734 }
 0x566   : > { %vm5842_vm9 = vcmp.eq.s32.totalorder %v8093_v57, %v8885_v1 }
 0x607   : > { %v4610_v12 = vpop.f32.mrb[10].mxu0 }
 0x608   : > { %v7363_v4 = vadd.f32 %v4610_v12, %v3520_v20  ;;  %v4612_v42 = vpop.f32.mrb[11].mxu0 }
 0x609   : > { %v7364_v14 = vadd.f32 %v4612_v42, %v3527_v7 }
 0x60a   : > { %v8852_v15 = vmul.f32 %v7363_v4, %v8575_v3 }
 0x60b   : > { %v8857_v40 = vmul.f32 %v7364_v14, %v8578_v8  ;;  %v4617_v18 = vpop.f32.mrb[12].mxu0 }
 0x60c   : > { %v7365_v21 = vadd.f32 %v4617_v18, %v3520_v20  ;;  %v4619_v23 = vpop.f32.mrb[13].mxu0  ;;  %4638 = vrot.lane.b32.xlu1 %v8852_v15, %s7818_s21  ;;  %4630 = vst [vmem:[%s8863_s23] sm:$0xff] %v8852_v15 }
 0x60d   : > { %v7366_v3 = vadd.f32 %v4619_v23, %v3527_v7  ;;  %4631 = vst [vmem:[%s8863_s23 + $0x8] sm:$0xff] %v8857_v40 }
 0x60e   : > { %v8870_v8 = vmul.f32 %v7365_v21, %v8599_v22  ;;  %v8891_v22 = vpop.permute.xlu0 %5716 }
 0x60f   : > { %v8873_v34 = vmul.f32 %v7366_v3, %v8605_v47  ;;  %v8897_v47 = vpop.permute.xlu1 %5822  ;;  %vm5839_vm3 = vcmp.eq.s32.totalorder %v8093_v57, %v8891_v22 }
 0x610   : > { %4640 = vrot.lane.b32.xlu0 %v8870_v8, %s7818_s21  ;;  %4644 = vrot.lane.b32.xlu1 %v8852_v15, %s7817_s20  ;;  %4632 = vst [vmem:[%s8863_s23 + $0x10] sm:$0xff] %v8870_v8  ;;  %9956 = vst [vmem:[#allocation21_spill] sm:$0xff] %v8897_v47 }
 0x611   : > { %4633 = vst [vmem:[%s8863_s23 + $0x18] sm:$0xff] %v8873_v34 }
 0x612   : > { %v8903_v50 = vpop.permute.xlu0 %5804 }
 0x613   : > { %9957 = vst [vmem:[#allocation22_spill] sm:$0xff] %v8903_v50  ;;  %v8905_v59 = vpop.permute.xlu1 %6046 }
 0x614   : > { %4646 = vrot.lane.b32.xlu0 %v8870_v8, %s7817_s20  ;;  %4650 = vrot.lane.b32.xlu1 %v8852_v15, %s7816_s17  ;;  %9958 = vst [vmem:[#allocation23_spill] sm:$0xff] %v8905_v59 }
 0x616   : > { %v8911_v16 = vpop.permute.xlu0 %5727 }
 0x617   : > { %v8917_v33 = vpop.permute.xlu1 %6053  ;;  %vm5841_vm1 = vcmp.eq.s32.totalorder %v8093_v57, %v8911_v16 }
 0x618   : > { %4652 = vrot.lane.b32.xlu0 %v8870_v8, %s7816_s17  ;;  %4656 = vrot.lane.b32.xlu1 %v8852_v15, %s7815_s15  ;;  %9960 = vst [vmem:[#allocation24_spill] sm:$0xff] %v8917_v33 }
 0x61a   : > { %v8923_v11 = vpop.permute.xlu0 %5815 }
 0x61b   : > { %9961 = vst [vmem:[#allocation25_spill] sm:$0xff] %v8923_v11  ;;  %v8925_v63 = vpop.permute.xlu1 %6130 }
 0x61c   : > { %4658 = vrot.lane.b32.xlu0 %v8870_v8, %s7815_s15  ;;  %4662 = vrot.lane.b32.xlu1 %v8852_v15, %s7813_s24  ;;  %9962 = vst [vmem:[#allocation26_spill] sm:$0xff] %v8925_v63 }
 0x61e   : > { %v8931_v30 = vpop.permute.xlu0 %5738 }
 0x61f   : > { %v8937_v49 = vpop.permute.xlu1 %6141 }
 0x620   : > { %4664 = vrot.lane.b32.xlu0 %v8870_v8, %s7813_s24  ;;  %4668 = vrot.lane.b32.xlu1 %v8852_v15, %s7814_s13  ;;  %9963 = vst [vmem:[#allocation27_spill] sm:$0xff] %v8937_v49 }
 0x622   : > { %v8943_v53 = vpop.permute.xlu0 %5826 }
 0x623   : > { %9964 = vst [vmem:[#allocation28_spill] sm:$0xff] %v8943_v53  ;;  %v8945_v58 = vpop.permute.xlu1 %6064 }
 0x624   : > { %4670 = vrot.lane.b32.xlu0 %v8870_v8, %s7814_s13  ;;  %4674 = vrot.lane.b32.xlu1 %v8852_v15, %s9959_s25  ;;  %9965 = vst [vmem:[#allocation29_spill] sm:$0xff] %v8945_v58 }
 0x626   : > { %v8951_v61 = vpop.permute.xlu0 %6042 }
 0x627   : > { %9966 = vst [vmem:[#allocation30_spill] sm:$0xff] %v8951_v61  ;;  %v8957_v6 = vpop.permute.xlu1 %6152 }
 0x628   : > { %4676 = vrot.lane.b32.xlu0 %v8870_v8, %s9959_s25  ;;  %4682 = vrot.lane.b32.xlu1 %v8857_v40, %s7818_s21  ;;  %9967 = vst [vmem:[#allocation31_spill] sm:$0xff] %v8957_v6 }
 0x62a   : > { %v8963_v2 = vpop.permute.xlu0 %6057 }
 0x62b   : > { %9968 = vst [vmem:[#allocation32_spill] sm:$0xff] %v8963_v2  ;;  %v8965_v5 = vpop.permute.xlu1 %6075 }
 0x62c   : > { %4684 = vrot.lane.b32.xlu0 %v8873_v34, %s7818_s21  ;;  %4688 = vrot.lane.b32.xlu1 %v8857_v40, %s7817_s20  ;;  %9969 = vst [vmem:[#allocation33_spill] sm:$0xff] %v8965_v5 }
 0x62e   : > { %v8969_v60 = vpop.permute.xlu0 %6134 }
 0x62f   : > { %9970 = vst [vmem:[#allocation34_spill] sm:$0xff] %v8969_v60  ;;  %v8971_v46 = vpop.permute.xlu1 %6163 }
 0x630   : > { %4690 = vrot.lane.b32.xlu0 %v8873_v34, %s7817_s20  ;;  %4694 = vrot.lane.b32.xlu1 %v8857_v40, %s7816_s17  ;;  %9971 = vst [vmem:[#allocation35_spill] sm:$0xff] %v8971_v46 }
 0x632   : > { %v8973_v41 = vpop.permute.xlu0 %6145 }
 0x633   : > { %9972 = vst [vmem:[#allocation36_spill] sm:$0xff] %v8973_v41  ;;  %v8975_v20 = vpop.permute.xlu1 %6086 }
 0x634   : > { %4696 = vrot.lane.b32.xlu0 %v8873_v34, %s7816_s17  ;;  %4700 = vrot.lane.b32.xlu1 %v8857_v40, %s7815_s15  ;;  %9973 = vst [vmem:[#allocation37_spill] sm:$0xff] %v8975_v20  ;;  %s6816_s17 = sshll.u32 %s7794_s30, 9  ;;  %s7820_s30 = smov [#allocation6]  }
 0x635   : > { %s9846_s26 = scalar_lea.hbm %s9911_s9, %s6816_s17 }
 0x636   : > { %v8977_v12 = vpop.permute.xlu0 %6068 }
 0x637   : > { %9974 = vst [vmem:[#allocation38_spill] sm:$0xff] %v8977_v12  ;;  %v8979_v7 = vpop.permute.xlu1 %6174 }
 0x638   : > { %4702 = vrot.lane.b32.xlu0 %v8873_v34, %s7815_s15  ;;  %4706 = vrot.lane.b32.xlu1 %v8857_v40, %s7813_s24  ;;  %9975 = vst [vmem:[#allocation39_spill] sm:$0xff] %v8979_v7  ;;  %s9837_s15 = scalar_lea.vmem %s9912_s10, %s7973_s1  ;;  %s9853_s1 = scalar_lea.sflag [#allocation7], %s357_s0 }
 0x63a   : > { %v8981_v4 = vpop.permute.xlu0 %6156 }
 0x63b   : > { %9976 = vst [vmem:[#allocation40_spill] sm:$0xff] %v8981_v4  ;;  %v8983_v42 = vpop.permute.xlu1 %6097 }
 0x63c   : > { %4708 = vrot.lane.b32.xlu0 %v8873_v34, %s7813_s24  ;;  %4712 = vrot.lane.b32.xlu1 %v8857_v40, %s7814_s13  ;;  %9977 = vst [vmem:[#allocation41_spill] sm:$0xff] %v8983_v42  ;;  %s7722_s24 = scalar_lea.vmem %s9849_s22, 512 }
 0x63d   : > { %p7723_p6 = scmp.ne.s32.totalorder %s9849_s22, %s7722_s24 }
 0x63e   : > { %v8985_v14 = vpop.permute.xlu0 %6079 }
 0x63f   : > { %9978 = vst [vmem:[#allocation42_spill] sm:$0xff] %v8985_v14  ;;  %v8987_v18 = vpop.permute.xlu1 %6185  ;;  %p7724_p7 = pnand %p7723_p6, %p7932_p12 }
 0x640   : > { %4714 = vrot.lane.b32.xlu0 %v8873_v34, %s7814_s13  ;;  %4718 = vrot.lane.b32.xlu1 %v8857_v40, %s9959_s25  ;;  %9979 = vst [vmem:[#allocation43_spill] sm:$0xff] %v8987_v18  ;;  %s7726_s13 = sshll.u32 %s7820_s30, 4  ;;  %s7727_s13 = int_to_ptr.vmem [resolvable:$false] %s7726_s13 }
 0x641   : > { %p7725_p8 = pneg %p7724_p7  ;;  %s7728_s20 = scalar_lea.vmem %s7727_s13, 1024 }
 0x642   : > { %v8989_v21 = vpop.permute.xlu0 %6167  ;;  %p7729_p9 = scmp.lt.s32.totalorder %s9849_s22, %s7727_s13  ;;  %p7730_p10 = scmp.lt.s32.totalorder %s7728_s20, %s7722_s24 }
 0x643   : > { %9980 = vst [vmem:[#allocation44_spill] sm:$0xff] %v8989_v21  ;;  %v8991_v23 = vpop.permute.xlu1 %6108 }
 0x644   : > { %4720 = vrot.lane.b32.xlu0 %v8873_v34, %s9959_s25  ;;  %9981 = vst [vmem:[#allocation45_spill] sm:$0xff] %v8991_v23  ;;  %p7731_p11 = por %p7730_p10, %p7729_p9 }
 0x646   : > { %v8993_v3 = vpop.permute.xlu0 %6090  ;;  %p7732_p13 = pnand %p7731_p11, %p7725_p8 }
 0x647   : > { %9982 = vst [vmem:[#allocation46_spill] sm:$0xff] %v8993_v3  ;;  %v8995_v9 = vpop.permute.xlu1 %6196 }
 0x648   : > { %9983 = vst [vmem:[#allocation47_spill] sm:$0xff] %v8995_v9 }
 0x64a   : > { %v8997_v56 = vpop.permute.xlu0 %6178 }
 0x64b   : > { %9984 = vst [vmem:[#allocation48_spill] sm:$0xff] %v8997_v56  ;;  %v8999_v41 = vpop.permute.xlu1 %6119 }
 0x64c   : > { %9985 = vst [vmem:[#allocation49_spill] sm:$0xff] %v8999_v41 }
 0x64e   : > { %v9001_v60 = vpop.permute.xlu0 %6101 }
 0x64f   : > { %9986 = vst [vmem:[#allocation50_spill] sm:$0xff] %v9001_v60  ;;  %v9003_v4 = vpop.permute.xlu1 %6207 }
 0x650   : > { %9987 = vst [vmem:[#allocation51_spill] sm:$0xff] %v9003_v4 }
 0x652   : > { %v9005_v7 = vpop.permute.xlu0 %6189 }
 0x653   : > { %9988 = vst [vmem:[#allocation52_spill] sm:$0xff] %v9005_v7 }
 0x656   : > { %v9007_v18 = vpop.permute.xlu0 %6112 }
 0x657   : > { %9989 = vst [vmem:[#allocation53_spill] sm:$0xff] %v9007_v18 }
 0x65a   : > { %v9009_v49 = vpop.permute.xlu0 %6200 }
 0x65b   : > { %9990 = vst [vmem:[#allocation54_spill] sm:$0xff] %v9009_v49 }
 0x65e   : > { %v9011_v3 = vpop.permute.xlu0 %6123 }
 0x65f   : > { %9991 = vst [vmem:[#allocation55_spill] sm:$0xff] %v9011_v3 }
 0x67e   : > { %v4639_v46 = vpop.permute.xlu1 %4638 }
 0x682   : > { %v4645_v21 = vpop.permute.xlu1 %4644  ;;  %v9014_v60 = vpop.permute.xlu0 %4640 }
 0x683   : > { %v4724_v12 = vcombine.low %v8852_v15, %v4645_v21  ;;  %v4725_v51 = vcombine.high %v8852_v15, %v4645_v21 }
 0x685   : > { %v4732_v18 = vrot.slane %v4724_v12, %v8175_v36 }
 0x686   : > { %v4651_v6 = vpop.permute.xlu1 %4650  ;;  %v9020_v42 = vpop.permute.xlu0 %4646 }
 0x687   : > { %v4740_v56 = vcombine.low %v4639_v46, %v4651_v6  ;;  %v4741_v5 = vcombine.high %v4639_v46, %v4651_v6 }
 0x689   : > { %v4748_v4 = vrot.slane %v4740_v56, %v8175_v36 }
 0x68a   : > { %v4657_v63 = vpop.permute.xlu1 %4656  ;;  %v9037_v46 = vpop.permute.xlu0 %4652 }
 0x68b   : > { %v4788_v41 = vcombine.low %v4732_v18, %v4748_v4  ;;  %v4789_v56 = vcombine.high %v4732_v18, %v4748_v4  ;;  %v5013_v52 = vcombine.high %v9014_v60, %v9037_v46 }
 0x68d   : > { %v4796_v53 = vrot.slane %v4788_v41, %v8178_v37  ;;  %v4803_v15 = vrot.slane %v4789_v56, %v8178_v37  ;;  %v4739_v41 = vrot.slane %v4725_v51, %v8175_v36 }
 0x68e   : > { %v4663_v9 = vpop.permute.xlu1 %4662  ;;  %v9052_v21 = vpop.permute.xlu0 %4658 }
 0x692   : > { %v4669_v14 = vpop.permute.xlu1 %4668  ;;  %v9059_v50 = vpop.permute.xlu0 %4664 }
 0x693   : > { %v4756_v7 = vcombine.low %v4657_v63, %v4669_v14  ;;  %v4757_v58 = vcombine.high %v4657_v63, %v4669_v14 }
 0x695   : > { %v4764_v49 = vrot.slane %v4756_v7, %v8175_v36  ;;  %v4771_v6 = vrot.slane %v4757_v58, %v8175_v36 }
 0x696   : > { %v4675_v2 = vpop.permute.xlu1 %4674  ;;  %v9075_v10 = vpop.permute.xlu0 %4670 }
 0x697   : > { %v4772_v59 = vcombine.low %v4663_v9, %v4675_v2  ;;  %v4773_v23 = vcombine.high %v4663_v9, %v4675_v2  ;;  %v4755_v2 = vrot.slane %v4741_v5, %v8175_v36  ;;  %v5028_v28 = vcombine.low %v9052_v21, %v9075_v10 }
 0x699   : > { %v4780_v3 = vrot.slane %v4772_v59, %v8175_v36  ;;  %v4787_v12 = vrot.slane %v4773_v23, %v8175_v36  ;;  %v4805_v11 = vcombine.high %v4739_v41, %v4755_v2 }
 0x69a   : > { %v9022_v20 = vpop.permute.xlu1 %4682 }
 0x69b   : > { %v4820_v33 = vcombine.low %v4764_v49, %v4780_v3  ;;  %v4821_v61 = vcombine.high %v4764_v49, %v4780_v3  ;;  %v4836_v4 = vcombine.low %v4771_v6, %v4787_v12  ;;  %v4837_v56 = vcombine.high %v4771_v6, %v4787_v12 }
 0x69d   : > { %v4828_v7 = vrot.slane %v4820_v33, %v8178_v37  ;;  %v4835_v59 = vrot.slane %v4821_v61, %v8178_v37  ;;  %v4844_v51 = vrot.slane %v4836_v4, %v8178_v37 }
 0x69e   : > { %v9028_v9 = vpop.permute.xlu1 %4688 }
 0x69f   : > { %v9033_v63 = vcombine.high %v4796_v53, %v4828_v7  ;;  %v9035_v49 = vcombine.low %v4796_v53, %v4828_v7  ;;  %v9045_v5 = vcombine.low %v4803_v15, %v4835_v59  ;;  %v4804_v53 = vcombine.low %v4739_v41, %v4755_v2 }
 0x6a0   : > { %v9049_v18 = vcombine.high %v4803_v15, %v4835_v59  ;;  %v4860_v12 = vcombine.low %v8857_v40, %v9028_v9 }
 0x6a1   : > { %v5274_v33 = vsel %vm2232_vm11, %v9033_v63, -inf  ;;  %v5268_v61 = vsel %vm2232_vm11, %v9035_v49, -inf  ;;  %v5280_v14 = vsel %vm2232_vm11, %v9045_v5, -inf  ;;  %v4812_v3 = vrot.slane %v4804_v53, %v8178_v37 }
 0x6a2   : > { %5275 = vmax.xlane.f32.xlu0 %v5274_v33  ;;  %5269 = vmax.xlane.f32.xlu1 %v5268_v61  ;;  %v4695_v58 = vpop.permute.xlu1 %4694  ;;  %v5286_v7 = vsel %vm2232_vm11, %v9049_v18, -inf  ;;  %v4851_v53 = vrot.slane %v4837_v56, %v8178_v37 }
 0x6a3   : > { %v9057_v33 = vcombine.low %v4812_v3, %v4844_v51  ;;  %v4876_v59 = vcombine.low %v9022_v20, %v4695_v58  ;;  %v9064_v4 = vcombine.high %v4812_v3, %v4844_v51  ;;  %v4868_v51 = vrot.slane %v4860_v12, %v8175_v36 }
 0x6a4   : > { %v4877_v24 = vcombine.high %v9022_v20, %v4695_v58 }
 0x6a5   : > { %v5292_v15 = vsel %vm2232_vm11, %v9057_v33, -inf  ;;  %v4884_v2 = vrot.slane %v4876_v59, %v8175_v36 }
 0x6a6   : > { %5281 = vmax.xlane.f32.xlu0 %v5280_v14  ;;  %v4701_v23 = vpop.permute.xlu1 %4700  ;;  %v4819_v14 = vrot.slane %v4805_v11, %v8178_v37  ;;  %v4891_v20 = vrot.slane %v4877_v24, %v8175_v36 }
 0x6a7   : > { %v4924_v0 = vcombine.low %v4868_v51, %v4884_v2  ;;  %v4925_v27 = vcombine.high %v4868_v51, %v4884_v2 }
 0x6a8   : > { %v9073_v35 = vcombine.low %v4819_v14, %v4851_v53 }
 0x6aa   : > { %5287 = vmax.xlane.f32.xlu0 %v5286_v7  ;;  %v4707_v61 = vpop.permute.xlu1 %4706  ;;  %v5298_v7 = vsel %vm2232_vm11, %v9064_v4, -inf  ;;  %v5304_v44 = vsel %vm2232_vm11, %v9073_v35, -inf }
 0x6ae   : > { %5293 = vmax.xlane.f32.xlu0 %v5292_v15  ;;  %v4713_v6 = vpop.permute.xlu1 %4712  ;;  %v9078_v15 = vcombine.high %v4819_v14, %v4851_v53  ;;  %v4861_v53 = vcombine.high %v8857_v40, %v9028_v9  ;;  %v4939_v40 = vrot.slane %v4925_v27, %v8178_v37  ;;  %v5862_v27 = vsel %vm5830_vm4, %v9033_v63, 0.0 }
 0x6af   : > { %v4892_v41 = vcombine.low %v4701_v23, %v4713_v6  ;;  %v4893_v13 = vcombine.high %v4701_v23, %v4713_v6  ;;  %v5898_v51 = vsel %vm2232_vm11, %v5862_v27, 0.0  ;;  %vm5843_vm4 = vcmp.eq.s32.totalorder %v8093_v57, %v8931_v30 }
 0x6b1   : > { %v4900_v11 = vrot.slane %v4892_v41, %v8175_v36  ;;  %v4932_v41 = vrot.slane %v4924_v0, %v8178_v37  ;;  %v4907_v58 = vrot.slane %v4893_v13, %v8175_v36  ;;  %v4875_v0 = vrot.slane %v4861_v53, %v8175_v36 }
 0x6b2   : > { %v4719_v3 = vpop.permute.xlu1 %4718  ;;  %5299 = vmax.xlane.f32.xlu0 %v5298_v7  ;;  %v9085_v7 = vpop.permute.xlu0 %4676 }
 0x6b3   : > { %v4908_v56 = vcombine.low %v4707_v61, %v4719_v3  ;;  %v4909_v47 = vcombine.high %v4707_v61, %v4719_v3  ;;  %v5310_v61 = vsel %vm2232_vm11, %v9078_v15, -inf  ;;  %v4940_v2 = vcombine.low %v4875_v0, %v4891_v20 }
 0x6b4   : > { %v5044_v45 = vcombine.low %v9059_v50, %v9085_v7  ;;  %v5045_v54 = vcombine.high %v9059_v50, %v9085_v7  ;;  %v4997_v7 = vcombine.high %v8870_v8, %v9020_v42 }
 0x6b5   : > { %v4916_v59 = vrot.slane %v4908_v56, %v8175_v36  ;;  %v4923_v14 = vrot.slane %v4909_v47, %v8175_v36 }
 0x6b6   : > { %5305 = vmax.xlane.f32.xlu0 %v5304_v44  ;;  %v9111_v13 = vpop.permute.xlu0 %4684 }
 0x6b7   : > { %v4956_v12 = vcombine.low %v4900_v11, %v4916_v59  ;;  %v4957_v55 = vcombine.high %v4900_v11, %v4916_v59  ;;  %v4972_v47 = vcombine.low %v4907_v58, %v4923_v14  ;;  %v5864_v59 = vsel %vm5832_vm5, %v9045_v5, 0.0 }
 0x6b8   : > { %v4973_v38 = vcombine.high %v4907_v58, %v4923_v14  ;;  %vm5844_vm5 = vcmp.eq.s32.totalorder %v8093_v57, %v8806_v48 }
 0x6b9   : > { %v4964_v3 = vrot.slane %v4956_v12, %v8178_v37  ;;  %v4971_v44 = vrot.slane %v4957_v55, %v8178_v37  ;;  %v4980_v11 = vrot.slane %v4972_v47, %v8178_v37  ;;  %v4948_v12 = vrot.slane %v4940_v2, %v8178_v37 }
 0x6ba   : > { %5311 = vmax.xlane.f32.xlu0 %v5310_v61  ;;  %v9126_v53 = vpop.permute.xlu0 %4690  ;;  %v4987_v47 = vrot.slane %v4973_v38, %v8178_v37 }
 0x6bb   : > { %v9097_v23 = vcombine.high %v4932_v41, %v4964_v3  ;;  %v9099_v6 = vcombine.low %v4932_v41, %v4964_v3  ;;  %v9109_v9 = vcombine.low %v4939_v40, %v4971_v44  ;;  %v9119_v56 = vcombine.high %v4939_v40, %v4971_v44 }
 0x6bc   : > { %v5904_v41 = vsel %vm2232_vm11, %v5864_v59, 0.0  ;;  %v9131_v3 = vcombine.low %v4948_v12, %v4980_v11  ;;  %v5866_v44 = vsel %vm5834_vm6, %v9049_v18, 0.0  ;;  %v4941_v40 = vcombine.high %v4875_v0, %v4891_v20 }
 0x6bd   : > { %v5277_v55 = vsel %vm2232_vm11, %v9097_v23, -inf  ;;  %v5271_v24 = vsel %vm2232_vm11, %v9099_v6, -inf  ;;  %v5283_v31 = vsel %vm2232_vm11, %v9109_v9, -inf  ;;  %v5289_v61 = vsel %vm2232_vm11, %v9119_v56, -inf }
 0x6be   : > { %5278 = vmax.xlane.f32.xlu1 %v5277_v55  ;;  %5272 = vmax.xlane.f32.xlu0 %v5271_v24  ;;  %v5295_v62 = vsel %vm2232_vm11, %v9131_v3, -inf  ;;  %v5910_v14 = vsel %vm2232_vm11, %v5866_v44, 0.0  ;;  %v9139_v58 = vcombine.high %v4948_v12, %v4980_v11  ;;  %v9142_v55 = vpop.permute.xlu0 %4696  ;;  %v5868_v24 = vsel %vm5836_vm8, %v9057_v33, 0.0 }
 0x6bf   : > { %v4955_v20 = vrot.slane %v4941_v40, %v8178_v37  ;;  %v5916_v27 = vsel %vm2232_vm11, %v5868_v24, 0.0  ;;  %v4996_v11 = vcombine.low %v8870_v8, %v9020_v42  ;;  %v5052_v12 = vrot.slane %v5044_v45, %v8175_v36 }
 0x6c0   : > { %v5301_v0 = vsel %vm2232_vm11, %v9139_v58, -inf  ;;  %v5872_v44 = vsel %vm5840_vm7, %v9073_v35, 0.0  ;;  %v5036_v40 = vrot.slane %v5028_v28, %v8175_v36  ;;  %v5860_v45 = vsel %vm5828_vm12, %v9035_v49, 0.0 }
 0x6c1   : > { %v9153_v2 = vcombine.low %v4955_v20, %v4987_v47  ;;  %v5928_v24 = vsel %vm2232_vm11, %v5872_v44, 0.0  ;;  %v5892_v1 = vsel %vm2232_vm11, %v5860_v45, 0.0  ;;  %v5861_v28 = vsel %vm5829_vm13, %v9099_v6, 0.0 }
 0x6c2   : > { %5284 = vmax.xlane.f32.xlu1 %v5283_v31  ;;  %5899 = vadd.xlane.f32.xlu0 %v5898_v51  ;;  %v5870_v31 = vsel %vm5838_vm10, %v9064_v4, 0.0  ;;  %v5012_v51 = vcombine.low %v9014_v60, %v9037_v46  ;;  %v9164_v59 = vpop.permute.xlu0 %4702  ;;  %v5895_v44 = vsel %vm2232_vm11, %v5861_v28, 0.0  ;;  %v5867_v25 = vsel %vm5835_vm0, %v9119_v56, 0.0 }
 0x6c3   : > { %v5307_v38 = vsel %vm2232_vm11, %v9153_v2, -inf  ;;  %v5027_v8 = vrot.slane %v5013_v52, %v8175_v36  ;;  %v5148_v17 = vcombine.low %v9111_v13, %v9142_v55  ;;  %vm5846_vm6 = vcmp.eq.s32.totalorder %v8093_v57, %v8808_v32 }
 0x6c4   : > { %v5020_v29 = vrot.slane %v5012_v51, %v8175_v36  ;;  %v5863_v51 = vsel %vm5831_vm14, %v9097_v23, 0.0  ;;  %vm5848_vm8 = vcmp.eq.s32.totalorder %v8093_v57, %v8814_v19  ;;  %vm5850_vm10 = vcmp.eq.s32.totalorder %v8093_v57, %v8822_v43 }
 0x6c5   : > { %v5156_v22 = vrot.slane %v5148_v17, %v8175_v36 }
 0x6c6   : > { %5290 = vmax.xlane.f32.xlu1 %v5289_v61  ;;  %5905 = vadd.xlane.f32.xlu0 %v5904_v41  ;;  %v5922_v61 = vsel %vm2232_vm11, %v5870_v31, 0.0  ;;  %v9170_v41 = vcombine.high %v4955_v20, %v4987_v47  ;;  %v9183_v20 = vpop.permute.xlu0 %4708 }
 0x6c8   : > { %v5313_v47 = vsel %vm2232_vm11, %v9170_v41, -inf }
 0x6ca   : > { %5296 = vmax.xlane.f32.xlu1 %v5295_v62  ;;  %5911 = vadd.xlane.f32.xlu0 %v5910_v14  ;;  %v5004_v62 = vrot.slane %v4996_v11, %v8175_v36  ;;  %v5092_v14 = vcombine.low %v5036_v40, %v5052_v12  ;;  %v9201_v26 = vpop.permute.xlu0 %4714 }
 0x6cb   : > { %v5164_v28 = vcombine.low %v9164_v59, %v9201_v26 }
 0x6cc   : > { %v5060_v39 = vcombine.low %v5004_v62, %v5020_v29  ;;  %v5100_v31 = vrot.slane %v5092_v14, %v8178_v37  ;;  %v5061_v50 = vcombine.high %v5004_v62, %v5020_v29  ;;  %v5011_v29 = vrot.slane %v4997_v7, %v8175_v36 }
 0x6cd   : > { %v5172_v52 = vrot.slane %v5164_v28, %v8175_v36 }
 0x6ce   : > { %5302 = vmax.xlane.f32.xlu1 %v5301_v0  ;;  %5917 = vadd.xlane.f32.xlu0 %v5916_v27  ;;  %v5874_v0 = vsel %vm5842_vm9, %v9078_v15, 0.0  ;;  %v5068_v11 = vrot.slane %v5060_v39, %v8178_v37  ;;  %v9224_v46 = vpop.permute.xlu0 %4720  ;;  %v5075_v42 = vrot.slane %v5061_v50, %v8178_v37  ;;  %v5913_v39 = vsel %vm2232_vm11, %v5867_v25, 0.0 }
 0x6cf   : > { %v5934_v27 = vsel %vm2232_vm11, %v5874_v0, 0.0  ;;  %v5180_v0 = vcombine.low %v9183_v20, %v9224_v46  ;;  %v5181_v30 = vcombine.high %v9183_v20, %v9224_v46 }
 0x6d0   : > { %v9205_v14 = vcombine.low %v5068_v11, %v5100_v31 }
 0x6d2   : > { %5308 = vmax.xlane.f32.xlu1 %v5307_v38  ;;  %5923 = vadd.xlane.f32.xlu0 %v5922_v61  ;;  %v5093_v38 = vcombine.high %v5036_v40, %v5052_v12  ;;  %v5901_v61 = vsel %vm2232_vm11, %v5863_v51, 0.0  ;;  %v5059_v12 = vrot.slane %v5045_v54, %v8175_v36  ;;  %v5076_v51 = vcombine.low %v5011_v29, %v5027_v8 }
 0x6d4   : > { %v5107_v45 = vrot.slane %v5093_v38, %v8178_v37  ;;  %v5188_v38 = vrot.slane %v5180_v0, %v8175_v36  ;;  %v5084_v50 = vrot.slane %v5076_v51, %v8178_v37  ;;  %v5873_v0 = vsel %vm5841_vm1, %v9153_v2, 0.0 }
 0x6d6   : > { %5314 = vmax.xlane.f32.xlu1 %v5313_v47  ;;  %5929 = vadd.xlane.f32.xlu0 %v5928_v24  ;;  %v5029_v47 = vcombine.high %v9052_v21, %v9075_v10  ;;  %v5865_v24 = vsel %vm5833_vm15, %v9109_v9, 0.0  ;;  %v5316_v10 = vsel %vm2232_vm11, %v9205_v14, -inf  ;;  %v9220_v21 = vcombine.high %v5068_v11, %v5100_v31 }
 0x6d7   : > { %v5907_v40 = vsel %vm2232_vm11, %v5865_v24, 0.0  ;;  %v5869_v31 = vsel %vm5837_vm2, %v9131_v3, 0.0  ;;  %v5132_v11 = vcombine.low %v8873_v34, %v9126_v53  ;;  %v5871_v24 = vsel %vm5839_vm3, %v9139_v58, 0.0 }
 0x6d8   : > { %v5043_v60 = vrot.slane %v5029_v47, %v8175_v36  ;;  %v9253_v47 = vcombine.high %v5075_v42, %v5107_v45 }
 0x6da   : > { %5893 = vadd.xlane.f32.xlu1 %v5892_v1  ;;  %5935 = vadd.xlane.f32.xlu0 %v5934_v27  ;;  %v5108_v62 = vcombine.low %v5043_v60, %v5059_v12  ;;  %v5322_v1 = vsel %vm2232_vm11, %v9220_v21, -inf  ;;  %v9237_v27 = vcombine.low %v5075_v42, %v5107_v45  ;;  %v5109_v7 = vcombine.high %v5043_v60, %v5059_v12 }
 0x6db   : > { %v5925_v45 = vsel %vm2232_vm11, %v5871_v24, 0.0  ;;  %v5334_v25 = vsel %vm2232_vm11, %v9253_v47, -inf  ;;  %v5931_v12 = vsel %vm2232_vm11, %v5873_v0, 0.0 }
 0x6dc   : > { %v5116_v54 = vrot.slane %v5108_v62, %v8178_v37  ;;  %v5077_v62 = vcombine.high %v5011_v29, %v5027_v8  ;;  %v5123_v16 = vrot.slane %v5109_v7, %v8178_v37  ;;  %v5875_v8 = vsel %vm5843_vm4, %v9170_v41, 0.0 }
 0x6dd   : > { %v5133_v7 = vcombine.high %v8873_v34, %v9126_v53 }
 0x6de   : > { %5902 = vadd.xlane.f32.xlu1 %v5901_v61  ;;  %5896 = vadd.xlane.f32.xlu0 %v5895_v44  ;;  %v5919_v61 = vsel %vm2232_vm11, %v5869_v31, 0.0  ;;  %v5328_v44 = vsel %vm2232_vm11, %v9237_v27, -inf  ;;  %v9265_v42 = vcombine.low %v5084_v50, %v5116_v54  ;;  %v5091_v29 = vrot.slane %v5077_v62, %v8178_v37 }
 0x6e0   : > { %v5340_v60 = vsel %vm2232_vm11, %v9265_v42, -inf  ;;  %v9282_v28 = vcombine.low %v5091_v29, %v5123_v16  ;;  %v9297_v46 = vcombine.high %v5091_v29, %v5123_v16  ;;  %v5878_v16 = vsel %vm5846_vm6, %v9220_v21, 0.0 }
 0x6e1   : > { %v5946_v32 = vsel %vm2232_vm11, %v5878_v16, 0.0  ;;  %v5880_v29 = vsel %vm5848_vm8, %v9237_v27, 0.0  ;;  %vm6414_vm6 = vcmask 130112   ;;  %vm6551_vm8 = vcmask 1041409  }
 0x6e2   : > { %5908 = vadd.xlane.f32.xlu1 %v5907_v40  ;;  %5317 = vmax.xlane.f32.xlu0 %v5316_v10  ;;  %v5140_v40 = vrot.slane %v5132_v11, %v8175_v36  ;;  %v5228_v10 = vcombine.low %v5172_v52, %v5188_v38  ;;  %v5229_v11 = vcombine.high %v5172_v52, %v5188_v38  ;;  %v5352_v20 = vsel %vm2232_vm11, %v9282_v28, -inf }
 0x6e3   : > { %v5195_v38 = vrot.slane %v5181_v30, %v8175_v36 }
 0x6e4   : > { %v5236_v31 = vrot.slane %v5228_v10, %v8178_v37  ;;  %v5197_v24 = vcombine.high %v5140_v40, %v5156_v22 }
 0x6e6   : > { %5914 = vadd.xlane.f32.xlu1 %v5913_v39  ;;  %5323 = vmax.xlane.f32.xlu0 %v5322_v1  ;;  %v5196_v39 = vcombine.low %v5140_v40, %v5156_v22  ;;  %v9268_v1 = vcombine.high %v5084_v50, %v5116_v54  ;;  %v5937_v54 = vsel %vm2232_vm11, %v5875_v8, 0.0  ;;  %v5165_v50 = vcombine.high %v9164_v59, %v9201_v26 }
 0x6e7   : > { %v5211_v53 = vrot.slane %v5197_v24, %v8178_v37  ;;  %v5147_v59 = vrot.slane %v5133_v7, %v8175_v36  ;;  %v5358_v22 = vsel %vm2232_vm11, %v9297_v46, -inf  ;;  %v9992_v24 = vld [vmem:[#allocation15_spill] sm:$0xff] }
 0x6e8   : > { %v5204_v51 = vrot.slane %v5196_v39, %v8178_v37  ;;  %v5346_v17 = vsel %vm2232_vm11, %v9268_v1, -inf  ;;  %v5179_v34 = vrot.slane %v5165_v50, %v8175_v36  ;;  %vm5852_vm7 = vcmp.eq.s32.totalorder %v8093_v57, %v9992_v24 }
 0x6ea   : > { %5920 = vadd.xlane.f32.xlu1 %v5919_v61  ;;  %5329 = vmax.xlane.f32.xlu0 %v5328_v44  ;;  %v9287_v61 = vcombine.low %v5204_v51, %v5236_v31  ;;  %v5149_v44 = vcombine.high %v9111_v13, %v9142_v55  ;;  %v9302_v10 = vcombine.high %v5204_v51, %v5236_v31 }
 0x6eb   : > { %v5243_v13 = vrot.slane %v5229_v11, %v8178_v37  ;;  %v5244_v26 = vcombine.low %v5179_v34, %v5195_v38 }
 0x6ec   : > { %v5319_v52 = vsel %vm2232_vm11, %v9287_v61, -inf  ;;  %v5163_v55 = vrot.slane %v5149_v44, %v8175_v36  ;;  %v5325_v40 = vsel %vm2232_vm11, %v9302_v10, -inf }
 0x6ed   : > { %v9323_v0 = vcombine.high %v5211_v53, %v5243_v13  ;;  %v5252_v39 = vrot.slane %v5244_v26, %v8178_v37 }
 0x6ee   : > { %5926 = vadd.xlane.f32.xlu1 %v5925_v45  ;;  %5335 = vmax.xlane.f32.xlu0 %v5334_v25  ;;  %v9315_v45 = vcombine.low %v5211_v53, %v5243_v13  ;;  %v5876_v25 = vsel %vm5844_vm5, %v9205_v14, 0.0  ;;  %v5212_v62 = vcombine.low %v5147_v59, %v5163_v55  ;;  %v5213_v51 = vcombine.high %v5147_v59, %v5163_v55  ;;  %v9995_v53 = vld [vmem:[#allocation19_spill] sm:$0xff] }
 0x6ef   : > { %v5940_v48 = vsel %vm2232_vm11, %v5876_v25, 0.0  ;;  %v5337_v31 = vsel %vm2232_vm11, %v9323_v0, -inf  ;;  %vm5856_vm13 = vcmp.eq.s32.totalorder %v8093_v57, %v9995_v53  ;;  %v9996_v25 = vld [vmem:[#allocation14_spill] sm:$0xff]  ;;  %v10003_v53 = vld [vmem:[#allocation28_spill] sm:$0xff] }
 0x6f0   : > { %v5331_v36 = vsel %vm2232_vm11, %v9315_v45, -inf  ;;  %v5227_v44 = vrot.slane %v5213_v51, %v8178_v37  ;;  %vm5847_vm14 = vcmp.eq.s32.totalorder %v8093_v57, %v9996_v25  ;;  %vm5859_vm5 = vcmp.eq.s32.totalorder %v8093_v57, %v10003_v53 }
 0x6f1   : > { %v5879_v16 = vsel %vm5847_vm14, %v9302_v10, 0.0  ;;  %vm6563_vm14 = vcmask 1047559  }
 0x6f2   : > { %5932 = vadd.xlane.f32.xlu1 %v5931_v12  ;;  %5341 = vmax.xlane.f32.xlu0 %v5340_v60  ;;  %v5220_v12 = vrot.slane %v5212_v62, %v8178_v37  ;;  %v5245_v60 = vcombine.high %v5179_v34, %v5195_v38  ;;  %v9993_v38 = vld [vmem:[#allocation17_spill] sm:$0xff] }
 0x6f3   : > { %vm5854_vm12 = vcmp.eq.s32.totalorder %v8093_v57, %v9993_v38  ;;  %v9994_v34 = vld [vmem:[#allocation13_spill] sm:$0xff] }
 0x6f4   : > { %v9333_v8 = vcombine.low %v5220_v12, %v5252_v39  ;;  %v9341_v30 = vcombine.high %v5220_v12, %v5252_v39  ;;  %v5259_v11 = vrot.slane %v5245_v60, %v8178_v37  ;;  %v5886_v55 = vsel %vm5854_vm12, %v9268_v1, 0.0  ;;  %v9997_v62 = vld [vmem:[#allocation21_spill] sm:$0xff]  ;;  %v9998_v12 = vld [vmem:[#allocation16_spill] sm:$0xff] }
 0x6f5   : > { %vm5845_vm9 = vcmp.eq.s32.totalorder %v8093_v57, %v9994_v34  ;;  %v5970_v59 = vsel %vm2232_vm11, %v5886_v55, 0.0  ;;  %vm5858_vm15 = vcmp.eq.s32.totalorder %v8093_v57, %v9997_v62  ;;  %vm5849_vm0 = vcmp.eq.s32.totalorder %v8093_v57, %v9998_v12 }
 0x6f6   : > { %5938 = vadd.xlane.f32.xlu1 %v5937_v54  ;;  %5347 = vmax.xlane.f32.xlu0 %v5346_v17  ;;  %v5952_v17 = vsel %vm2232_vm11, %v5880_v29, 0.0  ;;  %v5343_v19 = vsel %vm2232_vm11, %v9333_v8, -inf  ;;  %v5882_v54 = vsel %vm5850_vm10, %v9253_v47, 0.0  ;;  %v5349_v50 = vsel %vm2232_vm11, %v9341_v30, -inf  ;;  %v9999_v29 = vld [vmem:[#allocation18_spill] sm:$0xff] }
 0x6f7   : > { %v5958_v43 = vsel %vm2232_vm11, %v5882_v54, 0.0  ;;  %v9351_v7 = vcombine.low %v5227_v44, %v5259_v11  ;;  %v9359_v13 = vcombine.high %v5227_v44, %v5259_v11  ;;  %v5890_v39 = vsel %vm5858_vm15, %v9297_v46, 0.0  ;;  %v10001_v44 = vld [vmem:[#allocation22_spill] sm:$0xff] }
 0x6f8   : > { %v5982_v60 = vsel %vm2232_vm11, %v5890_v39, 0.0  ;;  %vm5851_vm2 = vcmp.eq.s32.totalorder %v8093_v57, %v9999_v29  ;;  %vm5855_vm1 = vcmp.eq.s32.totalorder %v8093_v57, %v10001_v44  ;;  %vm6553_vm10 = vcmask 1042434  }
 0x6f9   : > { %v5355_v37 = vsel %vm2232_vm11, %v9351_v7, -inf  ;;  %v5361_v26 = vsel %vm2232_vm11, %v9359_v13, -inf  ;;  %vm6557_vm12 = vcmask 1044484   ;;  %vm1549_vm15 = vcmask 0  }
 0x6fa   : > { %5353 = vmax.xlane.f32.xlu0 %v5352_v20  ;;  %5320 = vmax.xlane.f32.xlu1 %v5319_v52  ;;  %v5884_v20 = vsel %vm5852_vm7, %v9265_v42, 0.0  ;;  %vm6555_vm7 = vcmask 1043459  }
 0x6fb   : > { %v5964_v52 = vsel %vm2232_vm11, %v5884_v20, 0.0 }
 0x6fe   : > { %5359 = vmax.xlane.f32.xlu0 %v5358_v22  ;;  %5326 = vmax.xlane.f32.xlu1 %v5325_v40  ;;  %v5888_v22 = vsel %vm5856_vm13, %v9282_v28, 0.0  ;;  %v5877_v40 = vsel %vm5845_vm9, %v9287_v61, 0.0  ;;  %vm6559_vm9 = vcmask 1045509   ;;  %vm6561_vm13 = vcmask 1046534  }
 0x702   : > { %5941 = vadd.xlane.f32.xlu0 %v5940_v48  ;;  %5332 = vmax.xlane.f32.xlu1 %v5331_v36  ;;  %v5976_v48 = vsel %vm2232_vm11, %v5888_v22, 0.0  ;;  %v5943_v36 = vsel %vm2232_vm11, %v5877_v40, 0.0  ;;  %v5891_v40 = vsel %vm5859_vm5, %v9359_v13, 0.0 }
 0x706   : > { %5947 = vadd.xlane.f32.xlu0 %v5946_v32  ;;  %5338 = vmax.xlane.f32.xlu1 %v5337_v31  ;;  %v5949_v32 = vsel %vm2232_vm11, %v5879_v16, 0.0  ;;  %v5881_v31 = vsel %vm5849_vm0, %v9315_v45, 0.0 }
 0x707   : > { %v5955_v51 = vsel %vm2232_vm11, %v5881_v31, 0.0 }
 0x70a   : > { %5953 = vadd.xlane.f32.xlu0 %v5952_v17  ;;  %5344 = vmax.xlane.f32.xlu1 %v5343_v19  ;;  %v5883_v17 = vsel %vm5851_vm2, %v9323_v0, 0.0  ;;  %v10000_v19 = vld [vmem:[#allocation20_spill] sm:$0xff] }
 0x70b   : > { %vm5853_vm3 = vcmp.eq.s32.totalorder %v8093_v57, %v10000_v19  ;;  %v5961_v11 = vsel %vm2232_vm11, %v5883_v17, 0.0 }
 0x70c   : > { %v5885_v54 = vsel %vm5853_vm3, %v9333_v8, 0.0 }
 0x70d   : > { %v5967_v24 = vsel %vm2232_vm11, %v5885_v54, 0.0 }
 0x70e   : > { %5959 = vadd.xlane.f32.xlu0 %v5958_v43  ;;  %5350 = vmax.xlane.f32.xlu1 %v5349_v50  ;;  %v5887_v43 = vsel %vm5855_vm1, %v9341_v30, 0.0  ;;  %v10002_v50 = vld [vmem:[#allocation25_spill] sm:$0xff] }
 0x70f   : > { %vm5857_vm4 = vcmp.eq.s32.totalorder %v8093_v57, %v10002_v50  ;;  %v5973_v20 = vsel %vm2232_vm11, %v5887_v43, 0.0 }
 0x710   : > { %v5889_v38 = vsel %vm5857_vm4, %v9351_v7, 0.0 }
 0x712   : > { %5965 = vadd.xlane.f32.xlu0 %v5964_v52  ;;  %5356 = vmax.xlane.f32.xlu1 %v5355_v37 }
 0x716   : > { %5971 = vadd.xlane.f32.xlu0 %v5970_v59  ;;  %5362 = vmax.xlane.f32.xlu1 %v5361_v26  ;;  %v5979_v59 = vsel %vm2232_vm11, %v5889_v38, 0.0 }
 0x71a   : > { %5977 = vadd.xlane.f32.xlu0 %v5976_v48  ;;  %5944 = vadd.xlane.f32.xlu1 %v5943_v36 }
 0x71e   : > { %5983 = vadd.xlane.f32.xlu0 %v5982_v60  ;;  %5950 = vadd.xlane.f32.xlu1 %v5949_v32 }
 0x722   : > { %5956 = vadd.xlane.f32.xlu1 %v5955_v51 }
 0x726   : > { %5962 = vadd.xlane.f32.xlu1 %v5961_v11 }
 0x72a   : > { %5968 = vadd.xlane.f32.xlu1 %v5967_v24 }
 0x72e   : > { %5974 = vadd.xlane.f32.xlu1 %v5973_v20 }
 0x72f   : > { %v9400_v52 = vpop.xlane.xlu1 %5269  ;;  %v9402_v37 = vpop.xlane.xlu0 %5275 }
 0x730   : > { %v5364_v55 = vsub.f32 %v9035_v49, %v9400_v52  ;;  %v5366_v34 = vsub.f32 %v9033_v63, %v9402_v37  ;;  %v5985_v49 = vsel %vm2232_vm11, %v5891_v40, 0.0 }
 0x732   : > { %v5396_v26 = vmul.f32 1.442695, %v5364_v55  ;;  %v5400_v22 = vmul.f32 1.442695, %v5366_v34  ;;  %5980 = vadd.xlane.f32.xlu1 %v5979_v59 }
 0x733   : > { %v9412_v25 = vpop.xlane.xlu0 %5281 }
 0x734   : > { %7572 = vpow2.f32 %v5396_v26  ;;  %v5368_v62 = vsub.f32 %v9045_v5, %v9412_v25 }
 0x735   : > { %7574 = vpow2.f32 %v5400_v22 }
 0x736   : > { %v5404_v63 = vmul.f32 1.442695, %v5368_v62  ;;  %5986 = vadd.xlane.f32.xlu1 %v5985_v49 }
 0x737   : > { %v9417_v48 = vpop.xlane.xlu0 %5287 }
 0x738   : > { %v5370_v36 = vsub.f32 %v9049_v18, %v9417_v48  ;;  %7576 = vpow2.f32 %v5404_v63 }
 0x73a   : > { %v5408_v39 = vmul.f32 1.442695, %v5370_v36 }
 0x73b   : > { %v9421_v16 = vpop.xlane.xlu0 %5293 }
 0x73c   : > { %v5372_v12 = vsub.f32 %v9057_v33, %v9421_v16  ;;  %7578 = vpow2.f32 %v5408_v39 }
 0x73e   : > { %v7573_v60 = vpop.eup %7572  ;;  %v5412_v5 = vmul.f32 1.442695, %v5372_v12 }
 0x73f   : > { %v9425_v32 = vpop.xlane.xlu0 %5299  ;;  %v5460_v31 = vsel %vm2232_vm11, %v7573_v60, 0.0  ;;  %v7575_v29 = vpop.eup %7574 }
 0x740   : > { %v5374_v51 = vsub.f32 %v9064_v4, %v9425_v32  ;;  %5461 = vadd.xlane.f32.xlu0 %v5460_v31  ;;  %7580 = vpow2.f32 %v5412_v5  ;;  %v5466_v19 = vsel %vm2232_vm11, %v7575_v29, 0.0 }
 0x742   : > { %v5416_v18 = vmul.f32 1.442695, %v5374_v51  ;;  %v7577_v11 = vpop.eup %7576 }
 0x743   : > { %v9430_v17 = vpop.xlane.xlu0 %5305  ;;  %v5472_v24 = vsel %vm2232_vm11, %v7577_v11, 0.0 }
 0x744   : > { %v5376_v33 = vsub.f32 %v9073_v35, %v9430_v17  ;;  %5467 = vadd.xlane.f32.xlu0 %v5466_v19  ;;  %7582 = vpow2.f32 %v5416_v18 }
 0x746   : > { %v5420_v54 = vmul.f32 1.442695, %v5376_v33  ;;  %v7579_v43 = vpop.eup %7578 }
 0x747   : > { %v9435_v44 = vpop.xlane.xlu0 %5311  ;;  %v5478_v35 = vsel %vm2232_vm11, %v7579_v43, 0.0 }
 0x748   : > { %v5378_v4 = vsub.f32 %v9078_v15, %v9435_v44  ;;  %5473 = vadd.xlane.f32.xlu0 %v5472_v24  ;;  %7584 = vpow2.f32 %v5420_v54 }
 0x74a   : > { %v5424_v50 = vmul.f32 1.442695, %v5378_v4  ;;  %v7581_v55 = vpop.eup %7580 }
 0x74b   : > { %v9440_v20 = vpop.xlane.xlu1 %5278  ;;  %v9442_v38 = vpop.xlane.xlu0 %5272  ;;  %v5484_v40 = vsel %vm2232_vm11, %v7581_v55, 0.0 }
 0x74c   : > { %v5367_v34 = vsub.f32 %v9097_v23, %v9440_v20  ;;  %v5365_v53 = vsub.f32 %v9099_v6, %v9442_v38  ;;  %5479 = vadd.xlane.f32.xlu0 %v5478_v35  ;;  %7586 = vpow2.f32 %v5424_v50 }
 0x74e   : > { %v5398_v59 = vmul.f32 1.442695, %v5365_v53  ;;  %v5402_v15 = vmul.f32 1.442695, %v5367_v34  ;;  %v7583_v62 = vpop.eup %7582 }
 0x74f   : > { %v9449_v26 = vpop.xlane.xlu1 %5284  ;;  %v9451_v22 = vpop.xlane.xlu0 %5899  ;;  %v5490_v36 = vsel %vm2232_vm11, %v7583_v62, 0.0 }
 0x750   : > { %v5369_v49 = vsub.f32 %v9109_v9, %v9449_v26  ;;  %5485 = vadd.xlane.f32.xlu0 %v5484_v40  ;;  %7588 = vpow2.f32 %v5398_v59 }
 0x751   : > { %7590 = vpow2.f32 %v5402_v15 }
 0x752   : > { %v5406_v23 = vmul.f32 1.442695, %v5369_v49  ;;  %v7585_v39 = vpop.eup %7584 }
 0x753   : > { %v9456_v63 = vpop.xlane.xlu1 %5290  ;;  %v9458_v6 = vpop.xlane.xlu0 %5905  ;;  %v5496_v31 = vsel %vm2232_vm11, %v7585_v39, 0.0 }
 0x754   : > { %v5371_v12 = vsub.f32 %v9119_v56, %v9456_v63  ;;  %5491 = vadd.xlane.f32.xlu0 %v5490_v36  ;;  %7592 = vpow2.f32 %v5406_v23 }
 0x756   : > { %v5410_v60 = vmul.f32 1.442695, %v5371_v12  ;;  %v7587_v29 = vpop.eup %7586 }
 0x757   : > { %v9463_v5 = vpop.xlane.xlu1 %5296  ;;  %v9465_v9 = vpop.xlane.xlu0 %5911  ;;  %v5502_v33 = vsel %vm2232_vm11, %v7587_v29, 0.0 }
 0x758   : > { %v5373_v51 = vsub.f32 %v9131_v3, %v9463_v5  ;;  %5497 = vadd.xlane.f32.xlu0 %v5496_v31  ;;  %7594 = vpow2.f32 %v5410_v60 }
 0x75a   : > { %v7589_v18 = vpop.eup %7588  ;;  %v5414_v19 = vmul.f32 1.442695, %v5373_v51 }
 0x75b   : > { %v9470_v11 = vpop.xlane.xlu1 %5302  ;;  %v9472_v56 = vpop.xlane.xlu0 %5917  ;;  %v5463_v24 = vsel %vm2232_vm11, %v7589_v18, 0.0 }
 0x75c   : > { %v5375_v54 = vsub.f32 %v9139_v58, %v9470_v11  ;;  %5503 = vadd.xlane.f32.xlu0 %v5502_v33  ;;  %v7591_v43 = vpop.eup %7590  ;;  %5464 = vadd.xlane.f32.xlu1 %v5463_v24  ;;  %7596 = vpow2.f32 %v5414_v19 }
 0x75d   : > { %v5469_v55 = vsel %vm2232_vm11, %v7591_v43, 0.0 }
 0x75e   : > { %v5418_v3 = vmul.f32 1.442695, %v5375_v54  ;;  %v7593_v34 = vpop.eup %7592 }
 0x75f   : > { %v9478_v4 = vpop.xlane.xlu1 %5308  ;;  %v9480_v50 = vpop.xlane.xlu0 %5923  ;;  %v5475_v40 = vsel %vm2232_vm11, %v7593_v34, 0.0 }
 0x760   : > { %v5377_v35 = vsub.f32 %v9153_v2, %v9478_v4  ;;  %5470 = vadd.xlane.f32.xlu1 %v5469_v55  ;;  %7598 = vpow2.f32 %v5418_v3 }
 0x762   : > { %v5422_v58 = vmul.f32 1.442695, %v5377_v35  ;;  %v7595_v62 = vpop.eup %7594 }
 0x763   : > { %v9485_v53 = vpop.xlane.xlu1 %5314  ;;  %v9487_v59 = vpop.xlane.xlu0 %5929  ;;  %v5481_v36 = vsel %vm2232_vm11, %v7595_v62, 0.0 }
 0x764   : > { %v5379_v15 = vsub.f32 %v9170_v41, %v9485_v53  ;;  %5476 = vadd.xlane.f32.xlu1 %v5475_v40  ;;  %7600 = vpow2.f32 %v5422_v58 }
 0x766   : > { %v5426_v49 = vmul.f32 1.442695, %v5379_v15  ;;  %v7597_v39 = vpop.eup %7596 }
 0x767   : > { %v9492_v2 = vpop.xlane.xlu1 %5893  ;;  %v9494_v23 = vpop.xlane.xlu0 %5935  ;;  %v5487_v41 = vsel %vm2232_vm11, %v7597_v39, 0.0 }
 0x768   : > { %5482 = vadd.xlane.f32.xlu1 %v5481_v36  ;;  %7602 = vpow2.f32 %v5426_v49 }
 0x76a   : > { %v7599_v31 = vpop.eup %7598 }
 0x76b   : > { %v9497_v12 = vpop.xlane.xlu1 %5902  ;;  %v9499_v60 = vpop.xlane.xlu0 %5896  ;;  %v5493_v19 = vsel %vm2232_vm11, %v7599_v31, 0.0 }
 0x76c   : > { %5488 = vadd.xlane.f32.xlu1 %v5487_v41 }
 0x76e   : > { %v7601_v33 = vpop.eup %7600 }
 0x76f   : > { %v9502_v29 = vpop.xlane.xlu1 %5908  ;;  %v9504_v51 = vpop.xlane.xlu0 %5317  ;;  %v5499_v35 = vsel %vm2232_vm11, %v7601_v33, 0.0 }
 0x770   : > { %v5380_v18 = vsub.f32 %v9205_v14, %v9504_v51  ;;  %5494 = vadd.xlane.f32.xlu1 %v5493_v19 }
 0x772   : > { %v5428_v54 = vmul.f32 1.442695, %v5380_v18  ;;  %v7603_v55 = vpop.eup %7602 }
 0x773   : > { %v9509_v24 = vpop.xlane.xlu1 %5914  ;;  %v9511_v43 = vpop.xlane.xlu0 %5323  ;;  %v5505_v40 = vsel %vm2232_vm11, %v7603_v55, 0.0 }
 0x774   : > { %7604 = vpow2.f32 %v5428_v54  ;;  %v5382_v3 = vsub.f32 %v9220_v21, %v9511_v43  ;;  %5500 = vadd.xlane.f32.xlu1 %v5499_v35 }
 0x776   : > { %v5432_v34 = vmul.f32 1.442695, %v5382_v3 }
 0x777   : > { %v9516_v58 = vpop.xlane.xlu1 %5920  ;;  %v9518_v14 = vpop.xlane.xlu0 %5329 }
 0x778   : > { %7606 = vpow2.f32 %v5432_v34  ;;  %v5384_v15 = vsub.f32 %v9237_v27, %v9518_v14  ;;  %5506 = vadd.xlane.f32.xlu1 %v5505_v40 }
 0x77a   : > { %v5436_v62 = vmul.f32 1.442695, %v5384_v15 }
 0x77b   : > { %v9523_v49 = vpop.xlane.xlu1 %5926  ;;  %v9525_v21 = vpop.xlane.xlu0 %5335 }
 0x77c   : > { %7608 = vpow2.f32 %v5436_v62  ;;  %v5386_v36 = vsub.f32 %v9253_v47, %v9525_v21 }
 0x77e   : > { %v7605_v39 = vpop.eup %7604  ;;  %v5440_v41 = vmul.f32 1.442695, %v5386_v36 }
 0x77f   : > { %v9529_v31 = vpop.xlane.xlu1 %5932  ;;  %v9531_v18 = vpop.xlane.xlu0 %5341  ;;  %v5508_v27 = vsel %vm2232_vm11, %v7605_v39, 0.0 }
 0x780   : > { %7610 = vpow2.f32 %v5440_v41  ;;  %v5388_v19 = vsub.f32 %v9265_v42, %v9531_v18  ;;  %5509 = vadd.xlane.f32.xlu0 %v5508_v27 }
 0x782   : > { %v7607_v33 = vpop.eup %7606  ;;  %v5444_v54 = vmul.f32 1.442695, %v5388_v19 }
 0x783   : > { %v9536_v3 = vpop.xlane.xlu1 %5938  ;;  %v9538_v35 = vpop.xlane.xlu0 %5347  ;;  %v5514_v47 = vsel %vm2232_vm11, %v7607_v33, 0.0 }
 0x784   : > { %7612 = vpow2.f32 %v5444_v54  ;;  %v5390_v55 = vsub.f32 %v9268_v1, %v9538_v35  ;;  %5515 = vadd.xlane.f32.xlu0 %v5514_v47 }
 0x786   : > { %v7609_v34 = vpop.eup %7608  ;;  %v5448_v15 = vmul.f32 1.442695, %v5390_v55 }
 0x787   : > { %v9543_v40 = vpop.xlane.xlu1 %5320  ;;  %v9545_v62 = vpop.xlane.xlu0 %5353  ;;  %v5520_v42 = vsel %vm2232_vm11, %v7609_v34, 0.0 }
 0x788   : > { %7614 = vpow2.f32 %v5448_v15  ;;  %v5381_v36 = vsub.f32 %v9287_v61, %v9543_v40  ;;  %v5392_v39 = vsub.f32 %v9282_v28, %v9545_v62  ;;  %5521 = vadd.xlane.f32.xlu0 %v5520_v42 }
 0x78a   : > { %v7611_v41 = vpop.eup %7610  ;;  %v5430_v27 = vmul.f32 1.442695, %v5381_v36  ;;  %v5452_v1 = vmul.f32 1.442695, %v5392_v39 }
 0x78b   : > { %v9552_v19 = vpop.xlane.xlu1 %5326  ;;  %v9554_v33 = vpop.xlane.xlu0 %5359  ;;  %v5526_v54 = vsel %vm2232_vm11, %v7611_v41, 0.0 }
 0x78c   : > { %10004 = vst [vmem:[#allocation15_spill] sm:$0xff] %v9554_v33  ;;  %7616 = vpow2.f32 %v5430_v27  ;;  %v5383_v47 = vsub.f32 %v9302_v10, %v9552_v19  ;;  %v5394_v61 = vsub.f32 %v9297_v46, %v9554_v33  ;;  %5527 = vadd.xlane.f32.xlu0 %v5526_v54 }
 0x78d   : > { %7618 = vpow2.f32 %v5452_v1 }
 0x78e   : > { %v7613_v28 = vpop.eup %7612  ;;  %v5434_v55 = vmul.f32 1.442695, %v5383_v47  ;;  %v5456_v34 = vmul.f32 1.442695, %v5394_v61 }
 0x78f   : > { %v9561_v15 = vpop.xlane.xlu1 %5332  ;;  %v5532_v42 = vsel %vm2232_vm11, %v7613_v28, 0.0 }
 0x790   : > { %10005 = vst [vmem:[#allocation17_spill] sm:$0xff] %v9561_v15  ;;  %7620 = vpow2.f32 %v5434_v55  ;;  %v5385_v36 = vsub.f32 %v9315_v45, %v9561_v15  ;;  %5533 = vadd.xlane.f32.xlu0 %v5532_v42 }
 0x791   : > { %7622 = vpow2.f32 %v5456_v34 }
 0x792   : > { %v7615_v39 = vpop.eup %7614  ;;  %v5438_v10 = vmul.f32 1.442695, %v5385_v36 }
 0x793   : > { %v9566_v41 = vpop.xlane.xlu1 %5338  ;;  %v5538_v46 = vsel %vm2232_vm11, %v7615_v39, 0.0 }
 0x794   : > { %10006 = vst [vmem:[#allocation13_spill] sm:$0xff] %v9566_v41  ;;  %7624 = vpow2.f32 %v5438_v10  ;;  %v5387_v27 = vsub.f32 %v9323_v0, %v9566_v41  ;;  %5539 = vadd.xlane.f32.xlu0 %v5538_v46 }
 0x796   : > { %v7617_v1 = vpop.eup %7616  ;;  %v5442_v54 = vmul.f32 1.442695, %v5387_v27 }
 0x797   : > { %v7619_v47 = vpop.eup %7618  ;;  %v9571_v61 = vpop.xlane.xlu1 %5344  ;;  %v5511_v45 = vsel %vm2232_vm11, %v7617_v1, 0.0 }
 0x798   : > { %10007 = vst [vmem:[#allocation19_spill] sm:$0xff] %v9571_v61  ;;  %7626 = vpow2.f32 %v5442_v54  ;;  %v5389_v28 = vsub.f32 %v9333_v8, %v9571_v61  ;;  %5512 = vadd.xlane.f32.xlu1 %v5511_v45  ;;  %v5544_v55 = vsel %vm2232_vm11, %v7619_v47, 0.0  ;;  %v9583_v1 = vpop.xlane.xlu0 %5941 }
 0x799   : > { %5545 = vadd.xlane.f32.xlu0 %v5544_v55 }
 0x79a   : > { %v7621_v34 = vpop.eup %7620  ;;  %v5446_v42 = vmul.f32 1.442695, %v5389_v28 }
 0x79b   : > { %v7623_v36 = vpop.eup %7622  ;;  %v9577_v0 = vpop.xlane.xlu1 %5350  ;;  %v5517_v39 = vsel %vm2232_vm11, %v7621_v34, 0.0 }
 0x79c   : > { %10008 = vst [vmem:[#allocation14_spill] sm:$0xff] %v9577_v0  ;;  %7628 = vpow2.f32 %v5446_v42  ;;  %v5391_v10 = vsub.f32 %v9341_v30, %v9577_v0  ;;  %5518 = vadd.xlane.f32.xlu1 %v5517_v39  ;;  %v5550_v46 = vsel %vm2232_vm11, %v7623_v36, 0.0  ;;  %v9595_v36 = vpop.xlane.xlu0 %5947 }
 0x79d   : > { %5551 = vadd.xlane.f32.xlu0 %v5550_v46 }
 0x79e   : > { %v7625_v8 = vpop.eup %7624  ;;  %v5450_v27 = vmul.f32 1.442695, %v5391_v10 }
 0x79f   : > { %v9585_v54 = vpop.xlane.xlu1 %5356  ;;  %v5523_v47 = vsel %vm2232_vm11, %v7625_v8, 0.0 }
 0x7a0   : > { %10009 = vst [vmem:[#allocation21_spill] sm:$0xff] %v9585_v54  ;;  %7630 = vpow2.f32 %v5450_v27  ;;  %v5393_v45 = vsub.f32 %v9351_v7, %v9585_v54  ;;  %5524 = vadd.xlane.f32.xlu1 %v5523_v47  ;;  %v9598_v8 = vpop.xlane.xlu0 %5953 }
 0x7a2   : > { %v7627_v28 = vpop.eup %7626  ;;  %v5454_v55 = vmul.f32 1.442695, %v5393_v45 }
 0x7a3   : > { %v9590_v30 = vpop.xlane.xlu1 %5362  ;;  %v5529_v34 = vsel %vm2232_vm11, %v7627_v28, 0.0 }
 0x7a4   : > { %10010 = vst [vmem:[#allocation16_spill] sm:$0xff] %v9590_v30  ;;  %7632 = vpow2.f32 %v5454_v55  ;;  %v5395_v42 = vsub.f32 %v9359_v13, %v9590_v30  ;;  %5530 = vadd.xlane.f32.xlu1 %v5529_v34  ;;  %v9602_v13 = vpop.xlane.xlu0 %5959  ;;  %v10011_v34 = vld [vmem:[#allocation12_spill] sm:$0xff] }
 0x7a6   : > { %v7629_v39 = vpop.eup %7628  ;;  %v5458_v10 = vmul.f32 1.442695, %v5395_v42 }
 0x7a7   : > { %v5535_v46 = vsel %vm2232_vm11, %v7629_v39, 0.0  ;;  %v9608_v39 = vpop.xlane.xlu1 %5944 }
 0x7a8   : > { %7634 = vpow2.f32 %v5458_v10  ;;  %5536 = vadd.xlane.f32.xlu1 %v5535_v46  ;;  %v9606_v42 = vpop.xlane.xlu0 %5965 }
 0x7aa   : > { %v7631_v7 = vpop.eup %7630 }
 0x7ab   : > { %v5541_v27 = vsel %vm2232_vm11, %v7631_v7, 0.0  ;;  %v9612_v46 = vpop.xlane.xlu1 %5950 }
 0x7ac   : > { %5542 = vadd.xlane.f32.xlu1 %v5541_v27  ;;  %v9610_v10 = vpop.xlane.xlu0 %5971  ;;  %10012 = vst [vmem:[#allocation18_spill] sm:$0xff] %v9612_v46 }
 0x7ae   : > { %v7633_v47 = vpop.eup %7632 }
 0x7af   : > { %v5547_v45 = vsel %vm2232_vm11, %v7633_v47, 0.0  ;;  %v9616_v27 = vpop.xlane.xlu1 %5956 }
 0x7b0   : > { %5548 = vadd.xlane.f32.xlu1 %v5547_v45  ;;  %v9614_v7 = vpop.xlane.xlu0 %5977  ;;  %10013 = vst [vmem:[#allocation20_spill] sm:$0xff] %v9616_v27 }
 0x7b2   : > { %v7635_v28 = vpop.eup %7634 }
 0x7b3   : > { %v5553_v55 = vsel %vm2232_vm11, %v7635_v28, 0.0  ;;  %6211 = vbcast.lane.b32.xlu0 %v10011_v34, 264  ;;  %v9620_v57 = vpop.xlane.xlu1 %5962 }
 0x7b4   : > { %5554 = vadd.xlane.f32.xlu1 %v5553_v55  ;;  %v9618_v47 = vpop.xlane.xlu0 %5983  ;;  %10015 = vst [vmem:[#allocation25_spill] sm:$0xff] %v9620_v57 }
 0x7b5   : > { %10014 = vst [vmem:[#allocation22_spill] sm:$0xff] %v9618_v47 }
 0x7b7   : > { %v9622_v55 = vpop.xlane.xlu1 %5968 }
 0x7b8   : > { %10016 = vst [vmem:[#allocation28_spill] sm:$0xff] %v9622_v55 }
 0x7bb   : > { %v9624_v61 = vpop.xlane.xlu1 %5974 }
 0x7cd   : > { %v5462_v45 = vpop.xlane.xlu0 %5461 }
 0x7ce   : > { %7636 = vlog2.f32 %v5462_v45 }
 0x7d1   : > { %v5468_v28 = vpop.xlane.xlu0 %5467 }
 0x7d2   : > { %7638 = vlog2.f32 %v5468_v28  ;;  %v10017_v28 = vld [vmem:[#allocation30_spill] sm:$0xff] }
 0x7d5   : > { %v5474_v34 = vpop.xlane.xlu0 %5473 }
 0x7d6   : > { %7640 = vlog2.f32 %v5474_v34  ;;  %v9630_v34 = vpop.xlane.xlu1 %5980 }
 0x7d8   : > { %v7637_v30 = vpop.eup %7636 }
 0x7d9   : > { %v5557_v54 = vmul.f32 0.6931472, %v7637_v30  ;;  %v5480_v0 = vpop.xlane.xlu0 %5479 }
 0x7da   : > { %7642 = vlog2.f32 %v5480_v0 }
 0x7db   : > { %v5620_v41 = vadd.f32 %v5557_v54, %v9400_v52  ;;  %v10018_v54 = vld [vmem:[#allocation24_spill] sm:$0xff] }
 0x7dc   : > { %v7639_v27 = vpop.eup %7638 }
 0x7dd   : > { %v6003_v15 = vsub.f32 %v5620_v41, %v9492_v2  ;;  %v5561_v47 = vmul.f32 0.6931472, %v7639_v27  ;;  %v5486_v57 = vpop.xlane.xlu0 %5485 }
 0x7de   : > { %7644 = vlog2.f32 %v5486_v57 }
 0x7df   : > { %v5622_v45 = vadd.f32 %v5561_v47, %v9402_v37  ;;  %v6245_v55 = vmul.f32 %v10017_v28, %v6003_v15  ;;  %v9636_v15 = vpop.xlane.xlu1 %5986 }
 0x7e0   : > { %v7641_v46 = vpop.eup %7640 }
 0x7e1   : > { %v6005_v30 = vsub.f32 %v5622_v45, %v9451_v22  ;;  %v5565_v33 = vmul.f32 0.6931472, %v7641_v46  ;;  %6310 = vperm.xlu1 %7566, %v6245_v55   ;;  %v5492_v0 = vpop.xlane.xlu0 %5491  ;;  %v10019_v22 = vld [vmem:[#allocation29_spill] sm:$0xff] }
 0x7e2   : > { %7646 = vlog2.f32 %v5492_v0 }
 0x7e3   : > { %v5624_v52 = vadd.f32 %v5565_v33, %v9412_v25  ;;  %v6247_v2 = vmul.f32 %v10018_v54, %v6005_v30  ;;  %v10020_v30 = vld [vmem:[#allocation33_spill] sm:$0xff] }
 0x7e4   : > { %v7643_v41 = vpop.eup %7642 }
 0x7e5   : > { %v6007_v57 = vsub.f32 %v5624_v52, %v9458_v6  ;;  %v5569_v27 = vmul.f32 0.6931472, %v7643_v41  ;;  %6316 = vperm.xlu1 %7566, %v6247_v2   ;;  %v5498_v37 = vpop.xlane.xlu0 %5497 }
 0x7e6   : > { %7648 = vlog2.f32 %v5498_v37 }
 0x7e7   : > { %v5626_v47 = vadd.f32 %v5569_v27, %v9417_v48  ;;  %v6249_v46 = vmul.f32 %v10019_v22, %v6007_v57 }
 0x7e8   : > { %v7645_v55 = vpop.eup %7644 }
 0x7e9   : > { %v6009_v45 = vsub.f32 %v5626_v47, %v9465_v9  ;;  %v5573_v28 = vmul.f32 0.6931472, %v7645_v55  ;;  %6322 = vperm.xlu0 %7567, %v6249_v46   ;;  %v5504_v25 = vpop.xlane.xlu0 %5503  ;;  %v5465_v33 = vpop.xlane.xlu1 %5464  ;;  %v10021_v9 = vld [vmem:[#allocation37_spill] sm:$0xff] }
 0x7ea   : > { %7650 = vlog2.f32 %v5504_v25  ;;  %v10022_v46 = vld [vmem:[#allocation41_spill] sm:$0xff] }
 0x7eb   : > { %v5628_v6 = vadd.f32 %v5573_v28, %v9421_v16  ;;  %7652 = vlog2.f32 %v5465_v33  ;;  %v6251_v0 = vmul.f32 %v10020_v30, %v6009_v45 }
 0x7ec   : > { %v7647_v52 = vpop.eup %7646 }
 0x7ed   : > { %v6011_v54 = vsub.f32 %v5628_v6, %v9472_v56  ;;  %v5577_v2 = vmul.f32 0.6931472, %v7647_v52  ;;  %6328 = vperm.xlu0 %7567, %v6251_v0   ;;  %v5471_v48 = vpop.xlane.xlu1 %5470 }
 0x7ee   : > { %7654 = vlog2.f32 %v5471_v48 }
 0x7ef   : > { %v5630_v41 = vadd.f32 %v5577_v2, %v9425_v32  ;;  %v6253_v57 = vmul.f32 %v10021_v9, %v6011_v54 }
 0x7f0   : > { %v7649_v27 = vpop.eup %7648 }
 0x7f1   : > { %v6013_v37 = vsub.f32 %v5630_v41, %v9480_v50  ;;  %v5581_v47 = vmul.f32 0.6931472, %v7649_v27  ;;  %6334 = vperm.xlu0 %7567, %v6253_v57   ;;  %v5477_v16 = vpop.xlane.xlu1 %5476  ;;  %v10023_v50 = vld [vmem:[#allocation45_spill] sm:$0xff] }
 0x7f2   : > { %7656 = vlog2.f32 %v5477_v16  ;;  %v10026_v16 = vld [vmem:[#allocation32_spill] sm:$0xff] }
 0x7f3   : > { %v5632_v22 = vadd.f32 %v5581_v47, %v9430_v17  ;;  %v6255_v55 = vmul.f32 %v10022_v46, %v6013_v37 }
 0x7f4   : > { %v7651_v56 = vpop.eup %7650 }
 0x7f5   : > { %v7653_v45 = vpop.eup %7652  ;;  %v6015_v28 = vsub.f32 %v5632_v22, %v9487_v59  ;;  %v5585_v25 = vmul.f32 0.6931472, %v7651_v56  ;;  %6340 = vperm.xlu0 %7567, %v6255_v55   ;;  %v5483_v33 = vpop.xlane.xlu1 %5482  ;;  %v10024_v59 = vld [vmem:[#allocation49_spill] sm:$0xff] }
 0x7f6   : > { %v5559_v32 = vmul.f32 0.6931472, %v7653_v45  ;;  %7658 = vlog2.f32 %v5483_v33 }
 0x7f7   : > { %v5634_v6 = vadd.f32 %v5585_v25, %v9435_v44  ;;  %v6257_v30 = vmul.f32 %v10023_v50, %v6015_v28 }
 0x7f8   : > { %v5621_v0 = vadd.f32 %v5559_v32, %v9442_v38  ;;  %v7655_v52 = vpop.eup %7654  ;;  %v10025_v38 = vld [vmem:[#allocation23_spill] sm:$0xff] }
 0x7f9   : > { %v6017_v17 = vsub.f32 %v5634_v6, %v9494_v23  ;;  %6346 = vperm.xlu0 %7567, %v6257_v30   ;;  %v5563_v54 = vmul.f32 0.6931472, %v7655_v52  ;;  %v5489_v2 = vpop.xlane.xlu1 %5488  ;;  %v10028_v6 = vld [vmem:[#allocation42_spill] sm:$0xff] }
 0x7fa   : > { %v6004_v48 = vsub.f32 %v5621_v0, %v9499_v60  ;;  %7660 = vlog2.f32 %v5489_v2  ;;  %v10029_v52 = vld [vmem:[#allocation46_spill] sm:$0xff] }
 0x7fb   : > { %v6259_v41 = vmul.f32 %v10024_v59, %v6017_v17  ;;  %v5623_v9 = vadd.f32 %v5563_v54, %v9440_v20  ;;  %v10030_v59 = vld [vmem:[#allocation50_spill] sm:$0xff] }
 0x7fc   : > { %v7657_v57 = vpop.eup %7656  ;;  %v6246_v47 = vmul.f32 %v10025_v38, %v6004_v48 }
 0x7fd   : > { %6352 = vperm.xlu0 %7567, %v6259_v41   ;;  %v6006_v44 = vsub.f32 %v5623_v9, %v9497_v12  ;;  %v5567_v27 = vmul.f32 0.6931472, %v7657_v57  ;;  %v5495_v37 = vpop.xlane.xlu1 %5494  ;;  %v10027_v12 = vld [vmem:[#allocation38_spill] sm:$0xff] }
 0x7fe   : > { %7662 = vlog2.f32 %v5495_v37 }
 0x7ff   : > { %v5625_v23 = vadd.f32 %v5567_v27, %v9449_v26  ;;  %v6248_v22 = vmul.f32 %v10026_v16, %v6006_v44  ;;  %v10031_v27 = vld [vmem:[#allocation53_spill] sm:$0xff] }
 0x800   : > { %v7659_v46 = vpop.eup %7658 }
 0x801   : > { %6313 = vperm.xlu0 %7567, %v6246_v47   ;;  %v6008_v60 = vsub.f32 %v5625_v23, %v9502_v29  ;;  %v5571_v55 = vmul.f32 0.6931472, %v7659_v46  ;;  %v5501_v56 = vpop.xlane.xlu1 %5500  ;;  %6319 = vperm.xlu1 %7566, %v6248_v22  }
 0x802   : > { %7664 = vlog2.f32 %v5501_v56 }
 0x803   : > { %v5627_v20 = vadd.f32 %v5571_v55, %v9456_v63  ;;  %v6250_v45 = vmul.f32 %v10027_v12, %v6008_v60 }
 0x804   : > { %v7661_v28 = vpop.eup %7660 }
 0x805   : > { %v6010_v25 = vsub.f32 %v5627_v20, %v9509_v24  ;;  %v5575_v32 = vmul.f32 0.6931472, %v7661_v28  ;;  %v5507_v33 = vpop.xlane.xlu1 %5506  ;;  %6325 = vperm.xlu1 %7566, %v6250_v45  }
 0x806   : > { %7666 = vlog2.f32 %v5507_v33 }
 0x807   : > { %v5629_v26 = vadd.f32 %v5575_v32, %v9463_v5  ;;  %v6252_v50 = vmul.f32 %v10028_v6, %v6010_v25 }
 0x808   : > { %v7663_v29 = vpop.eup %7662 }
 0x809   : > { %v6012_v30 = vsub.f32 %v5629_v26, %v9516_v58  ;;  %v5579_v0 = vmul.f32 0.6931472, %v7663_v29  ;;  %6331 = vperm.xlu1 %7566, %v6252_v50  }
 0x80b   : > { %v5631_v63 = vadd.f32 %v5579_v0, %v9470_v11  ;;  %v6254_v17 = vmul.f32 %v10029_v52, %v6012_v30 }
 0x80c   : > { %v7665_v54 = vpop.eup %7664 }
 0x80d   : > { %v5510_v2 = vpop.xlane.xlu0 %5509  ;;  %v6014_v24 = vsub.f32 %v5631_v63, %v9523_v49  ;;  %v5583_v48 = vmul.f32 0.6931472, %v7665_v54  ;;  %6337 = vperm.xlu1 %7566, %v6254_v17   ;;  %v10036_v54 = vld [vmem:[#allocation35_spill] sm:$0xff] }
 0x80e   : > { %7668 = vlog2.f32 %v5510_v2 }
 0x80f   : > { %v5633_v5 = vadd.f32 %v5583_v48, %v9478_v4  ;;  %v6256_v41 = vmul.f32 %v10030_v59, %v6014_v24  ;;  %v10032_v4 = vld [vmem:[#allocation55_spill] sm:$0xff] }
 0x810   : > { %v7667_v9 = vpop.eup %7666 }
 0x811   : > { %v5516_v57 = vpop.xlane.xlu0 %5515  ;;  %v6016_v58 = vsub.f32 %v5633_v5, %v9529_v31  ;;  %v5587_v44 = vmul.f32 0.6931472, %v7667_v9  ;;  %6343 = vperm.xlu1 %7566, %v6256_v41  }
 0x812   : > { %7670 = vlog2.f32 %v5516_v57 }
 0x813   : > { %v5635_v11 = vadd.f32 %v5587_v44, %v9485_v53  ;;  %v6258_v37 = vmul.f32 %v10031_v27, %v6016_v58 }
 0x815   : > { %v5522_v38 = vpop.xlane.xlu0 %5521  ;;  %v6018_v49 = vsub.f32 %v5635_v11, %v9536_v3  ;;  %6349 = vperm.xlu1 %7566, %v6258_v37   ;;  %v10033_v3 = vld [vmem:[#allocation26_spill] sm:$0xff] }
 0x816   : > { %7672 = vlog2.f32 %v5522_v38 }
 0x817   : > { %v6260_v23 = vmul.f32 %v10032_v4, %v6018_v49 }
 0x818   : > { %v7669_v47 = vpop.eup %7668 }
 0x819   : > { %v5589_v16 = vmul.f32 0.6931472, %v7669_v47  ;;  %v5528_v22 = vpop.xlane.xlu0 %5527  ;;  %6355 = vperm.xlu1 %7566, %v6260_v23  }
 0x81a   : > { %7674 = vlog2.f32 %v5528_v22 }
 0x81b   : > { %v5636_v31 = vadd.f32 %v5589_v16, %v9504_v51  ;;  %v10034_v51 = vld [vmem:[#allocation27_spill] sm:$0xff] }
 0x81c   : > { %v7671_v46 = vpop.eup %7670 }
 0x81d   : > { %v6019_v60 = vsub.f32 %v5636_v31, %v9583_v1  ;;  %v5593_v53 = vmul.f32 0.6931472, %v7671_v46  ;;  %v5534_v55 = vpop.xlane.xlu0 %5533  ;;  %v10039_v31 = vld [vmem:[#allocation34_spill] sm:$0xff] }
 0x81e   : > { %7676 = vlog2.f32 %v5534_v55  ;;  %v10041_v55 = vld [vmem:[#allocation47_spill] sm:$0xff] }
 0x81f   : > { %v5638_v56 = vadd.f32 %v5593_v53, %v9511_v43  ;;  %v6261_v20 = vmul.f32 %v10033_v3, %v6019_v60  ;;  %v10040_v60 = vld [vmem:[#allocation15_spill] sm:$0xff] }
 0x820   : > { %v7673_v12 = vpop.eup %7672 }
 0x821   : > { %v6021_v45 = vsub.f32 %v5638_v56, %v9595_v36  ;;  %v5597_v28 = vmul.f32 0.6931472, %v7673_v12  ;;  %6358 = vperm.xlu0 %7567, %v6261_v20   ;;  %v5540_v25 = vpop.xlane.xlu0 %5539  ;;  %v10035_v36 = vld [vmem:[#allocation31_spill] sm:$0xff]  ;;  %v10043_v12 = vld [vmem:[#allocation22_spill] sm:$0xff] }
 0x822   : > { %7678 = vlog2.f32 %v5540_v25  ;;  %v10045_v25 = vld [vmem:[#allocation36_spill] sm:$0xff] }
 0x823   : > { %v5640_v32 = vadd.f32 %v5597_v28, %v9518_v14  ;;  %v6263_v33 = vmul.f32 %v10034_v51, %v6021_v45  ;;  %v10046_v51 = vld [vmem:[#allocation51_spill] sm:$0xff] }
 0x824   : > { %v7675_v26 = vpop.eup %7674 }
 0x825   : > { %v6023_v1 = vsub.f32 %v5640_v32, %v9598_v8  ;;  %v5601_v6 = vmul.f32 0.6931472, %v7675_v26  ;;  %v5513_v50 = vpop.xlane.xlu1 %5512  ;;  %6364 = vperm.xlu0 %7567, %v6263_v33   ;;  %v10047_v26 = vld [vmem:[#allocation20_spill] sm:$0xff] }
 0x826   : > { %7680 = vlog2.f32 %v5513_v50  ;;  %v5546_v43 = vpop.xlane.xlu0 %5545 }
 0x827   : > { %v5642_v29 = vadd.f32 %v5601_v6, %v9525_v21  ;;  %7682 = vlog2.f32 %v5546_v43  ;;  %v6265_v30 = vmul.f32 %v10035_v36, %v6023_v1  ;;  %v10048_v43 = vld [vmem:[#allocation13_spill] sm:$0xff]  ;;  %v10049_v36 = vld [vmem:[#allocation40_spill] sm:$0xff] }
 0x828   : > { %v7677_v0 = vpop.eup %7676 }
 0x829   : > { %v6025_v63 = vsub.f32 %v5642_v29, %v9602_v13  ;;  %v5605_v52 = vmul.f32 0.6931472, %v7677_v0  ;;  %v5519_v14 = vpop.xlane.xlu1 %5518  ;;  %6370 = vperm.xlu0 %7567, %v6265_v30   ;;  %v10037_v13 = vld [vmem:[#allocation39_spill] sm:$0xff] }
 0x82a   : > { %7684 = vlog2.f32 %v5519_v14  ;;  %v5552_v17 = vpop.xlane.xlu0 %5551 }
 0x82b   : > { %v5644_v8 = vadd.f32 %v5605_v52, %v9531_v18  ;;  %7686 = vlog2.f32 %v5552_v17  ;;  %v6267_v2 = vmul.f32 %v10036_v54, %v6025_v63  ;;  %v10050_v63 = vld [vmem:[#allocation25_spill] sm:$0xff] }
 0x82c   : > { %v7679_v24 = vpop.eup %7678 }
 0x82d   : > { %v6027_v48 = vsub.f32 %v5644_v8, %v9606_v42  ;;  %v5609_v21 = vmul.f32 0.6931472, %v7679_v24  ;;  %v5525_v5 = vpop.xlane.xlu1 %5524  ;;  %6376 = vperm.xlu0 %7567, %v6267_v2   ;;  %v10038_v42 = vld [vmem:[#allocation43_spill] sm:$0xff]  ;;  %v10052_v2 = vld [vmem:[#allocation44_spill] sm:$0xff] }
 0x82e   : > { %7688 = vlog2.f32 %v5525_v5  ;;  %v10051_v8 = vld [vmem:[#allocation19_spill] sm:$0xff] }
 0x82f   : > { %v5646_v59 = vadd.f32 %v5609_v21, %v9538_v35  ;;  %v6269_v41 = vmul.f32 %v10037_v13, %v6027_v48  ;;  %v10053_v21 = vld [vmem:[#allocation28_spill] sm:$0xff]  ;;  %v10054_v13 = vld [vmem:[#allocation14_spill] sm:$0xff] }
 0x830   : > { %v7681_v9 = vpop.eup %7680 }
 0x831   : > { %v7683_v57 = vpop.eup %7682  ;;  %v6029_v58 = vsub.f32 %v5646_v59, %v9610_v10  ;;  %v5591_v44 = vmul.f32 0.6931472, %v7681_v9  ;;  %v5531_v18 = vpop.xlane.xlu1 %5530  ;;  %6382 = vperm.xlu0 %7567, %v6269_v41   ;;  %v10055_v9 = vld [vmem:[#allocation48_spill] sm:$0xff] }
 0x832   : > { %v5613_v11 = vmul.f32 0.6931472, %v7683_v57  ;;  %7690 = vlog2.f32 %v5531_v18 }
 0x833   : > { %v5637_v27 = vadd.f32 %v5591_v44, %v9543_v40  ;;  %v6271_v37 = vmul.f32 %v10038_v42, %v6029_v58  ;;  %v10057_v42 = vld [vmem:[#allocation52_spill] sm:$0xff] }
 0x834   : > { %v7685_v38 = vpop.eup %7684  ;;  %v5648_v49 = vadd.f32 %v5613_v11, %v9545_v62  ;;  %v10042_v62 = vld [vmem:[#allocation18_spill] sm:$0xff]  ;;  %v10056_v11 = vld [vmem:[#allocation21_spill] sm:$0xff] }
 0x835   : > { %v7687_v47 = vpop.eup %7686  ;;  %v6020_v35 = vsub.f32 %v5637_v27, %v9608_v39  ;;  %v5595_v4 = vmul.f32 0.6931472, %v7685_v38  ;;  %v5537_v23 = vpop.xlane.xlu1 %5536  ;;  %6388 = vperm.xlu0 %7567, %v6271_v37  }
 0x836   : > { %v6031_v10 = vsub.f32 %v5648_v49, %v9614_v7  ;;  %v5617_v16 = vmul.f32 0.6931472, %v7687_v47  ;;  %7692 = vlog2.f32 %v5537_v23  ;;  %v10044_v7 = vld [vmem:[#allocation17_spill] sm:$0xff]  ;;  %v10059_v23 = vld [vmem:[#allocation16_spill] sm:$0xff] }
 0x837   : > { %v5639_v22 = vadd.f32 %v5595_v4, %v9552_v19  ;;  %v6262_v46 = vmul.f32 %v10039_v31, %v6020_v35  ;;  %v10058_v35 = vld [vmem:[#allocation54_spill] sm:$0xff] }
 0x838   : > { %v7689_v40 = vpop.eup %7688  ;;  %v5650_v53 = vadd.f32 %v5617_v16, %v10040_v60  ;;  %v6273_v56 = vmul.f32 %v10041_v55, %v6031_v10  ;;  %v6212_v16 = vpop.permute.xlu0 %6211 }
 0x839   : > { %v6022_v3 = vsub.f32 %v5639_v22, %v10042_v62  ;;  %v5599_v20 = vmul.f32 0.6931472, %v7689_v40  ;;  %v5543_v39 = vpop.xlane.xlu1 %5542  ;;  %6361 = vperm.xlu1 %7566, %v6262_v46  }
 0x83a   : > { %v6033_v45 = vsub.f32 %v5650_v53, %v10043_v12  ;;  %7694 = vlog2.f32 %v5543_v39  ;;  %6394 = vperm.xlu0 %7567, %v6273_v56  }
 0x83b   : > { %v5641_v28 = vadd.f32 %v5599_v20, %v10044_v7  ;;  %v6264_v19 = vmul.f32 %v10045_v25, %v6022_v3 }
 0x83c   : > { %v7691_v32 = vpop.eup %7690  ;;  %v6275_v33 = vmul.f32 %v10046_v51, %v6033_v45 }
 0x83d   : > { %v6024_v1 = vsub.f32 %v5641_v28, %v10047_v26  ;;  %v5603_v6 = vmul.f32 0.6931472, %v7691_v32  ;;  %v5549_v50 = vpop.xlane.xlu1 %5548  ;;  %6367 = vperm.xlu1 %7566, %v6264_v19  }
 0x83e   : > { %7696 = vlog2.f32 %v5549_v50  ;;  %6400 = vperm.xlu0 %7567, %v6275_v33   ;;  %v10060_v33 = vld [vmem:[#allocation11_spill] sm:$0xff] }
 0x83f   : > { %v5643_v29 = vadd.f32 %v5603_v6, %v10048_v43  ;;  %v6266_v30 = vmul.f32 %v10049_v36, %v6024_v1  ;;  %v6409_v26 = vadd.s32 4294967288, %v10060_v33  ;;  %v10061_v6 = vld [vmem:[#allocation10_spill] sm:$0xff] }
 0x840   : > { %v7693_v0 = vpop.eup %7692  ;;  %v9755_v36 = vsub.s32 %v10060_v33, %v10061_v6 }
 0x841   : > { %v6026_v52 = vsub.f32 %v5643_v29, %v10050_v63  ;;  %v5607_v14 = vmul.f32 0.6931472, %v7693_v0  ;;  %v5555_v17 = vpop.xlane.xlu1 %5554  ;;  %6373 = vperm.xlu1 %7566, %v6266_v30   ;;  %v9749_v50 = vsub.s32 %v6409_v26, %v10061_v6 }
 0x842   : > { %7698 = vlog2.f32 %v5555_v17 }
 0x843   : > { %v5645_v54 = vadd.f32 %v5607_v14, %v10051_v8  ;;  %v6268_v24 = vmul.f32 %v10052_v2, %v6026_v52 }
 0x844   : > { %v7695_v48 = vpop.eup %7694 }
 0x845   : > { %v6028_v5 = vsub.f32 %v5645_v54, %v10053_v21  ;;  %v5611_v59 = vmul.f32 0.6931472, %v7695_v48  ;;  %6379 = vperm.xlu1 %7566, %v6268_v24  }
 0x847   : > { %v5647_v41 = vadd.f32 %v5611_v59, %v10054_v13  ;;  %v6270_v57 = vmul.f32 %v10055_v9, %v6028_v5 }
 0x848   : > { %v7697_v58 = vpop.eup %7696 }
 0x849   : > { %v6030_v44 = vsub.f32 %v5647_v41, %v9624_v61  ;;  %v5615_v18 = vmul.f32 0.6931472, %v7697_v58  ;;  %6385 = vperm.xlu1 %7566, %v6270_v57  }
 0x84b   : > { %v5649_v27 = vadd.f32 %v5615_v18, %v10056_v11  ;;  %v6272_v37 = vmul.f32 %v10057_v42, %v6030_v44 }
 0x84c   : > { %v7699_v38 = vpop.eup %7698 }
 0x84d   : > { %v6032_v49 = vsub.f32 %v5649_v27, %v9630_v34  ;;  %v5619_v47 = vmul.f32 0.6931472, %v7699_v38  ;;  %6391 = vperm.xlu1 %7566, %v6272_v37  }
 0x84f   : > { %v6274_v4 = vmul.f32 %v10058_v35, %v6032_v49  ;;  %v5651_v10 = vadd.f32 %v5619_v47, %v10059_v23 }
 0x851   : > { %6397 = vperm.xlu1 %7566, %v6274_v4   ;;  %v6034_v22 = vsub.f32 %v5651_v10, %v9636_v15 }
 0x853   : > { %v6276_v61 = vmul.f32 %v6212_v16, %v6034_v22 }
 0x855   : > { %6403 = vperm.xlu1 %7566, %v6276_v61  }
 0x860   : > { %v6311_v46 = vpop.permute.xlu1 %6310 }
 0x861   : > { %v6408_v14 = vrot.slane %v6311_v46, %v9755_v36 }
 0x864   : > { %v6317_v60 = vpop.permute.xlu1 %6316 }
 0x865   : > { %v6419_v17 = vrot.slane %v6317_v60, %v9755_v36 }
 0x868   : > { %v6323_v31 = vpop.permute.xlu0 %6322 }
 0x869   : > { %v6428_v2 = vrot.slane %v6323_v31, %v9755_v36 }
 0x86c   : > { %v6329_v40 = vpop.permute.xlu0 %6328 }
 0x86d   : > { %v6437_v24 = vrot.slane %v6329_v40, %v9755_v36 }
 0x870   : > { %v9725_v53 = vpop.permute.xlu0 %6334 }
 0x871   : > { %v6446_v13 = vrot.slane %v9725_v53, %v9755_v36 }
 0x874   : > { %v9727_v34 = vpop.permute.xlu0 %6340 }
 0x875   : > { %v6455_v41 = vrot.slane %v9727_v34, %v9755_v36 }
 0x878   : > { %v9729_v62 = vpop.permute.xlu0 %6346 }
 0x879   : > { %v6464_v57 = vrot.slane %v9729_v62, %v9755_v36 }
 0x87c   : > { %v9731_v20 = vpop.permute.xlu0 %6352 }
 0x87d   : > { %v6473_v58 = vrot.slane %v9731_v20, %v9755_v36 }
 0x880   : > { %v6320_v55 = vpop.permute.xlu1 %6319  ;;  %v6314_v15 = vpop.permute.xlu0 %6313 }
 0x881   : > { %v6423_v30 = vrot.slane %v6320_v55, %v9749_v50  ;;  %v6413_v0 = vrot.slane %v6314_v15, %v9749_v50 }
 0x883   : > { %v6424_v48 = vsel %vm6414_vm6, %v6423_v30, %v6419_v17  ;;  %v6415_v21 = vsel %vm6414_vm6, %v6413_v0, %v6408_v14 }
 0x884   : > { %v6326_v56 = vpop.permute.xlu1 %6325  ;;  %v6552_v44 = vsel %vm6551_vm8, %v6424_v48, %v6415_v21 }
 0x885   : > { %v6432_v52 = vrot.slane %v6326_v56, %v9749_v50 }
 0x887   : > { %v6433_v59 = vsel %vm6414_vm6, %v6432_v52, %v6428_v2 }
 0x888   : > { %v6332_v3 = vpop.permute.xlu1 %6331  ;;  %v6554_v11 = vsel %vm6553_vm10, %v6433_v59, %v6552_v44 }
 0x889   : > { %v6441_v8 = vrot.slane %v6332_v3, %v9749_v50 }
 0x88b   : > { %v6442_v9 = vsel %vm6414_vm6, %v6441_v8, %v6437_v24 }
 0x88c   : > { %v9733_v39 = vpop.permute.xlu1 %6337  ;;  %v6556_v47 = vsel %vm6555_vm7, %v6442_v9, %v6554_v11 }
 0x88d   : > { %v6450_v27 = vrot.slane %v9733_v39, %v9749_v50 }
 0x88f   : > { %v6451_v53 = vsel %vm6414_vm6, %v6450_v27, %v6446_v13 }
 0x890   : > { %v9735_v12 = vpop.permute.xlu1 %6343 }
 0x891   : > { %v6459_v42 = vrot.slane %v9735_v12, %v9749_v50 }
 0x893   : > { %v6460_v55 = vsel %vm6414_vm6, %v6459_v42, %v6455_v41 }
 0x894   : > { %v9739_v7 = vpop.permute.xlu1 %6349 }
 0x895   : > { %v6468_v10 = vrot.slane %v9739_v7, %v9749_v50 }
 0x897   : > { %v6469_v12 = vsel %vm6414_vm6, %v6468_v10, %v6464_v57 }
 0x898   : > { %v9741_v25 = vpop.permute.xlu1 %6355 }
 0x899   : > { %v6477_v16 = vrot.slane %v9741_v25, %v9749_v50 }
 0x8a0   : > { %v9737_v45 = vpop.permute.xlu0 %6358 }
 0x8a1   : > { %v6482_v31 = vrot.slane %v9737_v45, %v9755_v36 }
 0x8a4   : > { %v6365_v28 = vpop.permute.xlu0 %6364 }
 0x8a5   : > { %v6491_v35 = vrot.slane %v6365_v28, %v9755_v36 }
 0x8a8   : > { %v6371_v19 = vpop.permute.xlu0 %6370 }
 0x8a9   : > { %v6500_v22 = vrot.slane %v6371_v19, %v9755_v36  ;;  %v6558_v19 = vsel %vm6557_vm12, %v6451_v53, %v6556_v47 }
 0x8aa   : > { %v6560_v26 = vsel %vm6559_vm9, %v6460_v55, %v6558_v19 }
 0x8ac   : > { %v9745_v51 = vpop.permute.xlu0 %6376 }
 0x8ad   : > { %v6509_v46 = vrot.slane %v9745_v51, %v9755_v36 }
 0x8b0   : > { %v9751_v43 = vpop.permute.xlu0 %6382 }
 0x8b1   : > { %v6518_v34 = vrot.slane %v9751_v43, %v9755_v36 }
 0x8b4   : > { %v6389_v54 = vpop.permute.xlu0 %6388 }
 0x8b5   : > { %v6527_v3 = vrot.slane %v6389_v54, %v9755_v36 }
 0x8b8   : > { %v9743_v32 = vpop.permute.xlu1 %6361 }
 0x8b9   : > { %v6395_v37 = vpop.permute.xlu0 %6394  ;;  %v6486_v4 = vrot.slane %v9743_v32, %v9749_v50  ;;  %v6478_v32 = vsel %vm6414_vm6, %v6477_v16, %v6473_v58 }
 0x8ba   : > { %v6536_v45 = vrot.slane %v6395_v37, %v9755_v36 }
 0x8bb   : > { %v6487_v20 = vsel %vm6414_vm6, %v6486_v4, %v6482_v31 }
 0x8bc   : > { %v6368_v1 = vpop.permute.xlu1 %6367 }
 0x8bd   : > { %v6495_v18 = vrot.slane %v6368_v1, %v9749_v50  ;;  %v6401_v28 = vpop.permute.xlu0 %6400 }
 0x8be   : > { %v6545_v30 = vrot.slane %v6401_v28, %v9755_v36 }
 0x8bf   : > { %v6496_v40 = vsel %vm6414_vm6, %v6495_v18, %v6491_v35 }
 0x8c0   : > { %v6374_v29 = vpop.permute.xlu1 %6373  ;;  %v6565_v7 = vsel %vm6551_vm8, %v6496_v40, %v6487_v20 }
 0x8c1   : > { %v6504_v38 = vrot.slane %v6374_v29, %v9749_v50  ;;  %v6562_v29 = vsel %vm6561_vm13, %v6469_v12, %v6560_v26 }
 0x8c2   : > { %v6564_v14 = vsel %vm6563_vm14, %v6478_v32, %v6562_v29 }
 0x8c3   : > { %v6505_v56 = vsel %vm6414_vm6, %v6504_v38, %v6500_v22  ;;  %v6574_v2 = vsel %vm2232_vm11, %v6564_v14, 0.0 }
 0x8c4   : > { %v6380_v63 = vpop.permute.xlu1 %6379  ;;  %v6566_v51 = vsel %vm6553_vm10, %v6505_v56, %v6565_v7 }
 0x8c5   : > { %v6513_v23 = vrot.slane %v6380_v63, %v9749_v50 }
 0x8c7   : > { %v6514_v39 = vsel %vm6414_vm6, %v6513_v23, %v6509_v46 }
 0x8c8   : > { %v6386_v5 = vpop.permute.xlu1 %6385  ;;  %v6567_v1 = vsel %vm6555_vm7, %v6514_v39, %v6566_v51 }
 0x8c9   : > { %v6522_v61 = vrot.slane %v6386_v5, %v9749_v50 }
 0x8cb   : > { %v6523_v25 = vsel %vm6414_vm6, %v6522_v61, %v6518_v34 }
 0x8cc   : > { %v6392_v49 = vpop.permute.xlu1 %6391  ;;  %v6568_v0 = vsel %vm6557_vm12, %v6523_v25, %v6567_v1 }
 0x8cd   : > { %v6531_v60 = vrot.slane %v6392_v49, %v9749_v50 }
 0x8cf   : > { %v6532_v33 = vsel %vm6414_vm6, %v6531_v60, %v6527_v3 }
 0x8d0   : > { %v6398_v62 = vpop.permute.xlu1 %6397  ;;  %v6569_v52 = vsel %vm6559_vm9, %v6532_v33, %v6568_v0 }
 0x8d1   : > { %v6540_v15 = vrot.slane %v6398_v62, %v9749_v50 }
 0x8d3   : > { %v6541_v6 = vsel %vm6414_vm6, %v6540_v15, %v6536_v45 }
 0x8d4   : > { %v6404_v43 = vpop.permute.xlu1 %6403  ;;  %v6570_v17 = vsel %vm6561_vm13, %v6541_v6, %v6569_v52 }
 0x8d5   : > { %v6549_v63 = vrot.slane %v6404_v43, %v9749_v50  ;;  %v10062_v50 = vmov 0.0  }
 0x8d6   : > { %1550 = vst.msk [vmem:[%s9837_s15] sm:$0x1] %vm1549_vm15, %v10062_v50 }
 0x8d7   : > { %v6550_v8 = vsel %vm6414_vm6, %v6549_v63, %v6545_v30 }
 0x8d8   : > { %v6571_v54 = vsel %vm6563_vm14, %v6550_v8, %v6570_v17 }
 0x8d9   : > { %v6575_v36 = vsel %vm2232_vm11, %v6571_v54, 0.0 }
 0x8da   : > { %v6576_v24 = vadd.f32 %v6575_v36, %v6574_v2 }
 0x8dc   : > { %6577 = vadd.xlane.f32.xlu0 %v6576_v24 }
 0x8dd   : > { %7735 = shalt.err (!%p7732_p13)
}
 0x8de   : > { %s7736_s0 = scalar_lea.hbm %s9846_s26, 512  ;;  %s7740_s21 = scalar_lea.hbm %s9911_s9, 1024 }
 0x8df   : > { %p7737_p0 = scmp.ne.s32.totalorder %s9846_s26, %s7736_s0  ;;  %p7741_p4 = scmp.lt.u32.totalorder %s9846_s26, %s9911_s9 }
 0x8e0   : > { %p7742_p5 = scmp.lt.u32.totalorder %s7740_s21, %s7736_s0  ;;  %p7744_p7 = scmp.lt.u32.totalorder %s7736_s0, %s9846_s26 }
 0x8e1   : > { %p7738_p1 = pnand %p7737_p0, %p7932_p12 }
 0x8e2   : > { %p7743_p6 = por %p7742_p5, %p7741_p4 }
 0x8e3   : > { %p7739_p3 = pneg %p7738_p1 }
 0x8e4   : > { %p7745_p8 = por %p7744_p7, %p7743_p6 }
 0x8e6   : > { %p7746_p9 = pnand %p7745_p8, %p7739_p3 }
 0x8e8   : > { %7749 = shalt.err (!%p7746_p9)
}
 0x8e9   : > { %s7821_s24 = smov 256   ;;  %v6002_v57 = vld [vmem:[%s9837_s15] sm:$0x1] }
 0x8ea   : > { %7494 = dma.vmem_to_hbm [thread:$0]  (%p7932_p12), %s9849_s22, 512, %s9846_s26, %s9853_s1, %s7821_s24, %s7821_s24, %s9959_s25  }
 0x969   : > { %v6578_v48 = vpop.xlane.xlu0 %6577 }
 0x96a   : > { %v6579_v21 = vrot.slane %v6578_v48, 4 }
 0x96c   : > { %v6580_v5 = vadd.f32 %v6579_v21, %v6578_v48 }
 0x96e   : > { %v6581_v59 = vrot.slane %v6580_v5, 2 }
 0x970   : > { %v6582_v13 = vadd.f32 %v6581_v59, %v6580_v5 }
 0x972   : > { %v6583_v41 = vrot.slane %v6582_v13, 1 }
 0x974   : > { %v6584_v9 = vadd.f32 %v6583_v41, %v6582_v13 }
 0x976   : > { %7492 = vpush %v6584_v9 }
 0x9a7   : > { %s7493_s20 = spop %7492 }
 0x9a8   : > { %v6586_v58 = vstv %s7493_s20 }
 0x9a9   : > { %v6587_v44 = vadd.f32 %v6586_v58, %v6002_v57 }
 0x9ab   : > { %6589 = vst.msk [vmem:[%s9837_s15] sm:$0x1] %vm1549_vm15, %v6587_v44 }
 0x9ac PF: > { %p7500_p10 = scmp.ge.s32.totalorder %s7802_s12, 2  ;;  %s6627_s16 = sand.u32 1, %s7782_s27  }
 0x9ad   : > { %s6628_s25 = scalar_lea.sflag [#allocation7], %s6627_s16 }
 0x9ae   : > { %p7497_p12 = pnand %p7500_p10, %p7939_p2 }
 0x9b0   : > { %7777 = dma.done.wait (!%p7497_p12), %s6628_s25, 512  }
 0x9b1   : > { %7779 = vsyncadd (!%p7497_p12), %s6628_s25, 4294966784  ;;  %s32_s12 = sadd.s32 1, %s7802_s12   ;;  %s10063_s27 = smov %s7786_s28 }
 0x9b2   : > { %p29_p11 = scmp.ge.s32.totalorder %s32_s12, 4   ;;  %s10064_s28 = smov %s7790_s29 }
 0x9b3   : > { %s10065_s29 = smov %s7945_s19  ;;  %s10066_s30 = smov %s7798_s11 }
 0x9b4   : > { %s10067_s11 = smov %s10069_s14  ;;  %31 = sbr.rel (!%p29_p11) target bundleno = 26 (0x1a), region = 105 }
 0x9bb   :  { %6639 = vsyncpa [#allocation7], 1 }
 0x9bc   :  { %6641 = vsyncpa [#allocation7 + $0x1], 1 }

</bundles_post_ra>
